<compile_context>
chip_gen: v6e
topology: v6e:2x2x1
jax: 0.10.0
libtpu: 0.0.40
codegen_flags: <defaults>
</compile_context>

<pallas_src>
import jax
import jax.numpy as jnp
from jax.experimental import pallas as pl
from jax.experimental.pallas import tpu as pltpu

NEG_SLOPE = 0.01   # nn.LeakyReLU default
BN_EPS = 1e-5      # nn.BatchNorm1d default
CONV_CHANNELS = (16, 32, 16, 1)


def _leaky(x):
    return jnp.maximum(x, NEG_SLOPE * x)


def init_params(key, drug_size, cell_size, hidden_size, field_size):
    """Deterministic synthetic parameters (shapes match the nn.Module)."""
    ks = jax.random.split(key, 16)
    conv_dims = [(field_size, 16), (16, 32), (32, 16), (16, 1)]
    conv = []
    for i, (cin, cout) in enumerate(conv_dims):
        w = jax.random.normal(ks[i], (cout, cin), jnp.float32) / jnp.sqrt(cin)
        b = jax.random.normal(ks[i + 4], (cout,), jnp.float32) * 0.1
        conv.append((w, b, jnp.ones((cout,), jnp.float32), jnp.zeros((cout,), jnp.float32)))
    in_dim = 2 * drug_size + cell_size
    lin_dims = [(in_dim, hidden_size), (hidden_size, hidden_size // 2), (hidden_size // 2, 1)]
    lin = []
    for i, (din, dout) in enumerate(lin_dims):
        w = jax.random.normal(ks[8 + i], (dout, din), jnp.float32) / jnp.sqrt(din)
        b = jax.random.normal(ks[11 + i], (dout,), jnp.float32) * 0.1
        lin.append((w, b))
    bn = [(jnp.ones((hidden_size,), jnp.float32), jnp.zeros((hidden_size,), jnp.float32)),
          (jnp.ones((hidden_size // 2,), jnp.float32), jnp.zeros((hidden_size // 2,), jnp.float32))]
    return {"conv": conv, "lin": lin, "bn": bn}


def patchy_san_forward(drug1_feat, drug2_feat, cell_feat, params):
    B, L, F = cell_feat.shape                       # (B, cell_size, field_size)
    D = drug1_feat.shape[1]
    conv = params["conv"]
    (w1, b1), (w2, b2), (w3, b3) = params["lin"]
    (g1, be1), (g2, be2) = params["bn"]
    H = w1.shape[0]
    H2 = w2.shape[0]
    N = B * L
    couts = tuple(w.shape[0] for (w, _, _, _) in conv)
    cmax = max(couts)

    # ---- host-side layout plumbing (no compute hoisted into the wrapper) ----
    # tokens-on-lanes conv input: x_t[c, b*L + l] = cell_feat[b, l, c]
    x_t = jnp.transpose(cell_feat.astype(jnp.float32), (2, 0, 1)).reshape(F, N)
    drugs = jnp.concatenate([drug1_feat.astype(jnp.float32),
                             drug2_feat.astype(jnp.float32)], axis=1)        # (B, 2D)

    conv_ws = [w.astype(jnp.float32) for (w, _, _, _) in conv]               # (Cout, Cin)
    # pack per-output-channel bias/gamma/beta as columns: conv_aux[:o, 3i + {0,1,2}]
    conv_aux = jnp.zeros((cmax, 3 * len(conv)), jnp.float32)
    for i, (_, b, g, be) in enumerate(conv):
        o = couts[i]
        conv_aux = conv_aux.at[:o, 3 * i + 0].set(b)
        conv_aux = conv_aux.at[:o, 3 * i + 1].set(g)
        conv_aux = conv_aux.at[:o, 3 * i + 2].set(be)

    # split W1 along its input dim ([drug1|drug2] block, cell block) and pre-transpose
    w1d_t = jnp.transpose(w1[:, :2 * D]).astype(jnp.float32)                 # (2D, H)
    w1c_t = jnp.transpose(w1[:, 2 * D:]).astype(jnp.float32)                 # (L, H)
    w2_t = jnp.transpose(w2).astype(jnp.float32)                             # (H, H2)
    w3_t = jnp.transpose(w3).astype(jnp.float32)                             # (H2, 1)

    # pack MLP bias/gamma/beta rows: 0..2 -> layer1 (len H), 3..5 -> layer2 (len H2), 6 -> b3
    mlp_aux = jnp.zeros((8, H), jnp.float32)
    mlp_aux = mlp_aux.at[0, :].set(b1).at[1, :].set(g1).at[2, :].set(be1)
    mlp_aux = mlp_aux.at[3, :H2].set(b2).at[4, :H2].set(g2).at[5, :H2].set(be2)
    mlp_aux = mlp_aux.at[6, 0].set(b3[0])

    def kernel(x_ref, drugs_ref, cw0_ref, cw1_ref, cw2_ref, cw3_ref, caux_ref,
               w1d_ref, w1c_ref, w2_ref, w3_ref, maux_ref, out_ref, cell_scr):
        inv_n = 1.0 / float(N)
        inv_b = 1.0 / float(B)

        # ---- conv stack: activations (Cout, B*L), tokens on the lane dim ----
        h = x_ref[...]                                                     # (F, N)
        for i, w_ref in enumerate((cw0_ref, cw1_ref, cw2_ref, cw3_ref)):
            o = couts[i]
            bias = caux_ref[:o, 3 * i + 0:3 * i + 1]                       # (o, 1)
            gam = caux_ref[:o, 3 * i + 1:3 * i + 2]
            bet = caux_ref[:o, 3 * i + 2:3 * i + 3]
            # Conv1d(k=1) == W @ X in this layout (no transpose needed)
            y = jnp.dot(w_ref[...], h, preferred_element_type=jnp.float32) + bias
            # one-pass BatchNorm1d over all B*L positions per channel (biased var)
            mean = jnp.sum(y, axis=-1, keepdims=True) * inv_n              # (o, 1)
            msq = jnp.sum(y * y, axis=-1, keepdims=True) * inv_n
            var = msq - mean * mean
            y = (y - mean) * jax.lax.rsqrt(var + BN_EPS) * gam + bet
            h = _leaky(y)

        # ---- relayout (1, B*L) -> (B, L) via VMEM scratch (B small row stores) ----
        # (for very large B this could become a fori_loop over pl.ds row windows)
        for b in range(B):
            cell_scr[b:b + 1, :] = h[:, b * L:(b + 1) * L]
        cell = cell_scr[...]                                               # (B, L)

        # ---- MLP head: batch on sublanes, features on lanes ----
        z = (jnp.dot(drugs_ref[...], w1d_ref[...], preferred_element_type=jnp.float32)
             + jnp.dot(cell, w1c_ref[...], preferred_element_type=jnp.float32)
             + maux_ref[0:1, :])                                           # (B, H)
        z = _leaky(z)
        mean = jnp.sum(z, axis=0, keepdims=True) * inv_b
        msq = jnp.sum(z * z, axis=0, keepdims=True) * inv_b
        z = ((z - mean) * jax.lax.rsqrt(msq - mean * mean + BN_EPS)
             * maux_ref[1:2, :] + maux_ref[2:3, :])

        z = jnp.dot(z, w2_ref[...], preferred_element_type=jnp.float32) + maux_ref[3:4, :H2]
        z = _leaky(z)
        mean = jnp.sum(z, axis=0, keepdims=True) * inv_b
        msq = jnp.sum(z * z, axis=0, keepdims=True) * inv_b
        z = ((z - mean) * jax.lax.rsqrt(msq - mean * mean + BN_EPS)
             * maux_ref[4:5, :H2] + maux_ref[5:6, :H2])

        out_ref[...] = (jnp.dot(z, w3_ref[...], preferred_element_type=jnp.float32)
                        + maux_ref[6:7, 0:1])                              # (B, 1)

    args = [x_t, drugs] + conv_ws + [conv_aux, w1d_t, w1c_t, w2_t, w3_t, mlp_aux]
    return pl.pallas_call(
        kernel,
        out_shape=jax.ShapeDtypeStruct((B, 1), jnp.float32),
        in_specs=[pl.BlockSpec(memory_space=pltpu.MemorySpace.VMEM) for _ in args],
        out_specs=pl.BlockSpec(memory_space=pltpu.MemorySpace.VMEM),
        scratch_shapes=[pltpu.VMEM((B, L), jnp.float32)],
        compiler_params=pltpu.CompilerParams(vmem_limit_bytes=32 * 1024 * 1024),
    )(*args)


def reference_forward(drug1_feat, drug2_feat, cell_feat, params):
    """Pure-JAX reference mirroring the PyTorch module (training-mode BN)."""
    def bn(h, g_, be_, axes):
        m = jnp.mean(h, axis=axes, keepdims=True)
        v = jnp.mean((h - m) ** 2, axis=axes, keepdims=True)
        return g_ * (h - m) / jnp.sqrt(v + BN_EPS) + be_

    x = jnp.transpose(cell_feat.astype(jnp.float32), (0, 2, 1))            # (B, F, L)
    for (w, b, g, be) in params["conv"]:
        x = jnp.einsum("oc,bcl->bol", w, x) + b[None, :, None]
        x = bn(x, g[None, :, None], be[None, :, None], axes=(0, 2))
        x = jnp.where(x >= 0, x, NEG_SLOPE * x)
    cell_out = x[:, 0, :]                                                  # (B, L)
    feat = jnp.concatenate([drug1_feat, drug2_feat, cell_out], axis=1).astype(jnp.float32)
    (w1, b1), (w2, b2), (w3, b3) = params["lin"]
    (g1, be1), (g2, be2) = params["bn"]
    h = feat @ w1.T + b1
    h = jnp.where(h >= 0, h, NEG_SLOPE * h)
    h = bn(h, g1, be1, axes=0)
    h = h @ w2.T + b2
    h = jnp.where(h >= 0, h, NEG_SLOPE * h)
    h = bn(h, g2, be2, axes=0)
    return h @ w3.T + b3


if __name__ == "__main__":
    # Small shapes consistent with the module (L chosen lane-dense: multiple of 128).
    B, drug_size, cell_size, hidden_size, field_size = 8, 32, 256, 64, 8

    key = jax.random.PRNGKey(0)
    k1, k2, k3, kp = jax.random.split(key, 4)
    drug1 = jax.random.normal(k1, (B, drug_size), jnp.float32)
    drug2 = jax.random.normal(k2, (B, drug_size), jnp.float32)
    cell = jax.random.normal(k3, (B, cell_size, field_size), jnp.float32)

    params = init_params(kp, drug_size, cell_size, hidden_size, field_size)

    out = patchy_san_forward(drug1, drug2, cell, params)
    out = jax.block_until_ready(out)
    assert out.shape == (B, 1), out.shape

    with jax.default_matmul_precision("highest"):
        ref = jax.block_until_ready(reference_forward(drug1, drug2, cell, params))
    err = float(jnp.max(jnp.abs(out - ref)))
    tol = 2e-2 * max(1.0, float(jnp.max(jnp.abs(ref))))
    assert err < tol, f"kernel/reference mismatch: max abs err = {err}"
    print("KERNEL_OK")
</pallas_src>

<mosaic_0001>
module attributes {stable_mosaic.version = 11 : i64} {
  func.func @kernel(%arg0: memref<8x2048xf32, #tpu.memory_space<vmem>>, %arg1: memref<8x64xf32, #tpu.memory_space<vmem>>, %arg2: memref<16x8xf32, #tpu.memory_space<vmem>>, %arg3: memref<32x16xf32, #tpu.memory_space<vmem>>, %arg4: memref<16x32xf32, #tpu.memory_space<vmem>>, %arg5: memref<1x16xf32, #tpu.memory_space<vmem>>, %arg6: memref<32x12xf32, #tpu.memory_space<vmem>>, %arg7: memref<64x64xf32, #tpu.memory_space<vmem>>, %arg8: memref<256x64xf32, #tpu.memory_space<vmem>>, %arg9: memref<64x32xf32, #tpu.memory_space<vmem>>, %arg10: memref<32x1xf32, #tpu.memory_space<vmem>>, %arg11: memref<8x64xf32, #tpu.memory_space<vmem>>, %arg12: memref<8x1xf32, #tpu.memory_space<vmem>>, %arg13: memref<8x256xf32, #tpu.memory_space<vmem>>) attributes {dimension_semantics = [], scalar_prefetch = 0 : i64, scratch_operands = 1 : i64, tpu.core_type = #tpu.core_type<tc>} {
    %c0 = arith.constant 0 : index
    %c0_0 = arith.constant 0 : index
    %0 = vector.load %arg0[%c0, %c0_0] : memref<8x2048xf32, #tpu.memory_space<vmem>>, vector<8x2048xf32>
    %c0_1 = arith.constant 0 : index
    %c0_2 = arith.constant 0 : index
    %1 = vector.load %arg6[%c0_1, %c0_2] : memref<32x12xf32, #tpu.memory_space<vmem>>, vector<16x1xf32>
    %c0_3 = arith.constant 0 : index
    %c1 = arith.constant 1 : index
    %2 = vector.load %arg6[%c0_3, %c1] : memref<32x12xf32, #tpu.memory_space<vmem>>, vector<16x1xf32>
    %c0_4 = arith.constant 0 : index
    %c2 = arith.constant 2 : index
    %3 = vector.load %arg6[%c0_4, %c2] : memref<32x12xf32, #tpu.memory_space<vmem>>, vector<16x1xf32>
    %c0_5 = arith.constant 0 : index
    %c0_6 = arith.constant 0 : index
    %4 = vector.load %arg2[%c0_5, %c0_6] : memref<16x8xf32, #tpu.memory_space<vmem>>, vector<16x8xf32>
    %cst = arith.constant dense<0.000000e+00> : vector<16x2048xf32>
    %5 = tpu.matmul %4, %0, %cst {dimension_numbers = #tpu.dot_dimension_numbers<[1], [0], [0], [1], [0, 0, 1, 1], [], []>} : vector<16x8xf32>, vector<8x2048xf32>, vector<16x2048xf32> -> vector<16x2048xf32>
    %6 = vector.broadcast %1 : vector<16x1xf32> to vector<16x2048xf32>
    %7 = arith.addf %5, %6 : vector<16x2048xf32>
    %cst_7 = arith.constant dense<0.000000e+00> : vector<16xf32>
    %8 = vector.multi_reduction <add>, %7, %cst_7 [1] : vector<16x2048xf32> to vector<16xf32>
    %9 = vector.shape_cast %8 : vector<16xf32> to vector<16x1xf32>
    %cst_8 = arith.constant 4.8828125E-4 : f32
    %10 = vector.broadcast %cst_8 : f32 to vector<16x1xf32>
    %11 = arith.mulf %9, %10 : vector<16x1xf32>
    %12 = arith.mulf %7, %7 : vector<16x2048xf32>
    %cst_9 = arith.constant dense<0.000000e+00> : vector<16xf32>
    %13 = vector.multi_reduction <add>, %12, %cst_9 [1] : vector<16x2048xf32> to vector<16xf32>
    %14 = vector.shape_cast %13 : vector<16xf32> to vector<16x1xf32>
    %cst_10 = arith.constant 4.8828125E-4 : f32
    %15 = vector.broadcast %cst_10 : f32 to vector<16x1xf32>
    %16 = arith.mulf %14, %15 : vector<16x1xf32>
    %17 = arith.mulf %11, %11 : vector<16x1xf32>
    %18 = arith.subf %16, %17 : vector<16x1xf32>
    %19 = vector.broadcast %11 : vector<16x1xf32> to vector<16x2048xf32>
    %20 = arith.subf %7, %19 : vector<16x2048xf32>
    %cst_11 = arith.constant 9.99999974E-6 : f32
    %21 = vector.broadcast %cst_11 : f32 to vector<16x1xf32>
    %22 = arith.addf %18, %21 : vector<16x1xf32>
    %23 = math.rsqrt %22 : vector<16x1xf32>
    %24 = vector.broadcast %23 : vector<16x1xf32> to vector<16x2048xf32>
    %25 = arith.mulf %20, %24 : vector<16x2048xf32>
    %26 = vector.broadcast %2 : vector<16x1xf32> to vector<16x2048xf32>
    %27 = arith.mulf %25, %26 : vector<16x2048xf32>
    %28 = vector.broadcast %3 : vector<16x1xf32> to vector<16x2048xf32>
    %29 = arith.addf %27, %28 : vector<16x2048xf32>
    %cst_12 = arith.constant 0.00999999977 : f32
    %30 = vector.broadcast %cst_12 : f32 to vector<16x2048xf32>
    %31 = arith.mulf %30, %29 : vector<16x2048xf32>
    %32 = arith.maximumf %29, %31 : vector<16x2048xf32>
    %c0_13 = arith.constant 0 : index
    %c3 = arith.constant 3 : index
    %33 = vector.load %arg6[%c0_13, %c3] : memref<32x12xf32, #tpu.memory_space<vmem>>, vector<32x1xf32>
    %c0_14 = arith.constant 0 : index
    %c4 = arith.constant 4 : index
    %34 = vector.load %arg6[%c0_14, %c4] : memref<32x12xf32, #tpu.memory_space<vmem>>, vector<32x1xf32>
    %c0_15 = arith.constant 0 : index
    %c5 = arith.constant 5 : index
    %35 = vector.load %arg6[%c0_15, %c5] : memref<32x12xf32, #tpu.memory_space<vmem>>, vector<32x1xf32>
    %c0_16 = arith.constant 0 : index
    %c0_17 = arith.constant 0 : index
    %36 = vector.load %arg3[%c0_16, %c0_17] : memref<32x16xf32, #tpu.memory_space<vmem>>, vector<32x16xf32>
    %cst_18 = arith.constant dense<0.000000e+00> : vector<32x2048xf32>
    %37 = tpu.matmul %36, %32, %cst_18 {dimension_numbers = #tpu.dot_dimension_numbers<[1], [0], [0], [1], [0, 0, 1, 1], [], []>} : vector<32x16xf32>, vector<16x2048xf32>, vector<32x2048xf32> -> vector<32x2048xf32>
    %38 = vector.broadcast %33 : vector<32x1xf32> to vector<32x2048xf32>
    %39 = arith.addf %37, %38 : vector<32x2048xf32>
    %cst_19 = arith.constant dense<0.000000e+00> : vector<32xf32>
    %40 = vector.multi_reduction <add>, %39, %cst_19 [1] : vector<32x2048xf32> to vector<32xf32>
    %41 = vector.shape_cast %40 : vector<32xf32> to vector<32x1xf32>
    %cst_20 = arith.constant 4.8828125E-4 : f32
    %42 = vector.broadcast %cst_20 : f32 to vector<32x1xf32>
    %43 = arith.mulf %41, %42 : vector<32x1xf32>
    %44 = arith.mulf %39, %39 : vector<32x2048xf32>
    %cst_21 = arith.constant dense<0.000000e+00> : vector<32xf32>
    %45 = vector.multi_reduction <add>, %44, %cst_21 [1] : vector<32x2048xf32> to vector<32xf32>
    %46 = vector.shape_cast %45 : vector<32xf32> to vector<32x1xf32>
    %cst_22 = arith.constant 4.8828125E-4 : f32
    %47 = vector.broadcast %cst_22 : f32 to vector<32x1xf32>
    %48 = arith.mulf %46, %47 : vector<32x1xf32>
    %49 = arith.mulf %43, %43 : vector<32x1xf32>
    %50 = arith.subf %48, %49 : vector<32x1xf32>
    %51 = vector.broadcast %43 : vector<32x1xf32> to vector<32x2048xf32>
    %52 = arith.subf %39, %51 : vector<32x2048xf32>
    %cst_23 = arith.constant 9.99999974E-6 : f32
    %53 = vector.broadcast %cst_23 : f32 to vector<32x1xf32>
    %54 = arith.addf %50, %53 : vector<32x1xf32>
    %55 = math.rsqrt %54 : vector<32x1xf32>
    %56 = vector.broadcast %55 : vector<32x1xf32> to vector<32x2048xf32>
    %57 = arith.mulf %52, %56 : vector<32x2048xf32>
    %58 = vector.broadcast %34 : vector<32x1xf32> to vector<32x2048xf32>
    %59 = arith.mulf %57, %58 : vector<32x2048xf32>
    %60 = vector.broadcast %35 : vector<32x1xf32> to vector<32x2048xf32>
    %61 = arith.addf %59, %60 : vector<32x2048xf32>
    %cst_24 = arith.constant 0.00999999977 : f32
    %62 = vector.broadcast %cst_24 : f32 to vector<32x2048xf32>
    %63 = arith.mulf %62, %61 : vector<32x2048xf32>
    %64 = arith.maximumf %61, %63 : vector<32x2048xf32>
    %c0_25 = arith.constant 0 : index
    %c6 = arith.constant 6 : index
    %65 = vector.load %arg6[%c0_25, %c6] : memref<32x12xf32, #tpu.memory_space<vmem>>, vector<16x1xf32>
    %c0_26 = arith.constant 0 : index
    %c7 = arith.constant 7 : index
    %66 = vector.load %arg6[%c0_26, %c7] : memref<32x12xf32, #tpu.memory_space<vmem>>, vector<16x1xf32>
    %c0_27 = arith.constant 0 : index
    %c8 = arith.constant 8 : index
    %67 = vector.load %arg6[%c0_27, %c8] : memref<32x12xf32, #tpu.memory_space<vmem>>, vector<16x1xf32>
    %c0_28 = arith.constant 0 : index
    %c0_29 = arith.constant 0 : index
    %68 = vector.load %arg4[%c0_28, %c0_29] : memref<16x32xf32, #tpu.memory_space<vmem>>, vector<16x32xf32>
    %cst_30 = arith.constant dense<0.000000e+00> : vector<16x2048xf32>
    %69 = tpu.matmul %68, %64, %cst_30 {dimension_numbers = #tpu.dot_dimension_numbers<[1], [0], [0], [1], [0, 0, 1, 1], [], []>} : vector<16x32xf32>, vector<32x2048xf32>, vector<16x2048xf32> -> vector<16x2048xf32>
    %70 = vector.broadcast %65 : vector<16x1xf32> to vector<16x2048xf32>
    %71 = arith.addf %69, %70 : vector<16x2048xf32>
    %cst_31 = arith.constant dense<0.000000e+00> : vector<16xf32>
    %72 = vector.multi_reduction <add>, %71, %cst_31 [1] : vector<16x2048xf32> to vector<16xf32>
    %73 = vector.shape_cast %72 : vector<16xf32> to vector<16x1xf32>
    %cst_32 = arith.constant 4.8828125E-4 : f32
    %74 = vector.broadcast %cst_32 : f32 to vector<16x1xf32>
    %75 = arith.mulf %73, %74 : vector<16x1xf32>
    %76 = arith.mulf %71, %71 : vector<16x2048xf32>
    %cst_33 = arith.constant dense<0.000000e+00> : vector<16xf32>
    %77 = vector.multi_reduction <add>, %76, %cst_33 [1] : vector<16x2048xf32> to vector<16xf32>
    %78 = vector.shape_cast %77 : vector<16xf32> to vector<16x1xf32>
    %cst_34 = arith.constant 4.8828125E-4 : f32
    %79 = vector.broadcast %cst_34 : f32 to vector<16x1xf32>
    %80 = arith.mulf %78, %79 : vector<16x1xf32>
    %81 = arith.mulf %75, %75 : vector<16x1xf32>
    %82 = arith.subf %80, %81 : vector<16x1xf32>
    %83 = vector.broadcast %75 : vector<16x1xf32> to vector<16x2048xf32>
    %84 = arith.subf %71, %83 : vector<16x2048xf32>
    %cst_35 = arith.constant 9.99999974E-6 : f32
    %85 = vector.broadcast %cst_35 : f32 to vector<16x1xf32>
    %86 = arith.addf %82, %85 : vector<16x1xf32>
    %87 = math.rsqrt %86 : vector<16x1xf32>
    %88 = vector.broadcast %87 : vector<16x1xf32> to vector<16x2048xf32>
    %89 = arith.mulf %84, %88 : vector<16x2048xf32>
    %90 = vector.broadcast %66 : vector<16x1xf32> to vector<16x2048xf32>
    %91 = arith.mulf %89, %90 : vector<16x2048xf32>
    %92 = vector.broadcast %67 : vector<16x1xf32> to vector<16x2048xf32>
    %93 = arith.addf %91, %92 : vector<16x2048xf32>
    %cst_36 = arith.constant 0.00999999977 : f32
    %94 = vector.broadcast %cst_36 : f32 to vector<16x2048xf32>
    %95 = arith.mulf %94, %93 : vector<16x2048xf32>
    %96 = arith.maximumf %93, %95 : vector<16x2048xf32>
    %c0_37 = arith.constant 0 : index
    %c9 = arith.constant 9 : index
    %97 = vector.load %arg6[%c0_37, %c9] : memref<32x12xf32, #tpu.memory_space<vmem>>, vector<1x1xf32>
    %c0_38 = arith.constant 0 : index
    %c10 = arith.constant 10 : index
    %98 = vector.load %arg6[%c0_38, %c10] : memref<32x12xf32, #tpu.memory_space<vmem>>, vector<1x1xf32>
    %c0_39 = arith.constant 0 : index
    %c11 = arith.constant 11 : index
    %99 = vector.load %arg6[%c0_39, %c11] : memref<32x12xf32, #tpu.memory_space<vmem>>, vector<1x1xf32>
    %c0_40 = arith.constant 0 : index
    %c0_41 = arith.constant 0 : index
    %100 = vector.load %arg5[%c0_40, %c0_41] : memref<1x16xf32, #tpu.memory_space<vmem>>, vector<1x16xf32>
    %cst_42 = arith.constant dense<0.000000e+00> : vector<1x2048xf32>
    %101 = tpu.matmul %100, %96, %cst_42 {dimension_numbers = #tpu.dot_dimension_numbers<[1], [0], [0], [1], [0, 0, 1, 1], [], []>} : vector<1x16xf32>, vector<16x2048xf32>, vector<1x2048xf32> -> vector<1x2048xf32>
    %102 = vector.broadcast %97 : vector<1x1xf32> to vector<1x2048xf32>
    %103 = arith.addf %101, %102 : vector<1x2048xf32>
    %cst_43 = arith.constant dense<0.000000e+00> : vector<1xf32>
    %104 = vector.multi_reduction <add>, %103, %cst_43 [1] : vector<1x2048xf32> to vector<1xf32>
    %105 = vector.shape_cast %104 : vector<1xf32> to vector<1x1xf32>
    %cst_44 = arith.constant 4.8828125E-4 : f32
    %106 = vector.broadcast %cst_44 : f32 to vector<1x1xf32>
    %107 = arith.mulf %105, %106 : vector<1x1xf32>
    %108 = arith.mulf %103, %103 : vector<1x2048xf32>
    %cst_45 = arith.constant dense<0.000000e+00> : vector<1xf32>
    %109 = vector.multi_reduction <add>, %108, %cst_45 [1] : vector<1x2048xf32> to vector<1xf32>
    %110 = vector.shape_cast %109 : vector<1xf32> to vector<1x1xf32>
    %cst_46 = arith.constant 4.8828125E-4 : f32
    %111 = vector.broadcast %cst_46 : f32 to vector<1x1xf32>
    %112 = arith.mulf %110, %111 : vector<1x1xf32>
    %113 = arith.mulf %107, %107 : vector<1x1xf32>
    %114 = arith.subf %112, %113 : vector<1x1xf32>
    %115 = vector.broadcast %107 : vector<1x1xf32> to vector<1x2048xf32>
    %116 = arith.subf %103, %115 : vector<1x2048xf32>
    %cst_47 = arith.constant 9.99999974E-6 : f32
    %117 = vector.broadcast %cst_47 : f32 to vector<1x1xf32>
    %118 = arith.addf %114, %117 : vector<1x1xf32>
    %119 = math.rsqrt %118 : vector<1x1xf32>
    %120 = vector.broadcast %119 : vector<1x1xf32> to vector<1x2048xf32>
    %121 = arith.mulf %116, %120 : vector<1x2048xf32>
    %122 = vector.broadcast %98 : vector<1x1xf32> to vector<1x2048xf32>
    %123 = arith.mulf %121, %122 : vector<1x2048xf32>
    %124 = vector.broadcast %99 : vector<1x1xf32> to vector<1x2048xf32>
    %125 = arith.addf %123, %124 : vector<1x2048xf32>
    %cst_48 = arith.constant 0.00999999977 : f32
    %126 = vector.broadcast %cst_48 : f32 to vector<1x2048xf32>
    %127 = arith.mulf %126, %125 : vector<1x2048xf32>
    %128 = arith.maximumf %125, %127 : vector<1x2048xf32>
    %129 = vector.extract_strided_slice %128 {offsets = [0, 0], sizes = [1, 256], strides = [1, 1]} : vector<1x2048xf32> to vector<1x256xf32>
    %c0_49 = arith.constant 0 : index
    %c0_50 = arith.constant 0 : index
    %130 = vector.load %arg13[%c0_49, %c0_50] : memref<8x256xf32, #tpu.memory_space<vmem>>, vector<1x256xf32>
    tpu.vector_store %arg13[%c0_49, %c0_50], %129 {strides = array<i32>} : memref<8x256xf32, #tpu.memory_space<vmem>>, vector<1x256xf32>,
    %131 = vector.extract_strided_slice %128 {offsets = [0, 256], sizes = [1, 256], strides = [1, 1]} : vector<1x2048xf32> to vector<1x256xf32>
    %c1_51 = arith.constant 1 : index
    %c0_52 = arith.constant 0 : index
    %132 = vector.load %arg13[%c1_51, %c0_52] : memref<8x256xf32, #tpu.memory_space<vmem>>, vector<1x256xf32>
    tpu.vector_store %arg13[%c1_51, %c0_52], %131 {strides = array<i32>} : memref<8x256xf32, #tpu.memory_space<vmem>>, vector<1x256xf32>,
    %133 = vector.extract_strided_slice %128 {offsets = [0, 512], sizes = [1, 256], strides = [1, 1]} : vector<1x2048xf32> to vector<1x256xf32>
    %c2_53 = arith.constant 2 : index
    %c0_54 = arith.constant 0 : index
    %134 = vector.load %arg13[%c2_53, %c0_54] : memref<8x256xf32, #tpu.memory_space<vmem>>, vector<1x256xf32>
    tpu.vector_store %arg13[%c2_53, %c0_54], %133 {strides = array<i32>} : memref<8x256xf32, #tpu.memory_space<vmem>>, vector<1x256xf32>,
    %135 = vector.extract_strided_slice %128 {offsets = [0, 768], sizes = [1, 256], strides = [1, 1]} : vector<1x2048xf32> to vector<1x256xf32>
    %c3_55 = arith.constant 3 : index
    %c0_56 = arith.constant 0 : index
    %136 = vector.load %arg13[%c3_55, %c0_56] : memref<8x256xf32, #tpu.memory_space<vmem>>, vector<1x256xf32>
    tpu.vector_store %arg13[%c3_55, %c0_56], %135 {strides = array<i32>} : memref<8x256xf32, #tpu.memory_space<vmem>>, vector<1x256xf32>,
    %137 = vector.extract_strided_slice %128 {offsets = [0, 1024], sizes = [1, 256], strides = [1, 1]} : vector<1x2048xf32> to vector<1x256xf32>
    %c4_57 = arith.constant 4 : index
    %c0_58 = arith.constant 0 : index
    %138 = vector.load %arg13[%c4_57, %c0_58] : memref<8x256xf32, #tpu.memory_space<vmem>>, vector<1x256xf32>
    tpu.vector_store %arg13[%c4_57, %c0_58], %137 {strides = array<i32>} : memref<8x256xf32, #tpu.memory_space<vmem>>, vector<1x256xf32>,
    %139 = vector.extract_strided_slice %128 {offsets = [0, 1280], sizes = [1, 256], strides = [1, 1]} : vector<1x2048xf32> to vector<1x256xf32>
    %c5_59 = arith.constant 5 : index
    %c0_60 = arith.constant 0 : index
    %140 = vector.load %arg13[%c5_59, %c0_60] : memref<8x256xf32, #tpu.memory_space<vmem>>, vector<1x256xf32>
    tpu.vector_store %arg13[%c5_59, %c0_60], %139 {strides = array<i32>} : memref<8x256xf32, #tpu.memory_space<vmem>>, vector<1x256xf32>,
    %141 = vector.extract_strided_slice %128 {offsets = [0, 1536], sizes = [1, 256], strides = [1, 1]} : vector<1x2048xf32> to vector<1x256xf32>
    %c6_61 = arith.constant 6 : index
    %c0_62 = arith.constant 0 : index
    %142 = vector.load %arg13[%c6_61, %c0_62] : memref<8x256xf32, #tpu.memory_space<vmem>>, vector<1x256xf32>
    tpu.vector_store %arg13[%c6_61, %c0_62], %141 {strides = array<i32>} : memref<8x256xf32, #tpu.memory_space<vmem>>, vector<1x256xf32>,
    %143 = vector.extract_strided_slice %128 {offsets = [0, 1792], sizes = [1, 256], strides = [1, 1]} : vector<1x2048xf32> to vector<1x256xf32>
    %c7_63 = arith.constant 7 : index
    %c0_64 = arith.constant 0 : index
    %144 = vector.load %arg13[%c7_63, %c0_64] : memref<8x256xf32, #tpu.memory_space<vmem>>, vector<1x256xf32>
    tpu.vector_store %arg13[%c7_63, %c0_64], %143 {strides = array<i32>} : memref<8x256xf32, #tpu.memory_space<vmem>>, vector<1x256xf32>,
    %c0_65 = arith.constant 0 : index
    %c0_66 = arith.constant 0 : index
    %145 = vector.load %arg13[%c0_65, %c0_66] : memref<8x256xf32, #tpu.memory_space<vmem>>, vector<8x256xf32>
    %c0_67 = arith.constant 0 : index
    %c0_68 = arith.constant 0 : index
    %146 = vector.load %arg1[%c0_67, %c0_68] : memref<8x64xf32, #tpu.memory_space<vmem>>, vector<8x64xf32>
    %c0_69 = arith.constant 0 : index
    %c0_70 = arith.constant 0 : index
    %147 = vector.load %arg7[%c0_69, %c0_70] : memref<64x64xf32, #tpu.memory_space<vmem>>, vector<64x64xf32>
    %cst_71 = arith.constant dense<0.000000e+00> : vector<8x64xf32>
    %148 = tpu.matmul %146, %147, %cst_71 {dimension_numbers = #tpu.dot_dimension_numbers<[1], [0], [0], [1], [0, 0, 1, 1], [], []>} : vector<8x64xf32>, vector<64x64xf32>, vector<8x64xf32> -> vector<8x64xf32>
    %c0_72 = arith.constant 0 : index
    %c0_73 = arith.constant 0 : index
    %149 = vector.load %arg8[%c0_72, %c0_73] : memref<256x64xf32, #tpu.memory_space<vmem>>, vector<256x64xf32>
    %cst_74 = arith.constant dense<0.000000e+00> : vector<8x64xf32>
    %150 = tpu.matmul %145, %149, %cst_74 {dimension_numbers = #tpu.dot_dimension_numbers<[1], [0], [0], [1], [0, 0, 1, 1], [], []>} : vector<8x256xf32>, vector<256x64xf32>, vector<8x64xf32> -> vector<8x64xf32>
    %151 = arith.addf %148, %150 : vector<8x64xf32>
    %c0_75 = arith.constant 0 : index
    %c0_76 = arith.constant 0 : index
    %152 = vector.load %arg11[%c0_75, %c0_76] : memref<8x64xf32, #tpu.memory_space<vmem>>, vector<1x64xf32>
    %153 = vector.broadcast %152 : vector<1x64xf32> to vector<8x64xf32>
    %154 = arith.addf %151, %153 : vector<8x64xf32>
    %cst_77 = arith.constant 0.00999999977 : f32
    %155 = vector.broadcast %cst_77 : f32 to vector<8x64xf32>
    %156 = arith.mulf %155, %154 : vector<8x64xf32>
    %157 = arith.maximumf %154, %156 : vector<8x64xf32>
    %cst_78 = arith.constant dense<0.000000e+00> : vector<64xf32>
    %158 = vector.multi_reduction <add>, %157, %cst_78 [0] : vector<8x64xf32> to vector<64xf32>
    %159 = vector.shape_cast %158 : vector<64xf32> to vector<1x64xf32>
    %cst_79 = arith.constant 1.250000e-01 : f32
    %160 = vector.broadcast %cst_79 : f32 to vector<1x64xf32>
    %161 = arith.mulf %159, %160 : vector<1x64xf32>
    %162 = arith.mulf %157, %157 : vector<8x64xf32>
    %cst_80 = arith.constant dense<0.000000e+00> : vector<64xf32>
    %163 = vector.multi_reduction <add>, %162, %cst_80 [0] : vector<8x64xf32> to vector<64xf32>
    %164 = vector.shape_cast %163 : vector<64xf32> to vector<1x64xf32>
    %cst_81 = arith.constant 1.250000e-01 : f32
    %165 = vector.broadcast %cst_81 : f32 to vector<1x64xf32>
    %166 = arith.mulf %164, %165 : vector<1x64xf32>
    %167 = vector.broadcast %161 : vector<1x64xf32> to vector<8x64xf32>
    %168 = arith.subf %157, %167 : vector<8x64xf32>
    %169 = arith.mulf %161, %161 : vector<1x64xf32>
    %170 = arith.subf %166, %169 : vector<1x64xf32>
    %cst_82 = arith.constant 9.99999974E-6 : f32
    %171 = vector.broadcast %cst_82 : f32 to vector<1x64xf32>
    %172 = arith.addf %170, %171 : vector<1x64xf32>
    %173 = math.rsqrt %172 : vector<1x64xf32>
    %174 = vector.broadcast %173 : vector<1x64xf32> to vector<8x64xf32>
    %175 = arith.mulf %168, %174 : vector<8x64xf32>
    %c1_83 = arith.constant 1 : index
    %c0_84 = arith.constant 0 : index
    %176 = vector.load %arg11[%c1_83, %c0_84] : memref<8x64xf32, #tpu.memory_space<vmem>>, vector<1x64xf32>
    %177 = vector.broadcast %176 : vector<1x64xf32> to vector<8x64xf32>
    %178 = arith.mulf %175, %177 : vector<8x64xf32>
    %c2_85 = arith.constant 2 : index
    %c0_86 = arith.constant 0 : index
    %179 = vector.load %arg11[%c2_85, %c0_86] : memref<8x64xf32, #tpu.memory_space<vmem>>, vector<1x64xf32>
    %180 = vector.broadcast %179 : vector<1x64xf32> to vector<8x64xf32>
    %181 = arith.addf %178, %180 : vector<8x64xf32>
    %c0_87 = arith.constant 0 : index
    %c0_88 = arith.constant 0 : index
    %182 = vector.load %arg9[%c0_87, %c0_88] : memref<64x32xf32, #tpu.memory_space<vmem>>, vector<64x32xf32>
    %cst_89 = arith.constant dense<0.000000e+00> : vector<8x32xf32>
    %183 = tpu.matmul %181, %182, %cst_89 {dimension_numbers = #tpu.dot_dimension_numbers<[1], [0], [0], [1], [0, 0, 1, 1], [], []>} : vector<8x64xf32>, vector<64x32xf32>, vector<8x32xf32> -> vector<8x32xf32>
    %c3_90 = arith.constant 3 : index
    %c0_91 = arith.constant 0 : index
    %184 = vector.load %arg11[%c3_90, %c0_91] : memref<8x64xf32, #tpu.memory_space<vmem>>, vector<1x32xf32>
    %185 = vector.broadcast %184 : vector<1x32xf32> to vector<8x32xf32>
    %186 = arith.addf %183, %185 : vector<8x32xf32>
    %cst_92 = arith.constant 0.00999999977 : f32
    %187 = vector.broadcast %cst_92 : f32 to vector<8x32xf32>
    %188 = arith.mulf %187, %186 : vector<8x32xf32>
    %189 = arith.maximumf %186, %188 : vector<8x32xf32>
    %cst_93 = arith.constant dense<0.000000e+00> : vector<32xf32>
    %190 = vector.multi_reduction <add>, %189, %cst_93 [0] : vector<8x32xf32> to vector<32xf32>
    %191 = vector.shape_cast %190 : vector<32xf32> to vector<1x32xf32>
    %cst_94 = arith.constant 1.250000e-01 : f32
    %192 = vector.broadcast %cst_94 : f32 to vector<1x32xf32>
    %193 = arith.mulf %191, %192 : vector<1x32xf32>
    %194 = arith.mulf %189, %189 : vector<8x32xf32>
    %cst_95 = arith.constant dense<0.000000e+00> : vector<32xf32>
    %195 = vector.multi_reduction <add>, %194, %cst_95 [0] : vector<8x32xf32> to vector<32xf32>
    %196 = vector.shape_cast %195 : vector<32xf32> to vector<1x32xf32>
    %cst_96 = arith.constant 1.250000e-01 : f32
    %197 = vector.broadcast %cst_96 : f32 to vector<1x32xf32>
    %198 = arith.mulf %196, %197 : vector<1x32xf32>
    %199 = vector.broadcast %193 : vector<1x32xf32> to vector<8x32xf32>
    %200 = arith.subf %189, %199 : vector<8x32xf32>
    %201 = arith.mulf %193, %193 : vector<1x32xf32>
    %202 = arith.subf %198, %201 : vector<1x32xf32>
    %cst_97 = arith.constant 9.99999974E-6 : f32
    %203 = vector.broadcast %cst_97 : f32 to vector<1x32xf32>
    %204 = arith.addf %202, %203 : vector<1x32xf32>
    %205 = math.rsqrt %204 : vector<1x32xf32>
    %206 = vector.broadcast %205 : vector<1x32xf32> to vector<8x32xf32>
    %207 = arith.mulf %200, %206 : vector<8x32xf32>
    %c4_98 = arith.constant 4 : index
    %c0_99 = arith.constant 0 : index
    %208 = vector.load %arg11[%c4_98, %c0_99] : memref<8x64xf32, #tpu.memory_space<vmem>>, vector<1x32xf32>
    %209 = vector.broadcast %208 : vector<1x32xf32> to vector<8x32xf32>
    %210 = arith.mulf %207, %209 : vector<8x32xf32>
    %c5_100 = arith.constant 5 : index
    %c0_101 = arith.constant 0 : index
    %211 = vector.load %arg11[%c5_100, %c0_101] : memref<8x64xf32, #tpu.memory_space<vmem>>, vector<1x32xf32>
    %212 = vector.broadcast %211 : vector<1x32xf32> to vector<8x32xf32>
    %213 = arith.addf %210, %212 : vector<8x32xf32>
    %c0_102 = arith.constant 0 : index
    %c0_103 = arith.constant 0 : index
    %214 = vector.load %arg10[%c0_102, %c0_103] : memref<32x1xf32, #tpu.memory_space<vmem>>, vector<32x1xf32>
    %cst_104 = arith.constant dense<0.000000e+00> : vector<8x1xf32>
    %215 = tpu.matmul %213, %214, %cst_104 {dimension_numbers = #tpu.dot_dimension_numbers<[1], [0], [0], [1], [0, 0, 1, 1], [], []>} : vector<8x32xf32>, vector<32x1xf32>, vector<8x1xf32> -> vector<8x1xf32>
    %c6_105 = arith.constant 6 : index
    %c0_106 = arith.constant 0 : index
    %216 = vector.load %arg11[%c6_105, %c0_106] : memref<8x64xf32, #tpu.memory_space<vmem>>, vector<1x1xf32>
    %217 = vector.broadcast %216 : vector<1x1xf32> to vector<8x1xf32>
    %218 = arith.addf %215, %217 : vector<8x1xf32>
    %c0_107 = arith.constant 0 : index
    %c0_108 = arith.constant 0 : index
    %219 = vector.load %arg12[%c0_107, %c0_108] : memref<8x1xf32, #tpu.memory_space<vmem>>, vector<8x1xf32>
    tpu.vector_store %arg12[%c0_107, %c0_108], %218 {strides = array<i32>} : memref<8x1xf32, #tpu.memory_space<vmem>>, vector<8x1xf32>,
    return
  }
}

</mosaic_0001>

<bundles_post_ra>
// kernel: tpu_custom_call.1
= control target key start
LH: loop header
LB: loop body
LE: loop exit
PB: predicated region body
PF: predicated region fallthrough
CT: control target
= control target key end

     0   :  { %v7840_v2 = vmov 0.0   ;;  %vm71_vm0 = vcmask 64512   ;;  %v4998_v17 = vmov 0   ;;  %v4999_v22 = vmov 1   ;;  %s7827_s0 = inlined_call_operand.vmem [shape: f32[8,2048], index: 0, kind: input, shape index: {}]   ;;  %s7828_s2 = inlined_call_operand.vmem [shape: f32[16,8], index: 2, kind: input, shape index: {}]   ;;  %s7829_s6 = inlined_call_operand.vmem [shape: f32[32,12], index: 6, kind: input, shape index: {}]   ;;  %s7830_s3 = inlined_call_operand.vmem [shape: f32[32,16], index: 3, kind: input, shape index: {}]   ;;  %s7831_s4 = inlined_call_operand.vmem [shape: f32[16,32], index: 4, kind: input, shape index: {}]   ;;  %s7832_s5 = inlined_call_operand.vmem [shape: f32[1,16], index: 5, kind: input, shape index: {}]   ;;  %s7833_s8 = inlined_call_operand.vmem [shape: f32[256,64], index: 8, kind: input, shape index: {}]   ;;  %s7834_s7 = inlined_call_operand.vmem [shape: f32[64,64], index: 7, kind: input, shape index: {}]   ;;  %s7835_s1 = inlined_call_operand.vmem [shape: f32[8,64], index: 1, kind: input, shape index: {}]   ;;  %s7836_s9 = inlined_call_operand.vmem [shape: f32[64,32], index: 9, kind: input, shape index: {}]   ;;  %s7837_s11 = inlined_call_operand.vmem [shape: f32[8,64], index: 11, kind: input, shape index: {}]   ;;  %s7838_s10 = inlined_call_operand.vmem [shape: f32[32,1], index: 10, kind: input, shape index: {}]   ;;  %s7839_s12 = inlined_call_operand.vmem [shape: f32[8,1], index: 12, kind: output, shape index: {}]  }
   0x1   :  { %v42_v0 = vld [vmem:[%s7827_s0 + $0x8] sm:$0xff]  ;;  %v41_v1 = vld [vmem:[%s7827_s0] sm:$0xff]  ;;  %142 = vmatprep.mubr.f32.mxu0 %v7840_v2  ;;  %148 = vmatprep.mubr.f32.mxu1 %v7840_v2  ;;  %v44_v5 = vld [vmem:[%s7827_s0 + $0x18] sm:$0xff]  ;;  %vm1042_vm1 = vcmask 130048   ;;  %vm2417_vm2 = vcmask 261120   ;;  %vm3938_vm3 = vcmask 1040384  }
   0x2   :  { %v5088_v3 = vld [vmem:[%s7828_s2] sm:$0xff]  ;;  %108 = vmatprep.subr.mxu0 %v42_v0  ;;  %4932 = vmatprep.subr.mxu1 %v42_v0  ;;  %v5093_v4 = vld [vmem:[%s7828_s2 + $0x8] sm:$0xff]  ;;  %v43_v7 = vld [vmem:[%s7827_s0 + $0x10] sm:$0xff]  ;;  %vm5010_vm4 = vmmov 0   ;;  %vm4415_vm5 = vcmask 523264   ;;  %vm4737_vm7 = vcmask 7168  }
   0x3   :  { %v46_v6 = vld [vmem:[%s7827_s0 + $0x28] sm:$0xff]  ;;  %109 = vmatpush1.msra.mxu0 %v41_v1  ;;  %4933 = vmatpush1.msra.mxu1 %v41_v1  ;;  %v45_v8 = vld [vmem:[%s7827_s0 + $0x20] sm:$0xff]  ;;  %v48_v9 = vld [vmem:[%s7827_s0 + $0x38] sm:$0xff] }
   0x4   :  { %4743 = vmatmul.mubr.msk.f32.vlgmr.msra.gmra.mxu0 %vm71_vm0, %v5088_v3  ;;  %4744 = vmatmul.mubr.msk.f32.vlgmr.msra.gmra.mxu1 %vm71_vm0, %v5093_v4  ;;  %v50_v10 = vld [vmem:[%s7827_s0 + $0x48] sm:$0xff]  ;;  %v47_v11 = vld [vmem:[%s7827_s0 + $0x30] sm:$0xff]  ;;  %v49_v12 = vld [vmem:[%s7827_s0 + $0x40] sm:$0xff] }
   0x5   :  { %185 = vmatprep.subr.mxu1 %v44_v5  ;;  %262 = vmatprep.subr.mxu0 %v46_v6  ;;  %v52_v13 = vld [vmem:[%s7827_s0 + $0x58] sm:$0xff]  ;;  %v54_v14 = vld [vmem:[%s7827_s0 + $0x68] sm:$0xff]  ;;  %v51_v15 = vld [vmem:[%s7827_s0 + $0x50] sm:$0xff] }
   0x6   :  { %186 = vmatpush1.msra.mxu1 %v43_v7  ;;  %219 = vmatprep.mubr.f32.mxu1 %v7840_v2  ;;  %v53_v16 = vld [vmem:[%s7827_s0 + $0x60] sm:$0xff]  ;;  %v56_v18 = vld [vmem:[%s7827_s0 + $0x78] sm:$0xff]  ;;  %v5159_v19 = vld [vmem:[%s7829_s6 + $0x8] sm:$0xff] }
   0x7   :  { %263 = vmatpush1.msra.mxu0 %v45_v8  ;;  %296 = vmatprep.mubr.f32.mxu0 %v7840_v2  ;;  %v5171_v20 = vld [vmem:[%s7829_s6] sm:$0xff]  ;;  %v55_v21 = vld [vmem:[%s7827_s0 + $0x70] sm:$0xff] }
   0x8   :  { %4745 = vmatmul.mubr.msk.f32.vlgmr.msra.gmra.mxu1 %vm71_vm0, %v5088_v3  ;;  %4747 = vmatmul.mubr.msk.f32.vlgmr.msra.gmra.mxu0 %vm71_vm0, %v5088_v3 }
   0x9   :  { %225 = vmatprep.mubr.f32.mxu1 %v7840_v2  ;;  %302 = vmatprep.mubr.f32.mxu0 %v7840_v2 }
   0xa   :  { %339 = vmatprep.subr.mxu1 %v48_v9  ;;  %416 = vmatprep.subr.mxu0 %v50_v10 }
   0xb   :  { %340 = vmatpush1.msra.mxu1 %v47_v11  ;;  %417 = vmatpush1.msra.mxu0 %v49_v12 }
   0xc   :  { %4746 = vmatmul.mubr.msk.f32.gmra.mxu1 %vm71_vm0, %v5093_v4  ;;  %4748 = vmatmul.mubr.msk.f32.gmra.mxu0 %vm71_vm0, %v5093_v4 }
   0xd   :  { %373 = vmatprep.mubr.f32.mxu1 %v7840_v2  ;;  %450 = vmatprep.mubr.f32.mxu0 %v7840_v2 }
   0xe   :  { %493 = vmatprep.subr.mxu1 %v52_v13  ;;  %570 = vmatprep.subr.mxu0 %v54_v14 }
   0xf   :  { %4949 = vset.pattern.permute.xlu0 %v4998_v17  ;;  %4950 = vset.pattern.permute.xlu1 %v4999_v22 }
  0x10   :  { %4749 = vmatmul.mubr.msk.f32.vlgmr.msra.gmra.mxu1 %vm71_vm0, %v5088_v3  ;;  %4751 = vmatmul.mubr.msk.f32.vlgmr.msra.gmra.mxu0 %vm71_vm0, %v5088_v3 }
  0x11   :  { %379 = vmatprep.mubr.f32.mxu1 %v7840_v2  ;;  %456 = vmatprep.mubr.f32.mxu0 %v7840_v2 }
  0x12   :  { %494 = vmatpush1.msra.mxu1 %v51_v15  ;;  %571 = vmatpush1.msra.mxu0 %v53_v16 }
  0x13   :  { %647 = vmatprep.subr.mxu1 %v56_v18  ;;  %68 = vperm.xlu0 %4949, %v5159_v19  }
  0x14   :  { %4750 = vmatmul.mubr.msk.f32.gmra.mxu1 %vm71_vm0, %v5093_v4  ;;  %4752 = vmatmul.mubr.msk.f32.gmra.mxu0 %vm71_vm0, %v5093_v4 }
  0x15   :  { %527 = vmatprep.mubr.f32.mxu1 %v7840_v2  ;;  %604 = vmatprep.mubr.f32.mxu0 %v7840_v2 }
  0x17   :  { %63 = vperm.xlu0 %4949, %v5171_v20  }
  0x18   :  { %4753 = vmatmul.mubr.msk.f32.vlgmr.msra.gmra.mxu1 %vm71_vm0, %v5088_v3  ;;  %4755 = vmatmul.mubr.msk.f32.vlgmr.msra.gmra.mxu0 %vm71_vm0, %v5088_v3 }
  0x19   :  { %533 = vmatprep.mubr.f32.mxu1 %v7840_v2  ;;  %610 = vmatprep.mubr.f32.mxu0 %v7840_v2 }
  0x1a   :  { %648 = vmatpush1.msra.mxu1 %v55_v21 }
  0x1c   :  { %4754 = vmatmul.mubr.msk.f32.gmra.mxu1 %vm71_vm0, %v5093_v4  ;;  %4756 = vmatmul.mubr.msk.f32.gmra.mxu0 %vm71_vm0, %v5093_v4 }
  0x1d   :  { %681 = vmatprep.mubr.f32.mxu1 %v7840_v2  ;;  %1119 = vmatprep.mubr.f32.mxu0 %v7840_v2 }
  0x20   :  { %4757 = vmatmul.mubr.msk.f32.vlgmr.msra.gmra.mxu1 %vm71_vm0, %v5088_v3 }
  0x21   :  { %687 = vmatprep.mubr.f32.mxu1 %v7840_v2 }
  0x24   :  { %4758 = vmatmul.mubr.msk.f32.gmra.mxu1 %vm71_vm0, %v5093_v4 }
  0x25   :  { %1208 = vmatprep.mubr.f32.mxu1 %v7840_v2 }
  0x8e   :  { %v5197_v23 = vpop.permute.xlu0 %68 }
  0x92   :  { %v5199_v24 = vpop.permute.xlu0 %63 }
  0xc4   :  { %v144_v25 = vpop.f32.mrf.mxu0  ;;  %v150_v26 = vpop.f32.mrf.mxu1 }
  0xc5   :  { %v5202_v27 = vadd.f32 %v144_v25, %v5199_v24  ;;  %v5211_v32 = vadd.f32 %v150_v26, %v5197_v23 }
  0xc6   :  { %v146_v28 = vpop.f32.mrf.mxu0  ;;  %v152_v29 = vpop.f32.mrf.mxu1 }
  0xc7   :  { %v5205_v30 = vadd.f32 %v146_v28, %v5199_v24  ;;  %v5208_v31 = vadd.f32 %v152_v29, %v5197_v23  ;;  %v730_v35 = vmul.f32 %v5202_v27, %v5202_v27  ;;  %v746_v45 = vmul.f32 %v5211_v32, %v5211_v32 }
  0xc8   :  { %v221_v33 = vpop.f32.mrf.mxu1  ;;  %v298_v34 = vpop.f32.mrf.mxu0 }
  0xc9   :  { %v694_v36 = vadd.f32 %v5205_v30, %v5202_v27  ;;  %v731_v37 = vmul.f32 %v5205_v30, %v5205_v30  ;;  %v747_v38 = vmul.f32 %v5208_v31, %v5208_v31  ;;  %v5222_v39 = vadd.f32 %v221_v33, %v5199_v24 }
  0xca   :  { %v223_v40 = vpop.f32.mrf.mxu1  ;;  %v300_v41 = vpop.f32.mrf.mxu0  ;;  %v5225_v43 = vadd.f32 %v298_v34, %v5199_v24  ;;  %v711_v51 = vadd.f32 %v5208_v31, %v5211_v32 }
  0xcb   :  { %v762_v42 = vadd.f32 %v731_v37, %v730_v35  ;;  %v5228_v44 = vadd.f32 %v223_v40, %v5199_v24  ;;  %v695_v46 = vadd.f32 %v694_v36, %v5222_v39  ;;  %v732_v47 = vmul.f32 %v5222_v39, %v5222_v39 }
  0xcc   :  { %v5236_v48 = vadd.f32 %v300_v41, %v5199_v24  ;;  %v227_v49 = vpop.f32.mrf.mxu1  ;;  %v304_v50 = vpop.f32.mrf.mxu0  ;;  %v779_v54 = vadd.f32 %v747_v38, %v746_v45  ;;  %v734_v60 = vmul.f32 %v5225_v43, %v5225_v43 }
  0xcd   :  { %v733_v52 = vmul.f32 %v5228_v44, %v5228_v44  ;;  %v5243_v53 = vadd.f32 %v227_v49, %v5197_v23  ;;  %v763_v55 = vadd.f32 %v762_v42, %v732_v47  ;;  %v696_v56 = vadd.f32 %v695_v46, %v5228_v44 }
  0xce   :  { %v5247_v57 = vadd.f32 %v304_v50, %v5197_v23  ;;  %v229_v58 = vpop.f32.mrf.mxu1  ;;  %v306_v59 = vpop.f32.mrf.mxu0  ;;  %v735_v3 = vmul.f32 %v5236_v48, %v5236_v48 }
  0xcf   :  { %v712_v61 = vadd.f32 %v711_v51, %v5243_v53  ;;  %v748_v62 = vmul.f32 %v5243_v53, %v5243_v53  ;;  %v5255_v63 = vadd.f32 %v229_v58, %v5197_v23  ;;  %v764_v0 = vadd.f32 %v763_v55, %v733_v52 }
  0xd0   :  { %v697_v1 = vadd.f32 %v696_v56, %v5225_v43  ;;  %v5261_v4 = vadd.f32 %v306_v59, %v5197_v23  ;;  %v375_v5 = vpop.f32.mrf.mxu1  ;;  %v452_v6 = vpop.f32.mrf.mxu0  ;;  %v750_v13 = vmul.f32 %v5247_v57, %v5247_v57 }
  0xd1   :  { %v780_v7 = vadd.f32 %v779_v54, %v748_v62  ;;  %v713_v8 = vadd.f32 %v712_v61, %v5255_v63  ;;  %v749_v9 = vmul.f32 %v5255_v63, %v5255_v63  ;;  %v5267_v10 = vadd.f32 %v375_v5, %v5199_v24 }
  0xd2   :  { %v698_v11 = vadd.f32 %v697_v1, %v5236_v48  ;;  %v765_v12 = vadd.f32 %v764_v0, %v734_v60  ;;  %v5273_v14 = vadd.f32 %v452_v6, %v5199_v24  ;;  %v377_v15 = vpop.f32.mrf.mxu1  ;;  %v454_v16 = vpop.f32.mrf.mxu0  ;;  %v751_v26 = vmul.f32 %v5261_v4, %v5261_v4 }
  0xd3   :  { %v781_v17 = vadd.f32 %v780_v7, %v749_v9  ;;  %v714_v18 = vadd.f32 %v713_v8, %v5247_v57  ;;  %v736_v21 = vmul.f32 %v5267_v10, %v5267_v10  ;;  %v5279_v22 = vadd.f32 %v377_v15, %v5199_v24 }
  0xd4   :  { %v766_v25 = vadd.f32 %v765_v12, %v735_v3  ;;  %v699_v28 = vadd.f32 %v698_v11, %v5267_v10  ;;  %v5285_v29 = vadd.f32 %v454_v16, %v5199_v24  ;;  %v381_v33 = vpop.f32.mrf.mxu1  ;;  %v458_v34 = vpop.f32.mrf.mxu0  ;;  %v738_v41 = vmul.f32 %v5273_v14, %v5273_v14 }
  0xd5   :  { %v715_v35 = vadd.f32 %v714_v18, %v5261_v4  ;;  %v782_v36 = vadd.f32 %v781_v17, %v750_v13  ;;  %v737_v37 = vmul.f32 %v5279_v22, %v5279_v22  ;;  %v5291_v38 = vadd.f32 %v381_v33, %v5197_v23 }
  0xd6   :  { %v767_v40 = vadd.f32 %v766_v25, %v736_v21  ;;  %v700_v42 = vadd.f32 %v699_v28, %v5279_v22  ;;  %v5297_v45 = vadd.f32 %v458_v34, %v5197_v23  ;;  %v383_v46 = vpop.f32.mrf.mxu1  ;;  %v460_v47 = vpop.f32.mrf.mxu0  ;;  %v739_v56 = vmul.f32 %v5285_v29, %v5285_v29 }
  0xd7   :  { %v783_v49 = vadd.f32 %v782_v36, %v751_v26  ;;  %v716_v50 = vadd.f32 %v715_v35, %v5291_v38  ;;  %v752_v51 = vmul.f32 %v5291_v38, %v5291_v38  ;;  %v5303_v52 = vadd.f32 %v383_v46, %v5197_v23 }
  0xd8   :  { %v768_v54 = vadd.f32 %v767_v40, %v737_v37  ;;  %v701_v55 = vadd.f32 %v700_v42, %v5273_v14  ;;  %v5309_v58 = vadd.f32 %v460_v47, %v5197_v23  ;;  %v529_v59 = vpop.f32.mrf.mxu1  ;;  %v606_v60 = vpop.f32.mrf.mxu0  ;;  %v754_v6 = vmul.f32 %v5297_v45, %v5297_v45 }
  0xd9   :  { %v784_v61 = vadd.f32 %v783_v49, %v752_v51  ;;  %v717_v62 = vadd.f32 %v716_v50, %v5303_v52  ;;  %v753_v0 = vmul.f32 %v5303_v52, %v5303_v52  ;;  %v5315_v1 = vadd.f32 %v529_v59, %v5199_v24 }
  0xda   :  { %v702_v3 = vadd.f32 %v701_v55, %v5285_v29  ;;  %v769_v5 = vadd.f32 %v768_v54, %v738_v41  ;;  %v5321_v7 = vadd.f32 %v606_v60, %v5199_v24  ;;  %v531_v8 = vpop.f32.mrf.mxu1  ;;  %v608_v9 = vpop.f32.mrf.mxu0  ;;  %v755_v17 = vmul.f32 %v5309_v58, %v5309_v58 }
  0xdb   :  { %v785_v11 = vadd.f32 %v784_v61, %v753_v0  ;;  %v718_v12 = vadd.f32 %v717_v62, %v5297_v45  ;;  %v740_v13 = vmul.f32 %v5315_v1, %v5315_v1  ;;  %v5327_v15 = vadd.f32 %v531_v8, %v5199_v24 }
  0xdc   :  { %v770_v16 = vadd.f32 %v769_v5, %v739_v56  ;;  %v703_v18 = vadd.f32 %v702_v3, %v5315_v1  ;;  %v535_v21 = vpop.f32.mrf.mxu1  ;;  %v612_v25 = vpop.f32.mrf.mxu0  ;;  %v742_v36 = vmul.f32 %v5321_v7, %v5321_v7  ;;  %v5351_v54 = vadd.f32 %v608_v9, %v5199_v24 }
  0xdd   :  { %v719_v26 = vadd.f32 %v718_v12, %v5309_v58  ;;  %v786_v28 = vadd.f32 %v785_v11, %v754_v6  ;;  %v741_v33 = vmul.f32 %v5327_v15, %v5327_v15  ;;  %v5336_v34 = vadd.f32 %v535_v21, %v5197_v23 }
  0xde   :  { %v771_v35 = vadd.f32 %v770_v16, %v740_v13  ;;  %v704_v37 = vadd.f32 %v703_v18, %v5327_v15  ;;  %v5342_v40 = vadd.f32 %v612_v25, %v5197_v23  ;;  %v537_v41 = vpop.f32.mrf.mxu1  ;;  %v614_v42 = vpop.f32.mrf.mxu0  ;;  %v743_v13 = vmul.f32 %v5351_v54, %v5351_v54 }
  0xdf   :  { %v787_v46 = vadd.f32 %v786_v28, %v755_v17  ;;  %v720_v47 = vadd.f32 %v719_v26, %v5336_v34  ;;  %v756_v49 = vmul.f32 %v5336_v34, %v5336_v34  ;;  %v5348_v50 = vadd.f32 %v537_v41, %v5197_v23 }
  0xe0   :  { %v772_v51 = vadd.f32 %v771_v35, %v741_v33  ;;  %v5354_v55 = vadd.f32 %v614_v42, %v5197_v23  ;;  %v683_v56 = vpop.f32.mrf.mxu1  ;;  %v705_v59 = vadd.f32 %v704_v37, %v5321_v7  ;;  %v758_v8 = vmul.f32 %v5342_v40, %v5342_v40 }
  0xe1   :  { %v788_v60 = vadd.f32 %v787_v46, %v756_v49  ;;  %v721_v61 = vadd.f32 %v720_v47, %v5348_v50  ;;  %v757_v62 = vmul.f32 %v5348_v50, %v5348_v50  ;;  %v5361_v0 = vadd.f32 %v683_v56, %v5199_v24 }
  0xe2   :  { %v685_v3 = vpop.f32.mrf.mxu1  ;;  %v706_v5 = vadd.f32 %v705_v59, %v5351_v54  ;;  %v773_v6 = vadd.f32 %v772_v51, %v742_v36  ;;  %v759_v21 = vmul.f32 %v5354_v55, %v5354_v55 }
  0xe3   :  { %v789_v9 = vadd.f32 %v788_v60, %v757_v62  ;;  %v722_v11 = vadd.f32 %v721_v61, %v5342_v40  ;;  %v5368_v12 = vadd.f32 %v685_v3, %v5199_v24  ;;  %v744_v28 = vmul.f32 %v5361_v0, %v5361_v0  ;;  %v1016_v62 = vld [vmem:[%s7829_s6 + $0x10] sm:$0xff]  ;;  %v5403_v3 = vld [vmem:[%s7829_s6 + $0x18] sm:$0xff] }
  0xe4   :  { %v689_v16 = vpop.f32.mrf.mxu1  ;;  %v707_v17 = vadd.f32 %v706_v5, %v5361_v0  ;;  %v774_v35 = vadd.f32 %v773_v6, %v743_v13  ;;  %v5001_v61 = vmov 3  }
  0xe5   :  { %v723_v18 = vadd.f32 %v722_v11, %v5354_v55  ;;  %v5377_v25 = vadd.f32 %v689_v16, %v5197_v23  ;;  %v790_v26 = vadd.f32 %v789_v9, %v758_v8  ;;  %v745_v51 = vmul.f32 %v5368_v12, %v5368_v12  ;;  %4952 = vset.pattern.permute.xlu0 %v5001_v61 }
  0xe6   :  { %v691_v24 = vpop.f32.mrf.mxu1  ;;  %v708_v33 = vadd.f32 %v707_v17, %v5368_v12  ;;  %v775_v56 = vadd.f32 %v774_v35, %v744_v28 }
  0xe7   :  { %v760_v36 = vmul.f32 %v5377_v25, %v5377_v25  ;;  %v5385_v37 = vadd.f32 %v691_v24, %v5197_v23  ;;  %v724_v41 = vadd.f32 %v723_v18, %v5377_v25  ;;  %v791_v42 = vadd.f32 %v790_v26, %v759_v21 }
  0xe8   :  { %709 = vadd.xlane.f32.xlu1 %v708_v33  ;;  %v776_v60 = vadd.f32 %v775_v56, %v745_v51  ;;  %v5000_v23 = vmov 2  }
  0xe9   :  { %v725_v46 = vadd.f32 %v724_v41, %v5385_v37  ;;  %v761_v47 = vmul.f32 %v5385_v37, %v5385_v37  ;;  %v792_v49 = vadd.f32 %v791_v42, %v760_v36 }
  0xeb   :  { %v793_v59 = vadd.f32 %v792_v49, %v761_v47 }
  0xec   :  { %726 = vadd.xlane.f32.xlu1 %v725_v46 }
  0xed   :  { %794 = vadd.xlane.f32.xlu0 %v793_v59 }
  0xf0   :  { %777 = vadd.xlane.f32.xlu1 %v776_v60 }
 0x101   :  { %875 = vperm.xlu1 %4950, %v5159_v19  }
 0x103   :  { %1039 = vperm.xlu0 %4952, %v5403_v3  }
 0x105   :  { %871 = vperm.xlu1 %4950, %v5171_v20  }
 0x109   :  { %4951 = vset.pattern.permute.xlu1 %v5000_v23 }
 0x10a   :  { %915 = vperm.xlu1 %4951, %v5159_v19  }
 0x10e   :  { %911 = vperm.xlu1 %4951, %v5171_v20  }
 0x112   :  { %4953 = vset.pattern.permute.xlu1 %v5001_v61 }
 0x113   :  { %1034 = vperm.xlu1 %4953, %v1016_v62  }
 0x117   :  { %1029 = vperm.xlu1 %4953, %v5159_v19  }
 0x11b   :  { %1024 = vperm.xlu1 %4953, %v5171_v20  }
 0x171   :  { %v710_v5 = vpop.xlane.xlu1 %709 }
 0x172   :  { %v5408_v8 = vmul.f32 0.00048828125, %v710_v5 }
 0x174   :  { %v798_v21 = vmul.f32 %v5408_v8, %v5408_v8  ;;  %v803_v33 = vsub.f32 %v5205_v30, %v5408_v8  ;;  %v805_v35 = vsub.f32 %v5228_v44, %v5408_v8  ;;  %v802_v41 = vsub.f32 %v5202_v27, %v5408_v8 }
 0x175   :  { %v727_v6 = vpop.xlane.xlu1 %726  ;;  %v804_v42 = vsub.f32 %v5222_v39, %v5408_v8  ;;  %v807_v46 = vsub.f32 %v5236_v48, %v5408_v8  ;;  %v809_v47 = vsub.f32 %v5279_v22, %v5408_v8  ;;  %v806_v30 = vsub.f32 %v5225_v43, %v5408_v8 }
 0x176   :  { %v5410_v9 = vmul.f32 0.00048828125, %v727_v6  ;;  %v795_v11 = vpop.xlane.xlu0 %794  ;;  %v808_v44 = vsub.f32 %v5267_v10, %v5408_v8 }
 0x177   :  { %v797_v13 = vmul.f32 0.00048828125, %v795_v11 }
 0x178   :  { %v799_v16 = vmul.f32 %v5410_v9, %v5410_v9  ;;  %v819_v39 = vsub.f32 %v5208_v31, %v5410_v9  ;;  %v821_v60 = vsub.f32 %v5255_v63, %v5410_v9  ;;  %v818_v23 = vsub.f32 %v5211_v32, %v5410_v9 }
 0x179   :  { %v778_v17 = vpop.xlane.xlu1 %777  ;;  %v820_v61 = vsub.f32 %v5243_v53, %v5410_v9  ;;  %v823_v31 = vsub.f32 %v5261_v4, %v5410_v9  ;;  %v825_v62 = vsub.f32 %v5303_v52, %v5410_v9  ;;  %v822_v5 = vsub.f32 %v5247_v57, %v5410_v9 }
 0x17a   :  { %v801_v18 = vsub.f32 %v797_v13, %v799_v16  ;;  %v796_v26 = vmul.f32 0.00048828125, %v778_v17  ;;  %v824_v6 = vsub.f32 %v5291_v38, %v5410_v9  ;;  %v827_v63 = vsub.f32 %v5309_v58, %v5410_v9 }
 0x17c   :  { %v835_v19 = vadd.f32 1e-05, %v801_v18  ;;  %v800_v28 = vsub.f32 %v796_v26, %v798_v21 }
 0x17d   :  { %v5416_v24 = vpop.permute.xlu1 %875 }
 0x17e   :  { %4969 = vrsqrt.f32 %v835_v19  ;;  %v834_v20 = vadd.f32 1e-05, %v800_v28 }
 0x180   :  { %4971 = vrsqrt.f32 %v834_v20 }
 0x181   :  { %v5422_v36 = vpop.permute.xlu1 %871 }
 0x185   :  { %v5474_v52 = vpop.permute.xlu1 %915 }
 0x189   :  { %v5502_v57 = vpop.permute.xlu1 %911 }
 0x18b   :  { %v5464_v11 = vpop.eup %4969 }
 0x18c   :  { %v855_v38 = vmul.f32 %v5464_v11, %v819_v39  ;;  %v857_v13 = vmul.f32 %v5464_v11, %v821_v60  ;;  %v854_v16 = vmul.f32 %v5464_v11, %v818_v23  ;;  %v856_v17 = vmul.f32 %v5464_v11, %v820_v61 }
 0x18d   :  { %v5480_v18 = vpop.eup %4971  ;;  %v859_v21 = vmul.f32 %v5464_v11, %v823_v31  ;;  %v861_v26 = vmul.f32 %v5464_v11, %v825_v62  ;;  %v858_v19 = vmul.f32 %v5464_v11, %v822_v5  ;;  %v860_v28 = vmul.f32 %v5464_v11, %v824_v6 }
 0x18e   :  { %v895_v20 = vmul.f32 %v5416_v24, %v855_v38  ;;  %v897_v39 = vmul.f32 %v5416_v24, %v857_v13  ;;  %v894_v60 = vmul.f32 %v5416_v24, %v854_v16  ;;  %v896_v23 = vmul.f32 %v5416_v24, %v856_v17 }
 0x18f   :  { %v839_v61 = vmul.f32 %v5480_v18, %v803_v33  ;;  %v841_v59 = vmul.f32 %v5480_v18, %v805_v35  ;;  %v838_v31 = vmul.f32 %v5480_v18, %v802_v41  ;;  %v840_v62 = vmul.f32 %v5480_v18, %v804_v42 }
 0x190   :  { %v935_v5 = vadd.f32 %v5474_v52, %v895_v20  ;;  %v937_v6 = vadd.f32 %v5474_v52, %v897_v39  ;;  %v934_v38 = vadd.f32 %v5474_v52, %v894_v60  ;;  %v936_v13 = vadd.f32 %v5474_v52, %v896_v23 }
 0x191   :  { %v879_v16 = vmul.f32 %v5422_v36, %v839_v61  ;;  %v881_v17 = vmul.f32 %v5422_v36, %v841_v59  ;;  %v878_v33 = vmul.f32 %v5422_v36, %v838_v31  ;;  %v880_v35 = vmul.f32 %v5422_v36, %v840_v62 }
 0x192   :  { %v967_v41 = vmul.f32 0.01, %v935_v5  ;;  %v969_v42 = vmul.f32 0.01, %v937_v6  ;;  %v966_v56 = vmul.f32 0.01, %v934_v38  ;;  %v899_v20 = vmul.f32 %v5416_v24, %v859_v21 }
 0x193   :  { %v968_v39 = vmul.f32 0.01, %v936_v13  ;;  %v919_v60 = vadd.f32 %v5502_v57, %v879_v16  ;;  %v921_v23 = vadd.f32 %v5502_v57, %v881_v17  ;;  %v918_v61 = vadd.f32 %v5502_v57, %v878_v33 }
 0x194   :  { %v999_v51 = vmax.f32 %v935_v5, %v967_v41  ;;  %v1001_v59 = vmax.f32 %v937_v6, %v969_v42  ;;  %v998_v27 = vmax.f32 %v934_v38, %v966_v56  ;;  %v920_v31 = vadd.f32 %v5502_v57, %v880_v35 }
 0x195   :  { %v1000_v62 = vmax.f32 %v936_v13, %v968_v39  ;;  %v951_v49 = vmul.f32 0.01, %v919_v60  ;;  %v953_v4 = vmul.f32 0.01, %v921_v23  ;;  %v950_v53 = vmul.f32 0.01, %v918_v61 }
 0x196   :  { %1083 = vmatprep.subr.mxu0 %v999_v51  ;;  %1172 = vmatprep.subr.mxu1 %v1001_v59  ;;  %v952_v32 = vmul.f32 0.01, %v920_v31  ;;  %v939_v21 = vadd.f32 %v5474_v52, %v899_v20  ;;  %v901_v16 = vmul.f32 %v5416_v24, %v861_v26  ;;  %v898_v17 = vmul.f32 %v5416_v24, %v858_v19  ;;  %v5515_v13 = vld [vmem:[%s7830_s3] sm:$0xff] }
 0x197   :  { %1084 = vmatpush1.msra.mxu0 %v998_v27  ;;  %1173 = vmatpush1.msra.mxu1 %v1000_v62  ;;  %v983_v5 = vmax.f32 %v919_v60, %v951_v49  ;;  %v985_v6 = vmax.f32 %v921_v23, %v953_v4  ;;  %v982_v56 = vmax.f32 %v918_v61, %v950_v53 }
 0x198   :  { %v984_v38 = vmax.f32 %v920_v31, %v952_v32  ;;  %v971_v51 = vmul.f32 0.01, %v939_v21  ;;  %v941_v33 = vadd.f32 %v5474_v52, %v901_v16  ;;  %v938_v35 = vadd.f32 %v5474_v52, %v898_v17 }
 0x199   :  { %1085 = vmatprep.subr.mxu0 %v983_v5  ;;  %1174 = vmatprep.subr.mxu1 %v985_v6  ;;  %v900_v27 = vmul.f32 %v5416_v24, %v860_v28  ;;  %v843_v49 = vmul.f32 %v5480_v18, %v807_v46  ;;  %v845_v32 = vmul.f32 %v5480_v18, %v809_v47 }
 0x19a   :  { %1086 = vmatpush1.msra.mxu0 %v982_v56  ;;  %1175 = vmatpush1.msra.mxu1 %v984_v38  ;;  %v1003_v53 = vmax.f32 %v939_v21, %v971_v51  ;;  %v973_v4 = vmul.f32 0.01, %v941_v33  ;;  %v970_v26 = vmul.f32 0.01, %v938_v35  ;;  %v842_v19 = vmul.f32 %v5480_v18, %v806_v30  ;;  %v5544_v30 = vld [vmem:[%s7830_s3 + $0x8] sm:$0xff]  ;;  %v5579_v56 = vld [vmem:[%s7830_s3 + $0x10] sm:$0xff] }
 0x19b   :  { %4759 = vmatmul.mubr.msk.f32.vlgmr.msra.gmra.mxu0 %vm1042_vm1, %v5515_v13  ;;  %4763 = vmatmul.mubr.msk.f32.vlgmr.msra.gmra.mxu1 %vm1042_vm1, %v5515_v13  ;;  %v940_v48 = vadd.f32 %v5474_v52, %v900_v27  ;;  %v883_v22 = vmul.f32 %v5422_v36, %v843_v49  ;;  %v885_v46 = vmul.f32 %v5422_v36, %v845_v32 }
 0x19c   :  { %1261 = vmatprep.subr.mxu0 %v1003_v53  ;;  %v1005_v47 = vmax.f32 %v941_v33, %v973_v4  ;;  %v1002_v28 = vmax.f32 %v938_v35, %v970_v26  ;;  %1125 = vmatprep.mubr.f32.mxu0 %v7840_v2  ;;  %v882_v43 = vmul.f32 %v5422_v36, %v842_v19 }
 0x19d   :  { %v972_v41 = vmul.f32 0.01, %v940_v48  ;;  %v923_v42 = vadd.f32 %v5502_v57, %v883_v22  ;;  %v925_v20 = vadd.f32 %v5502_v57, %v885_v46  ;;  %1214 = vmatprep.mubr.f32.mxu1 %v7840_v2  ;;  %v844_v39 = vmul.f32 %v5480_v18, %v808_v44 }
 0x19e   :  { %1350 = vmatprep.subr.mxu1 %v1005_v47  ;;  %1262 = vmatpush1.msra.mxu0 %v1002_v28  ;;  %v922_v60 = vadd.f32 %v5502_v57, %v882_v43  ;;  %v863_v23 = vmul.f32 %v5464_v11, %v827_v63  ;;  %v7906_v61 = vsub.f32 %v5348_v50, %v5410_v9 }
 0x19f   :  { %v1004_v31 = vmax.f32 %v940_v48, %v972_v41  ;;  %v955_v62 = vmul.f32 0.01, %v923_v42  ;;  %v957_v21 = vmul.f32 0.01, %v925_v20  ;;  %v884_v10 = vmul.f32 %v5422_v36, %v844_v39  ;;  %4760 = vmatmul.mubr.msk.f32.gmra.mxu0 %vm1042_vm1, %v5544_v30  ;;  %4764 = vmatmul.mubr.msk.f32.gmra.mxu1 %vm1042_vm1, %v5544_v30 }
 0x1a0   :  { %v865_v59 = vmul.f32 %v5464_v11, %v7906_v61  ;;  %v954_v44 = vmul.f32 0.01, %v922_v60  ;;  %v903_v58 = vmul.f32 %v5416_v24, %v863_v23  ;;  %1131 = vmatprep.mubr.f32.mxu0 %v7840_v2  ;;  %1220 = vmatprep.mubr.f32.mxu1 %v7840_v2  ;;  %v7907_v50 = vsub.f32 %v5297_v45, %v5410_v9 }
 0x1a1   :  { %1351 = vmatpush1.msra.mxu1 %v1004_v31  ;;  %v987_v17 = vmax.f32 %v923_v42, %v955_v62  ;;  %v989_v5 = vmax.f32 %v925_v20, %v957_v21  ;;  %v924_v6 = vadd.f32 %v5502_v57, %v884_v10  ;;  %v7908_v38 = vsub.f32 %v5336_v34, %v5410_v9 }
 0x1a2   :  { %v905_v63 = vmul.f32 %v5416_v24, %v865_v59  ;;  %v862_v16 = vmul.f32 %v5464_v11, %v7907_v50  ;;  %v986_v33 = vmax.f32 %v922_v60, %v954_v44  ;;  %v943_v45 = vadd.f32 %v5474_v52, %v903_v58 }
 0x1a3   :  { %v864_v51 = vmul.f32 %v5464_v11, %v7908_v38  ;;  %1263 = vmatprep.subr.mxu0 %v987_v17  ;;  %1352 = vmatprep.subr.mxu1 %v989_v5  ;;  %v956_v49 = vmul.f32 0.01, %v924_v6  ;;  %v7909_v53 = vsub.f32 %v5285_v29, %v5408_v8  ;;  %v7910_v34 = vsub.f32 %v5327_v15, %v5408_v8 }
 0x1a4   :  { %v945_v35 = vadd.f32 %v5474_v52, %v905_v63  ;;  %v902_v27 = vmul.f32 %v5416_v24, %v862_v16  ;;  %1264 = vmatpush1.msra.mxu0 %v986_v33  ;;  %v975_v19 = vmul.f32 0.01, %v943_v45  ;;  %4765 = vmatmul.mubr.msk.f32.gmra.mxu1 %vm1042_vm1, %v5579_v56  ;;  %v7911_v46 = vsub.f32 %v5273_v14, %v5408_v8  ;;  %v5613_v14 = vld [vmem:[%s7830_s3 + $0x18] sm:$0xff] }
 0x1a5   :  { %v904_v32 = vmul.f32 %v5416_v24, %v864_v51  ;;  %v847_v4 = vmul.f32 %v5480_v18, %v7909_v53  ;;  %v849_v26 = vmul.f32 %v5480_v18, %v7910_v34  ;;  %v988_v47 = vmax.f32 %v924_v6, %v956_v49  ;;  %4761 = vmatmul.mubr.msk.f32.gmra.mxu0 %vm1042_vm1, %v5579_v56 }
 0x1a6   :  { %v977_v48 = vmul.f32 0.01, %v945_v35  ;;  %v942_v22 = vadd.f32 %v5474_v52, %v902_v27  ;;  %v846_v29 = vmul.f32 %v5480_v18, %v7911_v46  ;;  %1226 = vmatprep.mubr.f32.mxu1 %v7840_v2  ;;  %v1007_v43 = vmax.f32 %v943_v45, %v975_v19  ;;  %1137 = vmatprep.mubr.f32.mxu0 %v7840_v2 }
 0x1a7   :  { %v944_v15 = vadd.f32 %v5474_v52, %v904_v32  ;;  %v887_v28 = vmul.f32 %v5422_v36, %v847_v4  ;;  %v889_v42 = vmul.f32 %v5422_v36, %v849_v26  ;;  %v833_v20 = vsub.f32 %v5385_v37, %v5410_v9  ;;  %1353 = vmatpush1.msra.mxu1 %v988_v47 }
 0x1a8   :  { %v1009_v41 = vmax.f32 %v945_v35, %v977_v48  ;;  %v974_v39 = vmul.f32 0.01, %v942_v22  ;;  %v886_v23 = vmul.f32 %v5422_v36, %v846_v29  ;;  %v7912_v61 = vsub.f32 %v5315_v1, %v5408_v8  ;;  %1439 = vmatprep.subr.mxu0 %v1007_v43  ;;  %4766 = vmatmul.mubr.msk.f32.gmra.mxu1 %vm1042_vm1, %v5613_v14 }
 0x1a9   :  { %v927_v60 = vadd.f32 %v5502_v57, %v887_v28  ;;  %v976_v31 = vmul.f32 0.01, %v944_v15  ;;  %v929_v62 = vadd.f32 %v5502_v57, %v889_v42  ;;  %v7913_v21 = vsub.f32 %v5354_v55, %v5410_v9  ;;  %4762 = vmatmul.mubr.msk.f32.gmra.mxu0 %vm1042_vm1, %v5613_v14  ;;  %1386 = vmatprep.mubr.f32.mxu1 %v7840_v2 }
 0x1aa   :  { %v848_v59 = vmul.f32 %v5480_v18, %v7912_v61  ;;  %1528 = vmatprep.subr.mxu1 %v1009_v41  ;;  %v830_v10 = vsub.f32 %v5342_v40, %v5410_v9  ;;  %v926_v44 = vadd.f32 %v5502_v57, %v886_v23  ;;  %v832_v63 = vsub.f32 %v5377_v25, %v5410_v9 }
 0x1ab   :  { %v867_v37 = vmul.f32 %v5464_v11, %v7913_v21  ;;  %v959_v1 = vmul.f32 0.01, %v927_v60  ;;  %1297 = vmatprep.mubr.f32.mxu0 %v7840_v2  ;;  %v961_v55 = vmul.f32 0.01, %v929_v62  ;;  %v869_v50 = vmul.f32 %v5464_v11, %v833_v20 }
 0x1ac   :  { %v888_v58 = vmul.f32 %v5422_v36, %v848_v59  ;;  %v817_v16 = vsub.f32 %v5368_v12, %v5408_v8  ;;  %v1006_v17 = vmax.f32 %v942_v22, %v974_v39  ;;  %v958_v5 = vmul.f32 0.01, %v926_v44  ;;  %4771 = vmatmul.mubr.msk.f32.vlgmr.msra.gmra.mxu1 %vm1042_vm1, %v5515_v13 }
 0x1ad   :  { %v907_v40 = vmul.f32 %v5416_v24, %v867_v37  ;;  %v814_v38 = vsub.f32 %v5321_v7, %v5408_v8  ;;  %v1008_v25 = vmax.f32 %v944_v15, %v976_v31  ;;  %v909_v51 = vmul.f32 %v5416_v24, %v869_v50  ;;  %4767 = vmatmul.mubr.msk.f32.vlgmr.msra.gmra.mxu0 %vm1042_vm1, %v5515_v13 }
 0x1ae   :  { %v928_v6 = vadd.f32 %v5502_v57, %v888_v58  ;;  %v866_v33 = vmul.f32 %v5464_v11, %v830_v10  ;;  %v991_v12 = vmax.f32 %v927_v60, %v959_v1  ;;  %v993_v45 = vmax.f32 %v929_v62, %v961_v55  ;;  %1440 = vmatpush1.msra.mxu0 %v1006_v17 }
 0x1af   :  { %v947_v9 = vadd.f32 %v5474_v52, %v907_v40  ;;  %v868_v27 = vmul.f32 %v5464_v11, %v832_v63  ;;  %1529 = vmatpush1.msra.mxu1 %v1008_v25  ;;  %v990_v7 = vmax.f32 %v926_v44, %v958_v5  ;;  %v949_v32 = vadd.f32 %v5474_v52, %v909_v51 }
 0x1b0   :  { %v960_v35 = vmul.f32 0.01, %v928_v6  ;;  %v7914_v53 = vsub.f32 %v5351_v54, %v5408_v8  ;;  %1441 = vmatprep.subr.mxu0 %v991_v12  ;;  %1530 = vmatprep.subr.mxu1 %v993_v45  ;;  %v853_v26 = vmul.f32 %v5480_v18, %v817_v16  ;;  %v816_v19 = vsub.f32 %v5361_v0, %v5408_v8 }
 0x1b1   :  { %v979_v49 = vmul.f32 0.01, %v947_v9  ;;  %1442 = vmatpush1.msra.mxu0 %v990_v7  ;;  %1303 = vmatprep.mubr.f32.mxu0 %v7840_v2  ;;  %v981_v48 = vmul.f32 0.01, %v949_v32  ;;  %v906_v54 = vmul.f32 %v5416_v24, %v866_v33  ;;  %v850_v22 = vmul.f32 %v5480_v18, %v814_v38 }
 0x1b2   :  { %v851_v4 = vmul.f32 %v5480_v18, %v7914_v53  ;;  %v992_v34 = vmax.f32 %v928_v6, %v960_v35  ;;  %1392 = vmatprep.mubr.f32.mxu1 %v7840_v2  ;;  %v852_v46 = vmul.f32 %v5480_v18, %v816_v19  ;;  %4768 = vmatmul.mubr.msk.f32.gmra.mxu0 %vm1042_vm1, %v5544_v30 }
 0x1b3   :  { %v1011_v11 = vmax.f32 %v947_v9, %v979_v49  ;;  %v1013_v29 = vmax.f32 %v949_v32, %v981_v48  ;;  %v908_v0 = vmul.f32 %v5416_v24, %v868_v27  ;;  %4772 = vmatmul.mubr.msk.f32.gmra.mxu1 %vm1042_vm1, %v5544_v30  ;;  %1309 = vmatprep.mubr.f32.mxu0 %v7840_v2 }
 0x1b4   :  { %1531 = vmatpush1.msra.mxu1 %v992_v34  ;;  %v891_v8 = vmul.f32 %v5422_v36, %v851_v4  ;;  %v893_v47 = vmul.f32 %v5422_v36, %v853_v26  ;;  %v890_v15 = vmul.f32 %v5422_v36, %v850_v22  ;;  %1398 = vmatprep.mubr.f32.mxu1 %v7840_v2 }
 0x1b5   :  { %1617 = vmatprep.subr.mxu0 %v1011_v11  ;;  %1706 = vmatprep.subr.mxu1 %v1013_v29  ;;  %v892_v18 = vmul.f32 %v5422_v36, %v852_v46  ;;  %v946_v28 = vadd.f32 %v5474_v52, %v906_v54  ;;  %v948_v24 = vadd.f32 %v5474_v52, %v908_v0 }
 0x1b6   :  { %4769 = vmatmul.mubr.msk.f32.gmra.mxu0 %vm1042_vm1, %v5579_v56  ;;  %v931_v43 = vadd.f32 %v5502_v57, %v891_v8  ;;  %v933_v41 = vadd.f32 %v5502_v57, %v893_v47  ;;  %v930_v42 = vadd.f32 %v5502_v57, %v890_v15 }
 0x1b7   :  { %4773 = vmatmul.mubr.msk.f32.gmra.mxu1 %vm1042_vm1, %v5579_v56  ;;  %1315 = vmatprep.mubr.f32.mxu0 %v7840_v2  ;;  %v932_v36 = vadd.f32 %v5502_v57, %v892_v18  ;;  %v978_v20 = vmul.f32 0.01, %v946_v28  ;;  %v980_v52 = vmul.f32 0.01, %v948_v24 }
 0x1b8   :  { %1404 = vmatprep.mubr.f32.mxu1 %v7840_v2  ;;  %v963_v39 = vmul.f32 0.01, %v931_v43  ;;  %v965_v60 = vmul.f32 0.01, %v933_v41  ;;  %v962_v23 = vmul.f32 0.01, %v930_v42 }
 0x1b9   :  { %v964_v61 = vmul.f32 0.01, %v932_v36  ;;  %v1010_v59 = vmax.f32 %v946_v28, %v978_v20  ;;  %v1012_v57 = vmax.f32 %v948_v24, %v980_v52 }
 0x1ba   :  { %4770 = vmatmul.mubr.msk.f32.gmra.mxu0 %vm1042_vm1, %v5613_v14  ;;  %v995_v31 = vmax.f32 %v931_v43, %v963_v39  ;;  %v997_v62 = vmax.f32 %v933_v41, %v965_v60  ;;  %v994_v21 = vmax.f32 %v930_v42, %v962_v23 }
 0x1bb   :  { %4774 = vmatmul.mubr.msk.f32.gmra.mxu1 %vm1042_vm1, %v5613_v14  ;;  %1475 = vmatprep.mubr.f32.mxu0 %v7840_v2  ;;  %v996_v37 = vmax.f32 %v932_v36, %v964_v61 }
 0x1bc   :  { %1564 = vmatprep.mubr.f32.mxu1 %v7840_v2 }
 0x1be   :  { %4775 = vmatmul.mubr.msk.f32.vlgmr.msra.gmra.mxu0 %vm1042_vm1, %v5515_v13 }
 0x1bf   :  { %4779 = vmatmul.mubr.msk.f32.vlgmr.msra.gmra.mxu1 %vm1042_vm1, %v5515_v13  ;;  %1618 = vmatpush1.msra.mxu0 %v1010_v59 }
 0x1c0   :  { %1707 = vmatpush1.msra.mxu1 %v1012_v57  ;;  %1619 = vmatprep.subr.mxu0 %v995_v31 }
 0x1c1   :  { %1708 = vmatprep.subr.mxu1 %v997_v62  ;;  %1620 = vmatpush1.msra.mxu0 %v994_v21 }
 0x1c2   :  { %1709 = vmatpush1.msra.mxu1 %v996_v37  ;;  %1481 = vmatprep.mubr.f32.mxu0 %v7840_v2 }
 0x1c3   :  { %1570 = vmatprep.mubr.f32.mxu1 %v7840_v2  ;;  %4776 = vmatmul.mubr.msk.f32.gmra.mxu0 %vm1042_vm1, %v5544_v30 }
 0x1c4   :  { %4780 = vmatmul.mubr.msk.f32.gmra.mxu1 %vm1042_vm1, %v5544_v30  ;;  %1487 = vmatprep.mubr.f32.mxu0 %v7840_v2 }
 0x1c5   :  { %1576 = vmatprep.mubr.f32.mxu1 %v7840_v2 }
 0x1c7   :  { %4777 = vmatmul.mubr.msk.f32.gmra.mxu0 %vm1042_vm1, %v5579_v56 }
 0x1c8   :  { %4781 = vmatmul.mubr.msk.f32.gmra.mxu1 %vm1042_vm1, %v5579_v56  ;;  %1493 = vmatprep.mubr.f32.mxu0 %v7840_v2 }
 0x1c9   :  { %1582 = vmatprep.mubr.f32.mxu1 %v7840_v2 }
 0x1cb   :  { %4778 = vmatmul.mubr.msk.f32.gmra.mxu0 %vm1042_vm1, %v5613_v14 }
 0x1cc   :  { %4782 = vmatmul.mubr.msk.f32.gmra.mxu1 %vm1042_vm1, %v5613_v14  ;;  %1653 = vmatprep.mubr.f32.mxu0 %v7840_v2 }
 0x1cd   :  { %1742 = vmatprep.mubr.f32.mxu1 %v7840_v2 }
 0x1cf   :  { %4783 = vmatmul.mubr.msk.f32.vlgmr.msra.gmra.mxu0 %vm1042_vm1, %v5515_v13 }
 0x1d0   :  { %4787 = vmatmul.mubr.msk.f32.vlgmr.msra.gmra.mxu1 %vm1042_vm1, %v5515_v13  ;;  %1659 = vmatprep.mubr.f32.mxu0 %v7840_v2  ;;  %v7844_v13 = vmov 4  }
 0x1d1   :  { %1748 = vmatprep.mubr.f32.mxu1 %v7840_v2  ;;  %4954 = vset.pattern.permute.xlu1 %v7844_v13 }
 0x1d2   :  { %4955 = vset.pattern.permute.xlu0 %v7844_v13  ;;  %2132 = vperm.xlu1 %4954, %v5403_v3  }
 0x1d3   :  { %4784 = vmatmul.mubr.msk.f32.gmra.mxu0 %vm1042_vm1, %v5544_v30 }
 0x1d4   :  { %4788 = vmatmul.mubr.msk.f32.gmra.mxu1 %vm1042_vm1, %v5544_v30  ;;  %1665 = vmatprep.mubr.f32.mxu0 %v7840_v2  ;;  %v7842_v30 = vmov 5  }
 0x1d5   :  { %1754 = vmatprep.mubr.f32.mxu1 %v7840_v2 }
 0x1d6   :  { %4956 = vset.pattern.permute.xlu1 %v7842_v30 }
 0x1d7   :  { %4785 = vmatmul.mubr.msk.f32.gmra.mxu0 %vm1042_vm1, %v5579_v56 }
 0x1d8   :  { %4789 = vmatmul.mubr.msk.f32.gmra.mxu1 %vm1042_vm1, %v5579_v56  ;;  %1671 = vmatprep.mubr.f32.mxu0 %v7840_v2  ;;  %v5750_v56 = vpop.permute.xlu1 %1034 }
 0x1d9   :  { %1760 = vmatprep.mubr.f32.mxu1 %v7840_v2 }
 0x1db   :  { %4786 = vmatmul.mubr.msk.f32.gmra.mxu0 %vm1042_vm1, %v5613_v14 }
 0x1dc   :  { %4790 = vmatmul.mubr.msk.f32.gmra.mxu1 %vm1042_vm1, %v5613_v14  ;;  %2488 = vmatprep.mubr.f32.mxu0 %v7840_v2  ;;  %v5752_v58 = vpop.permute.xlu1 %1029 }
 0x1dd   :  { %2565 = vmatprep.mubr.f32.mxu1 %v7840_v2 }
 0x1e0   :  { %v5754_v16 = vpop.permute.xlu1 %1024 }
 0x25b   :  { %v1121_v10 = vpop.f32.mrf.mxu0  ;;  %v1210_v1 = vpop.f32.mrf.mxu1 }
 0x25c   :  { %v5760_v38 = vadd.f32 %v1121_v10, %v5754_v16  ;;  %v5765_v51 = vadd.f32 %v1210_v1, %v5754_v16 }
 0x25d   :  { %v1123_v44 = vpop.f32.mrf.mxu0  ;;  %v1212_v14 = vpop.f32.mrf.mxu1 }
 0x25e   :  { %v5757_v3 = vadd.f32 %v1123_v44, %v5754_v16  ;;  %v1839_v27 = vmul.f32 %v5760_v38, %v5760_v38  ;;  %v1841_v4 = vmul.f32 %v5765_v51, %v5765_v51  ;;  %v5788_v19 = vadd.f32 %v1212_v14, %v5754_v16 }
 0x25f   :  { %v1127_v63 = vpop.f32.mrf.mxu0  ;;  %v1216_v55 = vpop.f32.mrf.mxu1 }
 0x260   :  { %v1840_v9 = vmul.f32 %v5757_v3, %v5757_v3  ;;  %v1767_v35 = vadd.f32 %v5757_v3, %v5760_v38  ;;  %v5783_v32 = vadd.f32 %v1127_v63, %v5752_v58  ;;  %v5791_v11 = vadd.f32 %v1216_v55, %v5752_v58 }
 0x261   :  { %v1129_v40 = vpop.f32.mrf.mxu0  ;;  %v1218_v50 = vpop.f32.mrf.mxu1  ;;  %v1842_v18 = vmul.f32 %v5788_v19, %v5788_v19 }
 0x262   :  { %v5772_v45 = vadd.f32 %v1129_v40, %v5752_v58  ;;  %7916 = vst [vmem:[#allocation4_spill] sm:$0xff] %v5783_v32  ;;  %v1903_v53 = vadd.f32 %v1840_v9, %v1839_v27  ;;  %7917 = vst [vmem:[#allocation5_spill] sm:$0xff] %v5791_v11  ;;  %v1768_v54 = vadd.f32 %v1767_v35, %v5765_v51 }
 0x263   :  { %v1855_v0 = vmul.f32 %v5783_v32, %v5783_v32  ;;  %v1857_v28 = vmul.f32 %v5791_v11, %v5791_v11  ;;  %v5815_v36 = vadd.f32 %v1218_v50, %v5752_v58 }
 0x264   :  { %v1222_v17 = vpop.f32.mrf.mxu1  ;;  %7915 = vst [vmem:[#allocation3_spill] sm:$0xff] %v5772_v45  ;;  %v1856_v48 = vmul.f32 %v5772_v45, %v5772_v45  ;;  %v1784_v8 = vadd.f32 %v5772_v45, %v5783_v32  ;;  %v1904_v15 = vadd.f32 %v1903_v53, %v1841_v4  ;;  %v1769_v42 = vadd.f32 %v1768_v54, %v5788_v19 }
 0x265   :  { %v1133_v5 = vpop.f32.mrf.mxu0  ;;  %7920 = vst [vmem:[#allocation8_spill] sm:$0xff] %v5815_v36  ;;  %v5824_v23 = vadd.f32 %v1222_v17, %v5750_v56  ;;  %v1858_v1 = vmul.f32 %v5815_v36, %v5815_v36 }
 0x266   :  { %v1224_v6 = vpop.f32.mrf.mxu1  ;;  %v1920_v24 = vadd.f32 %v1856_v48, %v1855_v0  ;;  %v5811_v43 = vadd.f32 %v1133_v5, %v5750_v56  ;;  %v1785_v60 = vadd.f32 %v1784_v8, %v5791_v11  ;;  %v1905_v31 = vadd.f32 %v1904_v15, %v1842_v18 }
 0x267   :  { %v1135_v25 = vpop.f32.mrf.mxu0  ;;  %7921 = vst [vmem:[#allocation9_spill] sm:$0xff] %v5824_v23  ;;  %v5848_v53 = vadd.f32 %v1224_v6, %v5750_v56 }
 0x268   :  { %v5769_v12 = vpop.f32.mrf.mxu1  ;;  %v5804_v47 = vadd.f32 %v1135_v25, %v5750_v56  ;;  %7919 = vst [vmem:[#allocation7_spill] sm:$0xff] %v5811_v43  ;;  %v1921_v37 = vadd.f32 %v1920_v24, %v1857_v28  ;;  %v1786_v55 = vadd.f32 %v1785_v60, %v5815_v36 }
 0x269   :  { %v5767_v33 = vpop.f32.mrf.mxu0  ;;  %7924 = vst [vmem:[#allocation12_spill] sm:$0xff] %v5848_v53 }
 0x26a   :  { %v5780_v49 = vpop.f32.mrf.mxu1  ;;  %7918 = vst [vmem:[#allocation6_spill] sm:$0xff] %v5804_v47  ;;  %v1801_v61 = vadd.f32 %v5804_v47, %v5811_v43  ;;  %v1922_v27 = vadd.f32 %v1921_v37, %v1858_v1 }
 0x26b   :  { %v5778_v7 = vpop.f32.mrf.mxu0 }
 0x26c   :  { %v1388_v26 = vpop.f32.mrf.mxu1  ;;  %v1802_v40 = vadd.f32 %v1801_v61, %v5824_v23 }
 0x26d   :  { %v1299_v34 = vpop.f32.mrf.mxu0  ;;  %v5844_v25 = vadd.f32 %v1388_v26, %v5754_v16 }
 0x26e   :  { %v5797_v22 = vadd.f32 %v1299_v34, %v5754_v16  ;;  %v1390_v29 = vpop.f32.mrf.mxu1  ;;  %v1803_v26 = vadd.f32 %v1802_v40, %v5848_v53 }
 0x26f   :  { %v1301_v46 = vpop.f32.mrf.mxu0  ;;  %v5860_v0 = vadd.f32 %v1390_v29, %v5754_v16  ;;  %v1845_v18 = vmul.f32 %v5844_v25, %v5844_v25 }
 0x270   :  { %v1843_v20 = vmul.f32 %v5797_v22, %v5797_v22  ;;  %v5820_v52 = vadd.f32 %v1301_v46, %v5754_v16  ;;  %v1770_v62 = vadd.f32 %v1769_v42, %v5797_v22 }
 0x272   :  { %v1305_v41 = vpop.f32.mrf.mxu0  ;;  %v1906_v44 = vadd.f32 %v1905_v31, %v1843_v20  ;;  %v1844_v14 = vmul.f32 %v5820_v52, %v5820_v52  ;;  %v1771_v9 = vadd.f32 %v1770_v62, %v5820_v52  ;;  %v1846_v62 = vmul.f32 %v5860_v0, %v5860_v0 }
 0x273   :  { %v1394_v39 = vpop.f32.mrf.mxu1  ;;  %v5829_v59 = vadd.f32 %v1305_v41, %v5752_v58 }
 0x274   :  { %v1307_v57 = vpop.f32.mrf.mxu0  ;;  %v1907_v54 = vadd.f32 %v1906_v44, %v1844_v14  ;;  %v1772_v28 = vadd.f32 %v1771_v9, %v5844_v25  ;;  %v5872_v41 = vadd.f32 %v1394_v39, %v5752_v58 }
 0x275   :  { %7922 = vst [vmem:[#allocation10_spill] sm:$0xff] %v5829_v59  ;;  %v1396_v21 = vpop.f32.mrf.mxu1  ;;  %v1859_v50 = vmul.f32 %v5829_v59, %v5829_v59  ;;  %v5841_v17 = vadd.f32 %v1307_v57, %v5752_v58  ;;  %v1787_v4 = vadd.f32 %v1786_v55, %v5829_v59 }
 0x276   :  { %v1311_v10 = vpop.f32.mrf.mxu0  ;;  %7926 = vst [vmem:[#allocation14_spill] sm:$0xff] %v5872_v41  ;;  %v1908_v61 = vadd.f32 %v1907_v54, %v1845_v18  ;;  %v1773_v39 = vadd.f32 %v1772_v28, %v5860_v0  ;;  %v5886_v1 = vadd.f32 %v1396_v21, %v5752_v58  ;;  %v1861_v40 = vmul.f32 %v5872_v41, %v5872_v41 }
 0x277   :  { %v1400_v63 = vpop.f32.mrf.mxu1  ;;  %7923 = vst [vmem:[#allocation11_spill] sm:$0xff] %v5841_v17  ;;  %v5852_v34 = vadd.f32 %v1311_v10, %v5750_v56  ;;  %v1923_v8 = vadd.f32 %v1922_v27, %v1859_v50  ;;  %v1860_v6 = vmul.f32 %v5841_v17, %v5841_v17  ;;  %v1788_v42 = vadd.f32 %v1787_v4, %v5841_v17 }
 0x278   :  { %v1313_v5 = vpop.f32.mrf.mxu0  ;;  %7928 = vst [vmem:[#allocation16_spill] sm:$0xff] %v5886_v1  ;;  %v1909_v9 = vadd.f32 %v1908_v61, %v1846_v62  ;;  %v5899_v54 = vadd.f32 %v1400_v63, %v5750_v56 }
 0x279   :  { %v1402_v35 = vpop.f32.mrf.mxu1  ;;  %7925 = vst [vmem:[#allocation13_spill] sm:$0xff] %v5852_v34  ;;  %v1804_v29 = vadd.f32 %v1803_v26, %v5852_v34  ;;  %v5877_v20 = vadd.f32 %v1313_v5, %v5750_v56  ;;  %v1924_v37 = vadd.f32 %v1923_v8, %v1860_v6  ;;  %v1789_v50 = vadd.f32 %v1788_v42, %v5872_v41 }
 0x27a   :  { %v5854_v48 = vpop.f32.mrf.mxu0  ;;  %7929 = vst [vmem:[#allocation17_spill] sm:$0xff] %v5899_v54  ;;  %v1862_v6 = vmul.f32 %v5886_v1, %v5886_v1 }
 0x27b   :  { %v5856_v46 = vpop.f32.mrf.mxu1  ;;  %7927 = vst [vmem:[#allocation15_spill] sm:$0xff] %v5877_v20  ;;  %v1805_v5 = vadd.f32 %v1804_v29, %v5877_v20  ;;  %v1925_v21 = vadd.f32 %v1924_v37, %v1861_v40  ;;  %v1790_v29 = vadd.f32 %v1789_v50, %v5886_v1  ;;  %v5920_v40 = vadd.f32 %v1402_v35, %v5750_v56 }
 0x27c   :  { %v5864_v15 = vpop.f32.mrf.mxu0 }
 0x27d   :  { %v5869_v24 = vpop.f32.mrf.mxu1  ;;  %7932 = vst [vmem:[#allocation20_spill] sm:$0xff] %v5920_v40 }
 0x27e   :  { %v1477_v60 = vpop.f32.mrf.mxu0 }
 0x27f   :  { %v5880_v57 = vadd.f32 %v1477_v60, %v5754_v16  ;;  %v1566_v31 = vpop.f32.mrf.mxu1  ;;  %v1806_v60 = vadd.f32 %v1805_v5, %v5899_v54 }
 0x280   :  { %v1479_v10 = vpop.f32.mrf.mxu0  ;;  %v5916_v37 = vadd.f32 %v1566_v31, %v5754_v16 }
 0x281   :  { %v1847_v44 = vmul.f32 %v5880_v57, %v5880_v57  ;;  %v5891_v14 = vadd.f32 %v1479_v10, %v5754_v16  ;;  %v1568_v55 = vpop.f32.mrf.mxu1  ;;  %v1774_v27 = vadd.f32 %v1773_v39, %v5880_v57  ;;  %v1807_v2 = vadd.f32 %v1806_v60, %v5920_v40 }
 0x282   :  { %v5932_v35 = vadd.f32 %v1568_v55, %v5754_v16 }
 0x283   :  { %v1483_v4 = vpop.f32.mrf.mxu0  ;;  %v1910_v18 = vadd.f32 %v1909_v9, %v1847_v44  ;;  %v1848_v28 = vmul.f32 %v5891_v14, %v5891_v14  ;;  %v1775_v10 = vadd.f32 %v1774_v27, %v5891_v14  ;;  %v1926_v44 = vadd.f32 %v1925_v21, %v1862_v6 }
 0x284   :  { %v5902_v26 = vadd.f32 %v1483_v4, %v5752_v58  ;;  %v1572_v8 = vpop.f32.mrf.mxu1  ;;  %v1849_v21 = vmul.f32 %v5916_v37, %v5916_v37 }
 0x285   :  { %v1485_v42 = vpop.f32.mrf.mxu0  ;;  %v1911_v4 = vadd.f32 %v1910_v18, %v1848_v28  ;;  %v1776_v6 = vadd.f32 %v1775_v10, %v5916_v37  ;;  %v5938_v18 = vadd.f32 %v1572_v8, %v5752_v58  ;;  %v1850_v8 = vmul.f32 %v5932_v35, %v5932_v35 }
 0x286   :  { %7930 = vst [vmem:[#allocation18_spill] sm:$0xff] %v5902_v26  ;;  %v1863_v63 = vmul.f32 %v5902_v26, %v5902_v26  ;;  %v5913_v61 = vadd.f32 %v1485_v42, %v5752_v58  ;;  %v1574_v62 = vpop.f32.mrf.mxu1  ;;  %v1791_v50 = vadd.f32 %v1790_v29, %v5902_v26 }
 0x287   :  { %v1489_v39 = vpop.f32.mrf.mxu0  ;;  %7934 = vst [vmem:[#allocation22_spill] sm:$0xff] %v5938_v18  ;;  %v1777_v10 = vadd.f32 %v1776_v6, %v5932_v35 }
 0x288   :  { %7931 = vst [vmem:[#allocation19_spill] sm:$0xff] %v5913_v61  ;;  %v5924_v5 = vadd.f32 %v1489_v39, %v5750_v56  ;;  %v1578_v9 = vpop.f32.mrf.mxu1  ;;  %v1927_v30 = vadd.f32 %v1926_v44, %v1863_v63  ;;  %v1864_v31 = vmul.f32 %v5913_v61, %v5913_v61  ;;  %v1792_v28 = vadd.f32 %v1791_v50, %v5913_v61 }
 0x289   :  { %v1491_v42 = vpop.f32.mrf.mxu0  ;;  %v1912_v44 = vadd.f32 %v1911_v4, %v1849_v21  ;;  %v5955_v50 = vadd.f32 %v1574_v62, %v5752_v58  ;;  %v5965_v59 = vadd.f32 %v1578_v9, %v5750_v56 }
 0x28a   :  { %7933 = vst [vmem:[#allocation21_spill] sm:$0xff] %v5924_v5  ;;  %v1580_v27 = vpop.f32.mrf.mxu1  ;;  %v1808_v60 = vadd.f32 %v1807_v2, %v5924_v5  ;;  %v5943_v63 = vadd.f32 %v1491_v42, %v5750_v56  ;;  %v1928_v55 = vadd.f32 %v1927_v30, %v1864_v31  ;;  %v1865_v42 = vmul.f32 %v5938_v18, %v5938_v18 }
 0x28b   :  { %v5935_v29 = vpop.f32.mrf.mxu0  ;;  %7936 = vst [vmem:[#allocation24_spill] sm:$0xff] %v5955_v50  ;;  %v1793_v61 = vadd.f32 %v1792_v28, %v5938_v18  ;;  %v1913_v21 = vadd.f32 %v1912_v44, %v1850_v8  ;;  %7938 = vst [vmem:[#allocation26_spill] sm:$0xff] %v5965_v59  ;;  %v1866_v28 = vmul.f32 %v5955_v50, %v5955_v50 }
 0x28c   :  { %7935 = vst [vmem:[#allocation23_spill] sm:$0xff] %v5943_v63  ;;  %v5945_v39 = vpop.f32.mrf.mxu1  ;;  %v1809_v4 = vadd.f32 %v1808_v60, %v5943_v63  ;;  %v1929_v41 = vadd.f32 %v1928_v55, %v1865_v42  ;;  %v5984_v18 = vadd.f32 %v1580_v27, %v5750_v56 }
 0x28d   :  { %v5947_v13 = vpop.f32.mrf.mxu0  ;;  %v1794_v55 = vadd.f32 %v1793_v61, %v5955_v50 }
 0x28e   :  { %v5949_v26 = vpop.f32.mrf.mxu1  ;;  %v1810_v9 = vadd.f32 %v1809_v4, %v5965_v59  ;;  %7941 = vst [vmem:[#allocation29_spill] sm:$0xff] %v5984_v18  ;;  %v1930_v32 = vadd.f32 %v1929_v41, %v1866_v28 }
 0x28f   :  { %v1655_v2 = vpop.f32.mrf.mxu0 }
 0x290   :  { %v5962_v30 = vadd.f32 %v1655_v2, %v5754_v16  ;;  %v1744_v31 = vpop.f32.mrf.mxu1  ;;  %v1811_v41 = vadd.f32 %v1810_v9, %v5984_v18 }
 0x291   :  { %v1657_v6 = vpop.f32.mrf.mxu0  ;;  %v5973_v60 = vadd.f32 %v1744_v31, %v5754_v16 }
 0x292   :  { %7937 = vst [vmem:[#allocation25_spill] sm:$0xff] %v5962_v30  ;;  %v1778_v62 = vadd.f32 %v1777_v10, %v5962_v30  ;;  %v1851_v1 = vmul.f32 %v5962_v30, %v5962_v30  ;;  %v1746_v17 = vpop.f32.mrf.mxu1  ;;  %v5976_v2 = vadd.f32 %v1657_v6, %v5754_v16 }
 0x293   :  { %v1661_v44 = vpop.f32.mrf.mxu0  ;;  %v1853_v27 = vmul.f32 %v5973_v60, %v5973_v60 }
 0x294   :  { %7939 = vst [vmem:[#allocation27_spill] sm:$0xff] %v5976_v2  ;;  %v1914_v8 = vadd.f32 %v1913_v21, %v1851_v1  ;;  %v5981_v10 = vadd.f32 %v1661_v44, %v5752_v58  ;;  %v1750_v42 = vpop.f32.mrf.mxu1  ;;  %v1779_v11 = vadd.f32 %v1778_v62, %v5976_v2  ;;  %v1852_v31 = vmul.f32 %v5976_v2, %v5976_v2 }
 0x295   :  { %v1663_v6 = vpop.f32.mrf.mxu0  ;;  %v5998_v21 = vadd.f32 %v1746_v17, %v5754_v16 }
 0x296   :  { %7940 = vst [vmem:[#allocation28_spill] sm:$0xff] %v5981_v10  ;;  %v1795_v36 = vadd.f32 %v1794_v55, %v5981_v10  ;;  %v1867_v61 = vmul.f32 %v5981_v10, %v5981_v10  ;;  %v5993_v1 = vadd.f32 %v1663_v6, %v5752_v58  ;;  %v1752_v4 = vpop.f32.mrf.mxu1  ;;  %v1780_v44 = vadd.f32 %v1779_v11, %v5973_v60 }
 0x297   :  { %v1667_v62 = vpop.f32.mrf.mxu0  ;;  %v1915_v50 = vadd.f32 %v1914_v8, %v1852_v31 }
 0x298   :  { %v1931_v28 = vadd.f32 %v1930_v32, %v1867_v61  ;;  %v6003_v55 = vadd.f32 %v1667_v62, %v5750_v56  ;;  %v1756_v10 = vpop.f32.mrf.mxu1  ;;  %v1796_v6 = vadd.f32 %v1795_v36, %v5993_v1  ;;  %v1868_v45 = vmul.f32 %v5993_v1, %v5993_v1 }
 0x299   :  { %v1669_v30 = vpop.f32.mrf.mxu0  ;;  %v1781_v16 = vadd.f32 %v1780_v44, %v5998_v21  ;;  %v1916_v17 = vadd.f32 %v1915_v50, %v1853_v27  ;;  %v6014_v32 = vadd.f32 %v1750_v42, %v5752_v58  ;;  %v1854_v36 = vmul.f32 %v5998_v21, %v5998_v21 }
 0x29a   :  { %7942 = vst [vmem:[#allocation30_spill] sm:$0xff] %v6003_v55  ;;  %v1812_v2 = vadd.f32 %v1811_v41, %v6003_v55  ;;  %v6011_v11 = vadd.f32 %v1669_v30, %v5750_v56  ;;  %v1758_v9 = vpop.f32.mrf.mxu1  ;;  %v6019_v8 = vadd.f32 %v1756_v10, %v5750_v56  ;;  %v1932_v27 = vadd.f32 %v1931_v28, %v1868_v45 }
 0x29b   :  { %1782 = vadd.xlane.f32.xlu1 %v1781_v16  ;;  %v1917_v61 = vadd.f32 %v1916_v17, %v1854_v36  ;;  %v1797_v50 = vadd.f32 %v1796_v6, %v6014_v32  ;;  %v6024_v30 = vadd.f32 %v1758_v9, %v5750_v56  ;;  %v1869_v62 = vmul.f32 %v6014_v32, %v6014_v32  ;;  %v4991_v9 = vld [vmem:[%s7829_s6 + $0x18] sm:$0xff]  ;;  %v4992_v36 = vld [vmem:[%s7829_s6 + $0x10] sm:$0xff] }
 0x29c   :  { %7943 = vst [vmem:[#allocation31_spill] sm:$0xff] %v6011_v11  ;;  %7944 = vst [vmem:[#allocation32_spill] sm:$0xff] %v6019_v8  ;;  %v1813_v31 = vadd.f32 %v1812_v2, %v6011_v11  ;;  %v6030_v44 = vadd.f32 %v1752_v4, %v5752_v58  ;;  %v1872_v28 = vmul.f32 %v5804_v47, %v5804_v47  ;;  %v6040_v4 = vpop.permute.xlu0 %1039 }
 0x29d   :  { %7945 = vst [vmem:[#allocation33_spill] sm:$0xff] %v6024_v30  ;;  %v1933_v41 = vadd.f32 %v1932_v27, %v1869_v62  ;;  %v1871_v58 = vmul.f32 %v5811_v43, %v5811_v43  ;;  %v1873_v6 = vmul.f32 %v5824_v23, %v5824_v23  ;;  %v6046_v17 = vadd.f32 %v5778_v7, %v6040_v4 }
 0x29e   :  { %v1814_v42 = vadd.f32 %v1813_v31, %v6019_v8  ;;  %v1798_v2 = vadd.f32 %v1797_v50, %v6030_v44  ;;  %v1870_v56 = vmul.f32 %v6030_v44, %v6030_v44  ;;  %v6056_v31 = vadd.f32 %v5767_v33, %v6040_v4 }
 0x29f   :  { %1918 = vadd.xlane.f32.xlu1 %v1917_v61  ;;  %v1937_v16 = vadd.f32 %v1872_v28, %v1871_v58  ;;  %v6060_v50 = vadd.f32 %v5769_v12, %v6040_v4  ;;  %v1888_v27 = vmul.f32 %v6046_v17, %v6046_v17  ;;  %v1874_v62 = vmul.f32 %v5848_v53, %v5848_v53  ;;  %v6076_v12 = vld [vmem:[%s7829_s6 + $0x8] sm:$0xff] }
 0x2a0   :  { %v1815_v10 = vadd.f32 %v1814_v42, %v6024_v30  ;;  %v1934_v45 = vadd.f32 %v1933_v41, %v1870_v56  ;;  %v1818_v7 = vadd.f32 %v6046_v17, %v6056_v31  ;;  %v7946_v42 = vmov 4  }
 0x2a1   :  { %v1938_v61 = vadd.f32 %v1937_v16, %v1873_v6  ;;  %v1887_v33 = vmul.f32 %v6056_v31, %v6056_v31  ;;  %v1889_v41 = vmul.f32 %v6060_v50, %v6060_v50  ;;  %v6084_v28 = vadd.f32 %v5780_v49, %v6040_v4 }
 0x2a2   :  { %1816 = vadd.xlane.f32.xlu0 %v1815_v10  ;;  %v1875_v10 = vmul.f32 %v5852_v34, %v5852_v34  ;;  %v1876_v6 = vmul.f32 %v5877_v20, %v5877_v20  ;;  %v6090_v16 = vadd.f32 %v5854_v48, %v6040_v4 }
 0x2a3   :  { %1799 = vadd.xlane.f32.xlu1 %v1798_v2  ;;  %v1939_v2 = vadd.f32 %v1938_v61, %v1874_v62  ;;  %v1954_v56 = vadd.f32 %v1888_v27, %v1887_v33 }
 0x2a4   :  { %v1891_v33 = vmul.f32 %v6090_v16, %v6090_v16 }
 0x2a5   :  { %v1940_v58 = vadd.f32 %v1939_v2, %v1875_v10  ;;  %v1955_v27 = vadd.f32 %v1954_v56, %v1889_v41  ;;  %v6101_v10 = vadd.f32 %v5864_v15, %v6040_v4  ;;  %v6109_v2 = vld [vmem:[%s7829_s6] sm:$0xff]  ;;  %v6114_v41 = vadd.f32 %v5856_v46, %v6040_v4 }
 0x2a7   :  { %1935 = vadd.xlane.f32.xlu1 %v1934_v45  ;;  %v1819_v45 = vadd.f32 %v1818_v7, %v6060_v50  ;;  %v1890_v7 = vmul.f32 %v6084_v28, %v6084_v28  ;;  %v1941_v62 = vadd.f32 %v1940_v58, %v1876_v6  ;;  %v1878_v58 = vmul.f32 %v5920_v40, %v5920_v40 }
 0x2a8   :  { %v1879_v6 = vmul.f32 %v5924_v5, %v5924_v5  ;;  %v1893_v46 = vmul.f32 %v6114_v41, %v6114_v41 }
 0x2a9   :  { %v1820_v61 = vadd.f32 %v1819_v45, %v6084_v28  ;;  %v1956_v48 = vadd.f32 %v1955_v27, %v1890_v7 }
 0x2ab   :  { %v1821_v49 = vadd.f32 %v1820_v61, %v6090_v16  ;;  %v1957_v15 = vadd.f32 %v1956_v48, %v1891_v33  ;;  %v1880_v33 = vmul.f32 %v5943_v63, %v5943_v63  ;;  %v6135_v48 = vadd.f32 %v5935_v29, %v6040_v4 }
 0x2ac   :  { %v1881_v29 = vmul.f32 %v5965_v59, %v5965_v59 }
 0x2ad   :  { %v1822_v45 = vadd.f32 %v1821_v49, %v6101_v10  ;;  %7948 = vst [vmem:[#allocation34_spill] sm:$0xff] %v6135_v48 }
 0x2af   :  { %v1823_v7 = vadd.f32 %v1822_v45, %v6114_v41 }
 0x2b8   :  { %2212 = vperm.xlu1 %4956, %v4991_v9   ;;  %2128 = vperm.xlu0 %4955, %v4992_v36   ;;  %v7947_v9 = vmov 5  }
 0x2bc   :  { %4957 = vset.pattern.permute.xlu1 %v7946_v42 }
 0x2bd   :  { %2124 = vperm.xlu1 %4957, %v6076_v12  }
 0x2c1   :  { %4958 = vset.pattern.permute.xlu1 %v7947_v9 }
 0x2c2   :  { %2208 = vperm.xlu1 %4958, %v4992_v36   ;;  %v1877_v36 = vmul.f32 %v5899_v54, %v5899_v54 }
 0x2c4   :  { %v1942_v56 = vadd.f32 %v1941_v62, %v1877_v36  ;;  %v6129_v62 = vadd.f32 %v5869_v24, %v6040_v4  ;;  %v1895_v24 = vmul.f32 %v6135_v48, %v6135_v48 }
 0x2c6   :  { %4959 = vset.pattern.permute.xlu1 %v7946_v42  ;;  %v1892_v42 = vmul.f32 %v6101_v10, %v6101_v10  ;;  %v1943_v61 = vadd.f32 %v1942_v56, %v1878_v58  ;;  %v1894_v56 = vmul.f32 %v6129_v62, %v6129_v62 }
 0x2c7   :  { %2120 = vperm.xlu1 %4959, %v6109_v2  }
 0x2c8   :  { %v1958_v27 = vadd.f32 %v1957_v15, %v1892_v42  ;;  %v1944_v49 = vadd.f32 %v1943_v61, %v1879_v6  ;;  %v6145_v42 = vadd.f32 %v5947_v13, %v6040_v4  ;;  %v6151_v6 = vadd.f32 %v5945_v39, %v6040_v4 }
 0x2c9   :  { %v1883_v13 = vmul.f32 %v6003_v55, %v6003_v55 }
 0x2ca   :  { %v1959_v36 = vadd.f32 %v1958_v27, %v1893_v46  ;;  %v1945_v15 = vadd.f32 %v1944_v49, %v1880_v33  ;;  %7949 = vst [vmem:[#allocation35_spill] sm:$0xff] %v6145_v42  ;;  %7950 = vst [vmem:[#allocation36_spill] sm:$0xff] %v6151_v6  ;;  %v1882_v49 = vmul.f32 %v5984_v18, %v5984_v18  ;;  %v1673_v33 = vpop.f32.mrf.mxu0 }
 0x2cb   :  { %4960 = vset.pattern.permute.xlu1 %v7947_v9  ;;  %v1824_v9 = vadd.f32 %v1823_v7, %v6129_v62  ;;  %v1896_v7 = vmul.f32 %v6145_v42, %v6145_v42 }
 0x2cc   :  { %v1960_v58 = vadd.f32 %v1959_v36, %v1894_v56  ;;  %v1946_v61 = vadd.f32 %v1945_v15, %v1881_v29  ;;  %v1897_v36 = vmul.f32 %v6151_v6, %v6151_v6  ;;  %v6165_v15 = vadd.f32 %v5949_v26, %v6040_v4  ;;  %v1675_v29 = vpop.f32.mrf.mxu0 }
 0x2cd   :  { %v1825_v45 = vadd.f32 %v1824_v9, %v6135_v48 }
 0x2ce   :  { %v1961_v46 = vadd.f32 %v1960_v58, %v1895_v24  ;;  %v1947_v9 = vadd.f32 %v1946_v61, %v1882_v49  ;;  %7951 = vst [vmem:[#allocation37_spill] sm:$0xff] %v6165_v15  ;;  %v1884_v24 = vmul.f32 %v6011_v11, %v6011_v11  ;;  %v6170_v58 = vadd.f32 %v1673_v33, %v6040_v4 }
 0x2cf   :  { %v1826_v27 = vadd.f32 %v1825_v45, %v6145_v42  ;;  %v1885_v33 = vmul.f32 %v6019_v8, %v6019_v8 }
 0x2d0   :  { %v1962_v39 = vadd.f32 %v1961_v46, %v1896_v7  ;;  %v1948_v45 = vadd.f32 %v1947_v9, %v1883_v13  ;;  %7952 = vst [vmem:[#allocation38_spill] sm:$0xff] %v6170_v58  ;;  %v1898_v46 = vmul.f32 %v6165_v15, %v6165_v15  ;;  %v1899_v26 = vmul.f32 %v6170_v58, %v6170_v58  ;;  %v1762_v13 = vpop.f32.mrf.mxu1 }
 0x2d1   :  { %v1827_v56 = vadd.f32 %v1826_v27, %v6151_v6  ;;  %v6179_v7 = vadd.f32 %v1675_v29, %v6040_v4  ;;  %v1886_v29 = vmul.f32 %v6024_v30, %v6024_v30 }
 0x2d2   :  { %v1963_v49 = vadd.f32 %v1962_v39, %v1897_v36  ;;  %v1949_v9 = vadd.f32 %v1948_v45, %v1884_v24 }
 0x2d3   :  { %v1828_v61 = vadd.f32 %v1827_v56, %v6165_v15  ;;  %7953 = vst [vmem:[#allocation39_spill] sm:$0xff] %v6179_v7  ;;  %v6184_v56 = vadd.f32 %v1762_v13, %v6040_v4 }
 0x2d4   :  { %v1964_v6 = vadd.f32 %v1963_v49, %v1898_v46  ;;  %v1950_v48 = vadd.f32 %v1949_v9, %v1885_v33 }
 0x2d5   :  { %v1829_v27 = vadd.f32 %v1828_v61, %v6170_v58  ;;  %7954 = vst [vmem:[#allocation40_spill] sm:$0xff] %v6184_v56  ;;  %v1900_v61 = vmul.f32 %v6179_v7, %v6179_v7  ;;  %v1764_v58 = vpop.f32.mrf.mxu1  ;;  %v1901_v45 = vmul.f32 %v6184_v56, %v6184_v56 }
 0x2d6   :  { %v1965_v36 = vadd.f32 %v1964_v6, %v1899_v26  ;;  %v6194_v24 = vadd.f32 %v1764_v58, %v6040_v4  ;;  %v1951_v49 = vadd.f32 %v1950_v48, %v1886_v29  ;;  %v6202_v4 = vpop.permute.xlu1 %2132  ;;  %v5004_v29 = vmov 6  }
 0x2d7   :  { %v1830_v39 = vadd.f32 %v1829_v27, %v6179_v7  ;;  %7956 = vst [vmem:[#allocation42_spill] sm:$0xff] %v6202_v4  ;;  %4962 = vset.pattern.permute.xlu0 %v5004_v29 }
 0x2d8   :  { %7955 = vst [vmem:[#allocation41_spill] sm:$0xff] %v6194_v24  ;;  %v1966_v6 = vadd.f32 %v1965_v36, %v1900_v61  ;;  %v1902_v26 = vmul.f32 %v6194_v24, %v6194_v24  ;;  %2410 = vperm.xlu0 %4962, %v6109_v2  }
 0x2d9   :  { %v1831_v46 = vadd.f32 %v1830_v39, %v6184_v56 }
 0x2da   :  { %v1967_v13 = vadd.f32 %v1966_v6, %v1901_v45 }
 0x2db   :  { %v1832_v27 = vadd.f32 %v1831_v46, %v6194_v24 }
 0x2dc   :  { %v1968_v9 = vadd.f32 %v1967_v13, %v1902_v26  ;;  %v5005_v26 = vmov 7  }
 0x2dd   :  { %4964 = vset.pattern.permute.xlu0 %v5005_v26 }
 0x2eb   :  { %1952 = vadd.xlane.f32.xlu1 %v1951_v49 }
 0x2ef   :  { %1833 = vadd.xlane.f32.xlu1 %v1832_v27 }
 0x2f3   :  { %1969 = vadd.xlane.f32.xlu1 %v1968_v9 }
 0x304   :  { %2204 = vperm.xlu1 %4960, %v6076_v12  }
 0x308   :  { %2200 = vperm.xlu1 %4960, %v6109_v2  }
 0x30c   :  { %4961 = vset.pattern.permute.xlu1 %v5004_v29 }
 0x30d   :  { %2414 = vperm.xlu1 %4961, %v6076_v12  }
 0x311   :  { %4963 = vset.pattern.permute.xlu1 %v5005_v26  ;;  %v7960_v26 = vld [vmem:[#allocation25_spill] sm:$0xff] }
 0x312   :  { %3221 = vperm.xlu1 %4963, %v6076_v12  }
 0x324   :  { %v1783_v48 = vpop.xlane.xlu1 %1782 }
 0x325   :  { %v6204_v36 = vmul.f32 0.00048828125, %v1783_v48 }
 0x327   :  { %v1975_v45 = vmul.f32 %v6204_v36, %v6204_v36  ;;  %v1983_v29 = vsub.f32 %v5760_v38, %v6204_v36  ;;  %v1985_v12 = vsub.f32 %v5765_v51, %v6204_v36  ;;  %v1994_v38 = vsub.f32 %v5932_v35, %v6204_v36 }
 0x328   :  { %v1919_v58 = vpop.xlane.xlu1 %1918  ;;  %v1991_v51 = vsub.f32 %v5880_v57, %v6204_v36  ;;  %v1997_v35 = vsub.f32 %v5973_v60, %v6204_v36  ;;  %v7963_v60 = vld [vmem:[#allocation4_spill] sm:$0xff]  ;;  %v7964_v57 = vld [vmem:[#allocation5_spill] sm:$0xff] }
 0x329   :  { %v1971_v39 = vmul.f32 0.00048828125, %v1919_v58 }
 0x32b   :  { %v1979_v46 = vsub.f32 %v1971_v39, %v1975_v45  ;;  %v1817_v48 = vpop.xlane.xlu0 %1816  ;;  %v1984_v39 = vsub.f32 %v5757_v3, %v6204_v36  ;;  %v1988_v45 = vsub.f32 %v5820_v52, %v6204_v36  ;;  %v1989_v3 = vsub.f32 %v5844_v25, %v6204_v36 }
 0x32c   :  { %v1800_v33 = vpop.xlane.xlu1 %1799  ;;  %v6217_v2 = vmul.f32 0.00048828125, %v1817_v48  ;;  %v1993_v52 = vsub.f32 %v5916_v37, %v6204_v36  ;;  %v7968_v37 = vld [vmem:[#allocation14_spill] sm:$0xff] }
 0x32d   :  { %v6208_v49 = vmul.f32 0.00048828125, %v1800_v33  ;;  %v2047_v13 = vadd.f32 1e-05, %v1979_v46  ;;  %v1990_v46 = vsub.f32 %v5860_v0, %v6204_v36  ;;  %v7959_v0 = vld [vmem:[#allocation27_spill] sm:$0xff]  ;;  %v7973_v48 = vld [vmem:[#allocation22_spill] sm:$0xff] }
 0x32e   :  { %7958 = vst [vmem:[#allocation44_spill] sm:$0xff] %v6217_v2  ;;  %v6249_v25 = vmul.f32 %v6217_v2, %v6217_v2 }
 0x32f   :  { %v1976_v27 = vmul.f32 %v6208_v49, %v6208_v49  ;;  %4973 = vrsqrt.f32 %v2047_v13  ;;  %v1995_v13 = vsub.f32 %v7960_v26, %v6204_v36  ;;  %v2005_v20 = vsub.f32 %v7968_v37, %v6208_v49  ;;  %v7971_v37 = vld [vmem:[#allocation24_spill] sm:$0xff] }
 0x330   :  { %v1936_v61 = vpop.xlane.xlu1 %1935  ;;  %v2010_v34 = vsub.f32 %v7971_v37, %v6208_v49  ;;  %v2009_v63 = vsub.f32 %v7973_v48, %v6208_v49  ;;  %v2012_v37 = vsub.f32 %v5993_v1, %v6208_v49  ;;  %v7974_v48 = vld [vmem:[#allocation28_spill] sm:$0xff] }
 0x331   :  { %v1972_v6 = vmul.f32 0.00048828125, %v1936_v61  ;;  %v1986_v61 = vsub.f32 %v5788_v19, %v6204_v36  ;;  %v1992_v19 = vsub.f32 %v5891_v14, %v6204_v36  ;;  %v1998_v14 = vsub.f32 %v5998_v21, %v6204_v36  ;;  %v7961_v21 = vld [vmem:[#allocation3_spill] sm:$0xff] }
 0x332   :  { %v2011_v59 = vsub.f32 %v7974_v48, %v6208_v49 }
 0x333   :  { %v1980_v9 = vsub.f32 %v1972_v6, %v1976_v27  ;;  %v1987_v6 = vsub.f32 %v5797_v22, %v6204_v36  ;;  %v1996_v22 = vsub.f32 %v7959_v0, %v6204_v36  ;;  %v7962_v0 = vld [vmem:[#allocation8_spill] sm:$0xff]  ;;  %v1999_v36 = vsub.f32 %v7963_v60, %v6208_v49 }
 0x334   :  { %v6215_v33 = vpop.permute.xlu1 %2212  ;;  %v2002_v26 = vsub.f32 %v7962_v0, %v6208_v49  ;;  %v7965_v0 = vld [vmem:[#allocation11_spill] sm:$0xff]  ;;  %v7966_v60 = vld [vmem:[#allocation16_spill] sm:$0xff] }
 0x335   :  { %v2048_v58 = vadd.f32 1e-05, %v1980_v9  ;;  %7957 = vst [vmem:[#allocation43_spill] sm:$0xff] %v6215_v33  ;;  %v2001_v33 = vsub.f32 %v7964_v57, %v6208_v49  ;;  %v2004_v4 = vsub.f32 %v7965_v0, %v6208_v49  ;;  %v2006_v23 = vsub.f32 %v7966_v60, %v6208_v49  ;;  %v7967_v57 = vld [vmem:[#allocation10_spill] sm:$0xff] }
 0x336   :  { %v2003_v43 = vsub.f32 %v7967_v57, %v6208_v49  ;;  %v7970_v57 = vld [vmem:[#allocation19_spill] sm:$0xff] }
 0x337   :  { %4975 = vrsqrt.f32 %v2048_v58  ;;  %v2000_v58 = vsub.f32 %v7961_v21, %v6208_v49  ;;  %v2008_v54 = vsub.f32 %v7970_v57, %v6208_v49  ;;  %v2013_v21 = vsub.f32 %v6014_v32, %v6208_v49 }
 0x338   :  { %v6237_v27 = vpop.permute.xlu1 %2124 }
 0x33c   :  { %v4974_v9 = vpop.eup %4973 }
 0x33d   :  { %v6289_v53 = vpop.permute.xlu1 %2208  ;;  %v2056_v11 = vmul.f32 %v4974_v9, %v1984_v39  ;;  %v2058_v0 = vmul.f32 %v4974_v9, %v1986_v61  ;;  %v2055_v30 = vmul.f32 %v4974_v9, %v1983_v29  ;;  %v2057_v5 = vmul.f32 %v4974_v9, %v1985_v12 }
 0x33e   :  { %7969 = vst [vmem:[#allocation27_spill] sm:$0xff] %v6289_v53  ;;  %v7972_v53 = vld [vmem:[#allocation18_spill] sm:$0xff]  ;;  %v2060_v55 = vmul.f32 %v4974_v9, %v1988_v45  ;;  %v2062_v18 = vmul.f32 %v4974_v9, %v1990_v46  ;;  %v2059_v57 = vmul.f32 %v4974_v9, %v1987_v6  ;;  %v2061_v8 = vmul.f32 %v4974_v9, %v1989_v3 }
 0x33f   :  { %v2007_v40 = vsub.f32 %v7972_v53, %v6208_v49  ;;  %v2014_v53 = vsub.f32 %v6030_v44, %v6208_v49  ;;  %v2064_v1 = vmul.f32 %v4974_v9, %v1992_v19  ;;  %v2066_v47 = vmul.f32 %v4974_v9, %v1994_v38 }
 0x340   :  { %v2063_v56 = vmul.f32 %v4974_v9, %v1991_v51  ;;  %v2065_v44 = vmul.f32 %v4974_v9, %v1993_v52  ;;  %v2068_v24 = vmul.f32 %v4974_v9, %v1996_v22  ;;  %v2070_v7 = vmul.f32 %v4974_v9, %v1998_v14 }
 0x341   :  { %v2067_v48 = vmul.f32 %v4974_v9, %v1995_v13  ;;  %v2069_v15 = vmul.f32 %v4974_v9, %v1997_v35 }
 0x342   :  { %v2121_v2 = vpop.permute.xlu1 %2120 }
 0x343   :  { %v6323_v61 = vmul.f32 %v2121_v2, %v2056_v11  ;;  %v6325_v29 = vmul.f32 %v2121_v2, %v2058_v0  ;;  %v6327_v46 = vmul.f32 %v2121_v2, %v2055_v30  ;;  %v6329_v6 = vmul.f32 %v2121_v2, %v2057_v5 }
 0x344   :  { %v4976_v60 = vpop.eup %4975  ;;  %v6331_v19 = vmul.f32 %v2121_v2, %v2060_v55  ;;  %v6333_v51 = vmul.f32 %v2121_v2, %v2062_v18  ;;  %v6335_v52 = vmul.f32 %v2121_v2, %v2059_v57  ;;  %v6337_v22 = vmul.f32 %v2121_v2, %v2061_v8 }
 0x345   :  { %v2072_v42 = vmul.f32 %v4976_v60, %v2000_v58  ;;  %v2074_v32 = vmul.f32 %v4976_v60, %v2002_v26  ;;  %v2071_v49 = vmul.f32 %v4976_v60, %v1999_v36  ;;  %v2073_v39 = vmul.f32 %v4976_v60, %v2001_v33 }
 0x346   :  { %v2076_v12 = vmul.f32 %v4976_v60, %v2004_v4  ;;  %v2078_v45 = vmul.f32 %v4976_v60, %v2006_v23  ;;  %v2075_v3 = vmul.f32 %v4976_v60, %v2003_v43  ;;  %v2077_v38 = vmul.f32 %v4976_v60, %v2005_v20 }
 0x347   :  { %v2152_v11 = vmul.f32 %v6237_v27, %v2072_v42  ;;  %v2154_v33 = vmul.f32 %v6237_v27, %v2074_v32  ;;  %v2151_v23 = vmul.f32 %v6237_v27, %v2071_v49  ;;  %v2153_v30 = vmul.f32 %v6237_v27, %v2073_v39 }
 0x348   :  { %v2156_v43 = vmul.f32 %v6237_v27, %v2076_v12  ;;  %v2158_v55 = vmul.f32 %v6237_v27, %v2078_v45  ;;  %v2080_v20 = vmul.f32 %v4976_v60, %v2008_v54  ;;  %v2082_v18 = vmul.f32 %v4976_v60, %v2010_v34 }
 0x349   :  { %v2155_v14 = vmul.f32 %v6237_v27, %v2075_v3  ;;  %v2079_v8 = vmul.f32 %v4976_v60, %v2007_v40  ;;  %v2081_v13 = vmul.f32 %v4976_v60, %v2009_v63  ;;  %v6347_v42 = vmul.f32 %v6237_v27, %v2077_v38 }
 0x34a   :  { %v6349_v35 = vmul.f32 %v2121_v2, %v2064_v1  ;;  %v6351_v9 = vmul.f32 %v2121_v2, %v2066_v47  ;;  %v6353_v58 = vmul.f32 %v2121_v2, %v2063_v56  ;;  %v2084_v36 = vmul.f32 %v4976_v60, %v2012_v37 }
 0x34b   :  { %v2086_v0 = vmul.f32 %v4976_v60, %v2014_v53  ;;  %v2083_v54 = vmul.f32 %v4976_v60, %v2011_v59  ;;  %v6357_v57 = vmul.f32 %v6237_v27, %v2080_v20  ;;  %v6360_v40 = vmul.f32 %v6237_v27, %v2082_v18  ;;  %v7991_v20 = vld [vmem:[#allocation35_spill] sm:$0xff] }
 0x34c   :  { %7975 = vst [vmem:[#allocation25_spill] sm:$0xff] %v6349_v35  ;;  %7976 = vst [vmem:[#allocation3_spill] sm:$0xff] %v6351_v9  ;;  %v6362_v63 = vmul.f32 %v2121_v2, %v2065_v44  ;;  %v2085_v1 = vmul.f32 %v4976_v60, %v2013_v21  ;;  %v6367_v56 = vmul.f32 %v6237_v27, %v2079_v8  ;;  %v7992_v8 = vld [vmem:[#allocation37_spill] sm:$0xff] }
 0x34d   :  { %7977 = vst [vmem:[#allocation8_spill] sm:$0xff] %v6353_v58  ;;  %7978 = vst [vmem:[#allocation4_spill] sm:$0xff] %v6357_v57  ;;  %v6372_v59 = vmul.f32 %v2121_v2, %v2068_v24  ;;  %v6374_v37 = vmul.f32 %v2121_v2, %v2070_v7  ;;  %v6376_v53 = vmul.f32 %v2121_v2, %v2067_v48  ;;  %v8015_v58 = vld [vmem:[#allocation15_spill] sm:$0xff] }
 0x34e   :  { %7979 = vst [vmem:[#allocation5_spill] sm:$0xff] %v6360_v40  ;;  %7980 = vst [vmem:[#allocation11_spill] sm:$0xff] %v6362_v63  ;;  %v6378_v49 = vmul.f32 %v2121_v2, %v2069_v15  ;;  %v6381_v21 = vmul.f32 %v6237_v27, %v2084_v36  ;;  %v6384_v60 = vmul.f32 %v6237_v27, %v2086_v0  ;;  %v7994_v0 = vld [vmem:[#allocation36_spill] sm:$0xff]  ;;  %v8006_v15 = vld [vmem:[#allocation6_spill] sm:$0xff] }
 0x34f   :  { %7981 = vst [vmem:[#allocation16_spill] sm:$0xff] %v6367_v56  ;;  %7983 = vst [vmem:[#allocation14_spill] sm:$0xff] %v6372_v59  ;;  %v6387_v44 = vmul.f32 %v6237_v27, %v2083_v54  ;;  %v6396_v2 = vmul.f32 %v6237_v27, %v2085_v1  ;;  %v8013_v1 = vld [vmem:[#allocation9_spill] sm:$0xff]  ;;  %v8023_v56 = vld [vmem:[#allocation27_spill] sm:$0xff] }
 0x350   :  { %7984 = vst [vmem:[#allocation19_spill] sm:$0xff] %v6374_v37  ;;  %7985 = vst [vmem:[#allocation24_spill] sm:$0xff] %v6376_v53  ;;  %v8007_v37 = vld [vmem:[#allocation44_spill] sm:$0xff] }
 0x351   :  { %7986 = vst [vmem:[#allocation18_spill] sm:$0xff] %v6378_v49  ;;  %7987 = vst [vmem:[#allocation22_spill] sm:$0xff] %v6381_v21  ;;  %v8008_v59 = vsub.f32 %v8006_v15, %v8007_v37  ;;  %v8014_v63 = vsub.f32 %v8013_v1, %v8007_v37  ;;  %v8016_v15 = vsub.f32 %v8015_v58, %v8007_v37 }
 0x352   :  { %7988 = vst [vmem:[#allocation28_spill] sm:$0xff] %v6384_v60  ;;  %7989 = vst [vmem:[#allocation45_spill] sm:$0xff] %v6387_v44  ;;  %v8009_v44 = vld [vmem:[#allocation12_spill] sm:$0xff] }
 0x353   :  { %7990 = vst [vmem:[#allocation46_spill] sm:$0xff] %v6396_v2  ;;  %v8010_v60 = vsub.f32 %v8009_v44, %v8007_v37 }
 0x374   :  { %v1953_v5 = vpop.xlane.xlu1 %1952 }
 0x375   :  { %v1973_v4 = vmul.f32 0.00048828125, %v1953_v5 }
 0x377   :  { %v1981_v26 = vsub.f32 %v1973_v4, %v6249_v25  ;;  %v6370_v25 = vmul.f32 %v6237_v27, %v2081_v13 }
 0x378   :  { %v1834_v34 = vpop.xlane.xlu1 %1833 }
 0x379   :  { %v2049_v32 = vadd.f32 1e-05, %v1981_v26  ;;  %v6364_v47 = vmul.f32 0.00048828125, %v1834_v34  ;;  %7982 = vst [vmem:[#allocation10_spill] sm:$0xff] %v6370_v25  ;;  %v7993_v26 = vld [vmem:[#allocation34_spill] sm:$0xff]  ;;  %v8019_v25 = vld [vmem:[#allocation13_spill] sm:$0xff] }
 0x37b   :  { %4977 = vrsqrt.f32 %v2049_v32  ;;  %v1978_v24 = vmul.f32 %v6364_v47, %v6364_v47 }
 0x37c   :  { %v1970_v39 = vpop.xlane.xlu1 %1969 }
 0x37d   :  { %v1974_v48 = vmul.f32 0.00048828125, %v1970_v39 }
 0x37f   :  { %v1982_v4 = vsub.f32 %v1974_v48, %v1978_v24  ;;  %v8011_v48 = vld [vmem:[#allocation7_spill] sm:$0xff] }
 0x380   :  { %v6418_v34 = vpop.permute.xlu1 %2204  ;;  %v8012_v18 = vsub.f32 %v8011_v48, %v8007_v37 }
 0x381   :  { %7995 = vst [vmem:[#allocation35_spill] sm:$0xff] %v6418_v34  ;;  %v2050_v5 = vadd.f32 1e-05, %v1982_v4  ;;  %v6429_v36 = vadd.f32 %v6418_v34, %v2152_v11  ;;  %v6432_v54 = vadd.f32 %v6418_v34, %v2154_v33  ;;  %v6435_v38 = vadd.f32 %v6418_v34, %v2151_v23 }
 0x382   :  { %v6438_v32 = vadd.f32 %v6418_v34, %v2153_v30  ;;  %v6441_v27 = vadd.f32 %v6418_v34, %v2156_v43  ;;  %v6444_v24 = vadd.f32 %v6418_v34, %v2158_v55  ;;  %v6447_v4 = vadd.f32 %v6418_v34, %v2155_v14 }
 0x383   :  { %4979 = vrsqrt.f32 %v2050_v5  ;;  %v6450_v11 = vmul.f32 0.01, %v6429_v36  ;;  %v6453_v33 = vmul.f32 0.01, %v6432_v54  ;;  %v6456_v23 = vmul.f32 0.01, %v6435_v38 }
 0x384   :  { %8000 = vst [vmem:[#allocation37_spill] sm:$0xff] %v6441_v27  ;;  %8001 = vst [vmem:[#allocation34_spill] sm:$0xff] %v6444_v24  ;;  %v6458_v30 = vpop.permute.xlu1 %2200  ;;  %v6461_v43 = vmul.f32 0.01, %v6438_v32  ;;  %v6464_v55 = vmul.f32 0.01, %v6441_v27  ;;  %v6471_v5 = vadd.f32 %v6418_v34, %v6347_v42  ;;  %v8024_v34 = vsub.f32 %v6046_v17, %v6364_v47 }
 0x385   :  { %8002 = vst [vmem:[#allocation36_spill] sm:$0xff] %v6447_v4  ;;  %v6467_v14 = vmul.f32 0.01, %v6444_v24  ;;  %v6481_v12 = vadd.f32 %v6458_v30, %v6323_v61  ;;  %v6487_v42 = vadd.f32 %v6458_v30, %v6325_v29  ;;  %v6491_v13 = vadd.f32 %v6458_v30, %v6327_v46  ;;  %v6509_v46 = vpop.permute.xlu0 %2128 }
 0x386   :  { %8003 = vst [vmem:[#allocation47_spill] sm:$0xff] %v6464_v55  ;;  %v6495_v3 = vadd.f32 %v6458_v30, %v6329_v6  ;;  %v6505_v29 = vmul.f32 0.01, %v6447_v4  ;;  %v6522_v61 = vadd.f32 %v6458_v30, %v6331_v19 }
 0x387   :  { %8004 = vst [vmem:[#allocation48_spill] sm:$0xff] %v6467_v14  ;;  %v6498_v45 = vmul.f32 0.01, %v6481_v12  ;;  %v6512_v49 = vmul.f32 0.01, %v6487_v42 }
 0x388   :  { %8005 = vst [vmem:[#allocation49_spill] sm:$0xff] %v6505_v29  ;;  %v6507_v7 = vpop.eup %4977  ;;  %v6515_v6 = vmul.f32 0.01, %v6491_v13  ;;  %v6518_v53 = vmul.f32 0.01, %v6495_v3 }
 0x389   :  { %v2088_v2 = vmul.f32 %v6507_v7, %v8008_v59  ;;  %v2090_v21 = vmul.f32 %v6507_v7, %v8010_v60  ;;  %v2087_v39 = vmul.f32 %v6507_v7, %v8012_v18  ;;  %v2089_v19 = vmul.f32 %v6507_v7, %v8014_v63  ;;  %v8017_v59 = vld [vmem:[#allocation20_spill] sm:$0xff] }
 0x38a   :  { %v2092_v9 = vmul.f32 %v6507_v7, %v8016_v15  ;;  %v8018_v35 = vsub.f32 %v8017_v59, %v8007_v37  ;;  %v8020_v60 = vsub.f32 %v8019_v25, %v8007_v37 }
 0x38b   :  { %v2168_v48 = vmul.f32 %v6509_v46, %v2088_v2  ;;  %v2170_v18 = vmul.f32 %v6509_v46, %v2090_v21  ;;  %v2167_v1 = vmul.f32 %v6509_v46, %v2087_v39  ;;  %v2169_v63 = vmul.f32 %v6509_v46, %v2089_v19  ;;  %v8021_v21 = vld [vmem:[#allocation17_spill] sm:$0xff] }
 0x38c   :  { %v2094_v44 = vmul.f32 %v6507_v7, %v8018_v35  ;;  %v2091_v2 = vmul.f32 %v6507_v7, %v8020_v60  ;;  %v8022_v39 = vsub.f32 %v8021_v21, %v8007_v37  ;;  %v2172_v25 = vmul.f32 %v6509_v46, %v2092_v9 }
 0x38d   :  { %v6569_v40 = vadd.f32 %v8023_v56, %v2168_v48  ;;  %v6572_v58 = vadd.f32 %v8023_v56, %v2170_v18  ;;  %v6575_v15 = vadd.f32 %v8023_v56, %v2167_v1  ;;  %v6578_v35 = vadd.f32 %v8023_v56, %v2169_v63 }
 0x38e   :  { %v2093_v19 = vmul.f32 %v6507_v7, %v8022_v39  ;;  %v2174_v59 = vmul.f32 %v6509_v46, %v2094_v44  ;;  %v2171_v60 = vmul.f32 %v6509_v46, %v2091_v2  ;;  %v6597_v44 = vadd.f32 %v8023_v56, %v2172_v25 }
 0x38f   :  { %v2312_v48 = vmul.f32 0.01, %v6569_v40  ;;  %v2314_v39 = vmul.f32 0.01, %v6572_v58  ;;  %v6587_v18 = vmul.f32 0.01, %v6575_v15  ;;  %v8025_v1 = vsub.f32 %v6084_v28, %v6364_v47 }
 0x390   :  { %v2173_v21 = vmul.f32 %v6509_v46, %v2093_v19  ;;  %v6591_v63 = vpop.eup %4979  ;;  %v6594_v9 = vmul.f32 0.01, %v6578_v35  ;;  %v6600_v2 = vadd.f32 %v8023_v56, %v2174_v59  ;;  %v6603_v19 = vadd.f32 %v8023_v56, %v2171_v60 }
 0x391   :  { %v2104_v57 = vmul.f32 %v6591_v63, %v8024_v34  ;;  %v2106_v29 = vmul.f32 %v6591_v63, %v8025_v1  ;;  %v8026_v25 = vsub.f32 %v6056_v31, %v6364_v47  ;;  %v8027_v59 = vsub.f32 %v6060_v50, %v6364_v47  ;;  %v8028_v1 = vld [vmem:[#allocation42_spill] sm:$0xff] }
 0x392   :  { %v2376_v14 = vmax.f32 %v6569_v40, %v2312_v48  ;;  %v2378_v17 = vmax.f32 %v6572_v58, %v2314_v39  ;;  %v2375_v34 = vmax.f32 %v6575_v15, %v6587_v18  ;;  %v2377_v28 = vmax.f32 %v6578_v35, %v6594_v9  ;;  %v8033_v48 = vld [vmem:[#allocation43_spill] sm:$0xff] }
 0x393   :  { %v2103_v4 = vmul.f32 %v6591_v63, %v8026_v25  ;;  %v2105_v60 = vmul.f32 %v6591_v63, %v8027_v59  ;;  %v2184_v24 = vmul.f32 %v8028_v1, %v2104_v57  ;;  %v2186_v31 = vmul.f32 %v8028_v1, %v2106_v29 }
 0x394   :  { %v8029_v59 = vsub.f32 %v6101_v10, %v6364_v47  ;;  %v8030_v58 = vsub.f32 %v6129_v62, %v6364_v47  ;;  %v8031_v35 = vsub.f32 %v6090_v16, %v6364_v47 }
 0x395   :  { %v2183_v25 = vmul.f32 %v8028_v1, %v2103_v4  ;;  %v2185_v50 = vmul.f32 %v8028_v1, %v2105_v60  ;;  %v8032_v4 = vsub.f32 %v6114_v41, %v6364_v47  ;;  %v2264_v39 = vadd.f32 %v8033_v48, %v2184_v24 }
 0x396   :  { %v2108_v40 = vmul.f32 %v6591_v63, %v8029_v59  ;;  %v2110_v15 = vmul.f32 %v6591_v63, %v8030_v58  ;;  %v2107_v57 = vmul.f32 %v6591_v63, %v8031_v35  ;;  %v2266_v10 = vadd.f32 %v8033_v48, %v2186_v31 }
 0x397   :  { %v2109_v29 = vmul.f32 %v6591_v63, %v8032_v4  ;;  %v2263_v18 = vadd.f32 %v8033_v48, %v2183_v25  ;;  %v2265_v62 = vadd.f32 %v8033_v48, %v2185_v50  ;;  %v2328_v58 = vmul.f32 0.01, %v2264_v39 }
 0x398   :  { %v2188_v9 = vmul.f32 %v8028_v1, %v2108_v40  ;;  %v2190_v60 = vmul.f32 %v8028_v1, %v2110_v15  ;;  %v2187_v16 = vmul.f32 %v8028_v1, %v2107_v57  ;;  %v2330_v41 = vmul.f32 0.01, %v2266_v10 }
 0x399   :  { %v2189_v59 = vmul.f32 %v8028_v1, %v2109_v29  ;;  %v2327_v35 = vmul.f32 0.01, %v2263_v18  ;;  %v6656_v4 = vadd.f32 %v8023_v56, %v2173_v21  ;;  %v2329_v24 = vmul.f32 0.01, %v2265_v62 }
 0x39a   :  { %v6659_v31 = vadd.f32 %v8033_v48, %v2188_v9  ;;  %v6662_v25 = vadd.f32 %v8033_v48, %v2190_v60  ;;  %v6665_v50 = vadd.f32 %v8033_v48, %v2187_v16  ;;  %v2392_v40 = vmax.f32 %v2264_v39, %v2328_v58 }
 0x39b   :  { %v2394_v15 = vmax.f32 %v2266_v10, %v2330_v41  ;;  %v2391_v57 = vmax.f32 %v2263_v18, %v2327_v35  ;;  %v6668_v29 = vadd.f32 %v8033_v48, %v2189_v59  ;;  %v2393_v55 = vmax.f32 %v2265_v62, %v2329_v24 }
 0x39c   :  { %v2332_v21 = vmul.f32 0.01, %v6659_v31  ;;  %v2334_v27 = vmul.f32 0.01, %v6662_v25  ;;  %v2331_v9 = vmul.f32 0.01, %v6665_v50  ;;  %2448 = vmatprep.subr.mxu0 %v2392_v40  ;;  %v6678_v10 = vadd.f32 %v6458_v30, %v6333_v51 }
 0x39d   :  { %2525 = vmatprep.subr.mxu1 %v2394_v15  ;;  %v2333_v60 = vmul.f32 0.01, %v6668_v29  ;;  %v2316_v16 = vmul.f32 0.01, %v6597_v44  ;;  %v2318_v39 = vmul.f32 0.01, %v6600_v2  ;;  %2449 = vmatpush1.msra.mxu0 %v2391_v57 }
 0x39e   :  { %2526 = vmatpush1.msra.mxu1 %v2393_v55  ;;  %v2396_v18 = vmax.f32 %v6659_v31, %v2332_v21  ;;  %v2398_v62 = vmax.f32 %v6662_v25, %v2334_v27  ;;  %v2395_v59 = vmax.f32 %v6665_v50, %v2331_v9  ;;  %v6684_v58 = vmul.f32 0.01, %v6603_v19  ;;  %2450 = vmatprep.subr.mxu0 %v2376_v14  ;;  %v8046_v50 = vld [vmem:[#allocation23_spill] sm:$0xff]  ;;  %v8048_v21 = vld [vmem:[#allocation29_spill] sm:$0xff] }
 0x39f   :  { %2527 = vmatprep.subr.mxu1 %v2378_v17  ;;  %v2397_v41 = vmax.f32 %v6668_v29, %v2333_v60  ;;  %v2380_v35 = vmax.f32 %v6597_v44, %v2316_v16  ;;  %v2382_v51 = vmax.f32 %v6600_v2, %v2318_v39  ;;  %v2317_v24 = vmul.f32 0.01, %v6656_v4  ;;  %2451 = vmatpush1.msra.mxu0 %v2375_v34  ;;  %v6792_v16 = vld [vmem:[%s7831_s4 + $0x8] sm:$0xff] }
 0x3a0   :  { %2528 = vmatpush1.msra.mxu1 %v2377_v28  ;;  %v2379_v27 = vmax.f32 %v6603_v19, %v6684_v58  ;;  %v6693_v55 = vmul.f32 0.01, %v6471_v5  ;;  %v6696_v31 = vmul.f32 0.01, %v6522_v61  ;;  %v6699_v14 = vmul.f32 0.01, %v6678_v10 }
 0x3a1   :  { %v8034_v44 = vmax.f32 %v6429_v36, %v6450_v11  ;;  %v8035_v2 = vmax.f32 %v6432_v54, %v6453_v33  ;;  %v2381_v17 = vmax.f32 %v6656_v4, %v2317_v24  ;;  %v6710_v19 = vadd.f32 %v6458_v30, %v6335_v52  ;;  %v6725_v54 = vld [vmem:[%s7831_s4] sm:$0xff] }
 0x3a2   :  { %v6714_v34 = vadd.f32 %v6458_v30, %v6337_v22  ;;  %v8036_v28 = vmax.f32 %v6435_v38, %v6456_v23  ;;  %v8037_v36 = vmax.f32 %v6438_v32, %v6461_v43  ;;  %v2365_v52 = vmax.f32 %v6471_v5, %v6693_v55 }
 0x3a3   :  { %2452 = vmatprep.subr.mxu0 %v8034_v44  ;;  %2529 = vmatprep.subr.mxu1 %v8035_v2  ;;  %v2348_v22 = vmax.f32 %v6522_v61, %v6696_v31  ;;  %v2350_v38 = vmax.f32 %v6678_v10, %v6699_v14  ;;  %v8038_v11 = vmax.f32 %v6481_v12, %v6498_v45  ;;  %v6740_v33 = vmul.f32 0.01, %v6710_v19  ;;  %v8053_v2 = vld [vmem:[#allocation26_spill] sm:$0xff] }
 0x3a4   :  { %2453 = vmatpush1.msra.mxu0 %v8036_v28  ;;  %2530 = vmatpush1.msra.mxu1 %v8037_v36  ;;  %v8039_v32 = vmax.f32 %v6487_v42, %v6512_v49  ;;  %v6743_v23 = vmul.f32 0.01, %v6714_v34  ;;  %v8040_v43 = vsub.f32 %v7991_v20, %v6364_v47  ;;  %v8041_v4 = vsub.f32 %v7992_v8, %v6364_v47 }
 0x3a5   :  { %2454 = vmatprep.subr.mxu0 %v8038_v11  ;;  %v8042_v49 = vmax.f32 %v6491_v13, %v6515_v6  ;;  %v8043_v45 = vmax.f32 %v6495_v3, %v6518_v53  ;;  %v8044_v42 = vsub.f32 %v7993_v26, %v6364_v47  ;;  %v8045_v25 = vsub.f32 %v7994_v0, %v6364_v47 }
 0x3a6   :  { %2531 = vmatprep.subr.mxu1 %v8039_v32  ;;  %v2112_v5 = vmul.f32 %v6591_v63, %v8040_v43  ;;  %v2114_v12 = vmul.f32 %v6591_v63, %v8041_v4  ;;  %v8047_v40 = vsub.f32 %v8046_v50, %v8007_v37  ;;  %v2347_v53 = vmax.f32 %v6710_v19, %v6740_v33  ;;  %v8056_v32 = vld [vmem:[#allocation47_spill] sm:$0xff]  ;;  %v8059_v43 = vld [vmem:[#allocation48_spill] sm:$0xff] }
 0x3a7   :  { %2455 = vmatpush1.msra.mxu0 %v8042_v49  ;;  %2532 = vmatpush1.msra.mxu1 %v8043_v45  ;;  %v2111_v20 = vmul.f32 %v6591_v63, %v8044_v42  ;;  %v2113_v8 = vmul.f32 %v6591_v63, %v8045_v25  ;;  %v2349_v3 = vmax.f32 %v6714_v34, %v6743_v23  ;;  %v8058_v23 = vld [vmem:[#allocation34_spill] sm:$0xff]  ;;  %v8061_v45 = vld [vmem:[#allocation36_spill] sm:$0xff]  ;;  %v8062_v42 = vld [vmem:[#allocation49_spill] sm:$0xff] }
 0x3a8   :  { %v2096_v13 = vmul.f32 %v6507_v7, %v8047_v40  ;;  %4791 = vmatmul.mubr.msk.f32.vlgmr.msra.gmra.mxu0 %vm2417_vm2, %v6725_v54  ;;  %4793 = vmatmul.mubr.msk.f32.vlgmr.msra.gmra.mxu1 %vm2417_vm2, %v6725_v54  ;;  %v2192_v26 = vmul.f32 %v8028_v1, %v2112_v5  ;;  %v2194_v0 = vmul.f32 %v8028_v1, %v2114_v12 }
 0x3a9   :  { %2602 = vmatprep.subr.mxu0 %v2396_v18  ;;  %2679 = vmatprep.subr.mxu1 %v2398_v62  ;;  %v2191_v6 = vmul.f32 %v8028_v1, %v2111_v20  ;;  %v2193_v15 = vmul.f32 %v8028_v1, %v2113_v8  ;;  %v8049_v9 = vsub.f32 %v8048_v21, %v8007_v37  ;;  %v8050_v62 = vmov 0.0  }
 0x3aa   :  { %2603 = vmatpush1.msra.mxu0 %v2395_v59  ;;  %2680 = vmatpush1.msra.mxu1 %v2397_v41  ;;  %v2272_v57 = vadd.f32 %v8033_v48, %v2192_v26  ;;  %v2176_v29 = vmul.f32 %v6509_v46, %v2096_v13  ;;  %v2274_v39 = vadd.f32 %v8033_v48, %v2194_v0  ;;  %v8064_v13 = vld [vmem:[#allocation4_spill] sm:$0xff]  ;;  %v8065_v26 = vld [vmem:[#allocation35_spill] sm:$0xff] }
 0x3ab   :  { %v2098_v60 = vmul.f32 %v6507_v7, %v8049_v9  ;;  %2604 = vmatprep.subr.mxu0 %v2380_v35  ;;  %2681 = vmatprep.subr.mxu1 %v2382_v51  ;;  %v2271_v10 = vadd.f32 %v8033_v48, %v2191_v6  ;;  %v2273_v18 = vadd.f32 %v8033_v48, %v2193_v15  ;;  %v8051_v35 = vld [vmem:[#allocation21_spill] sm:$0xff] }
 0x3ac   :  { %2494 = vmatprep.mubr.f32.mxu0 %v8050_v62  ;;  %2571 = vmatprep.mubr.f32.mxu1 %v8050_v62  ;;  %v2336_v59 = vmul.f32 0.01, %v2272_v57  ;;  %v2256_v58 = vadd.f32 %v8023_v56, %v2176_v29  ;;  %v8052_v51 = vsub.f32 %v8051_v35, %v8007_v37  ;;  %v2338_v55 = vmul.f32 0.01, %v2274_v39  ;;  %v8066_v6 = vld [vmem:[#allocation5_spill] sm:$0xff] }
 0x3ad   :  { %v2178_v41 = vmul.f32 %v6509_v46, %v2098_v60  ;;  %2605 = vmatpush1.msra.mxu0 %v2379_v27  ;;  %2682 = vmatpush1.msra.mxu1 %v2381_v17  ;;  %v2335_v14 = vmul.f32 0.01, %v2271_v10  ;;  %v2337_v44 = vmul.f32 0.01, %v2273_v18  ;;  %v8054_v19 = vsub.f32 %v8053_v2, %v8007_v37  ;;  %v8055_v17 = vld [vmem:[#allocation37_spill] sm:$0xff]  ;;  %v8068_v60 = vld [vmem:[#allocation10_spill] sm:$0xff] }
 0x3ae   :  { %v2095_v24 = vmul.f32 %v6507_v7, %v8052_v51  ;;  %4792 = vmatmul.mubr.msk.f32.gmra.mxu0 %vm2417_vm2, %v6792_v16  ;;  %4794 = vmatmul.mubr.msk.f32.gmra.mxu1 %vm2417_vm2, %v6792_v16  ;;  %v2400_v28 = vmax.f32 %v2272_v57, %v2336_v59  ;;  %v2320_v36 = vmul.f32 0.01, %v2256_v58  ;;  %v8057_v33 = vmax.f32 %v8055_v17, %v8056_v32  ;;  %v8067_v57 = vld [vmem:[#allocation16_spill] sm:$0xff] }
 0x3af   :  { %v2097_v34 = vmul.f32 %v6507_v7, %v8054_v19  ;;  %v2258_v11 = vadd.f32 %v8023_v56, %v2178_v41  ;;  %v8060_v5 = vmax.f32 %v8058_v23, %v8059_v43  ;;  %v2402_v4 = vmax.f32 %v2274_v39, %v2338_v55  ;;  %2642 = vmatprep.mubr.f32.mxu0 %v8050_v62  ;;  %v8069_v39 = vld [vmem:[#allocation25_spill] sm:$0xff]  ;;  %v8071_v2 = vld [vmem:[#allocation8_spill] sm:$0xff] }
 0x3b0   :  { %v2175_v27 = vmul.f32 %v6509_v46, %v2095_v24  ;;  %2606 = vmatprep.subr.mxu0 %v8057_v33  ;;  %v2399_v12 = vmax.f32 %v2271_v10, %v2335_v14  ;;  %v2401_v49 = vmax.f32 %v2273_v18, %v2337_v44  ;;  %v8063_v20 = vmax.f32 %v8061_v45, %v8062_v42  ;;  %v8075_v23 = vld [vmem:[#allocation41_spill] sm:$0xff] }
 0x3b1   :  { %2683 = vmatprep.subr.mxu1 %v8060_v5  ;;  %v2384_v25 = vmax.f32 %v2256_v58, %v2320_v36  ;;  %v2322_v8 = vmul.f32 0.01, %v2258_v11  ;;  %v2177_v40 = vmul.f32 %v6509_v46, %v2097_v34  ;;  %v2240_v0 = vadd.f32 %v8065_v26, %v8064_v13  ;;  %2719 = vmatprep.mubr.f32.mxu1 %v8050_v62  ;;  %v8070_v58 = vld [vmem:[#allocation3_spill] sm:$0xff] }
 0x3b2   :  { %2607 = vmatpush1.msra.mxu0 %v8063_v20  ;;  %2684 = vmatpush1.msra.mxu1 %v2365_v52  ;;  %v2255_v50 = vadd.f32 %v8023_v56, %v2175_v27  ;;  %v2242_v15 = vadd.f32 %v8065_v26, %v8066_v6  ;;  %v2239_v52 = vadd.f32 %v8065_v26, %v8067_v57  ;;  %v8072_v36 = vld [vmem:[#allocation11_spill] sm:$0xff]  ;;  %v8079_v20 = vld [vmem:[#allocation40_spill] sm:$0xff] }
 0x3b3   :  { %2608 = vmatprep.subr.mxu0 %v2348_v22  ;;  %2685 = vmatprep.subr.mxu1 %v2350_v38  ;;  %v2386_v29 = vmax.f32 %v2258_v11, %v2322_v8  ;;  %v2257_v9 = vadd.f32 %v8023_v56, %v2177_v40  ;;  %v2241_v61 = vadd.f32 %v8065_v26, %v8068_v60  ;;  %v2304_v31 = vmul.f32 0.01, %v2240_v0 }
 0x3b4   :  { %2609 = vmatpush1.msra.mxu0 %v2347_v53  ;;  %v2319_v21 = vmul.f32 0.01, %v2255_v50  ;;  %2686 = vmatpush1.msra.mxu1 %v2349_v3  ;;  %v2306_v22 = vmul.f32 0.01, %v2242_v15  ;;  %v2303_v38 = vmul.f32 0.01, %v2239_v52  ;;  %v2224_v10 = vadd.f32 %v6458_v30, %v8069_v39 }
 0x3b5   :  { %4795 = vmatmul.mubr.msk.f32.vlgmr.msra.gmra.mxu0 %vm2417_vm2, %v6725_v54  ;;  %4797 = vmatmul.mubr.msk.f32.vlgmr.msra.gmra.mxu1 %vm2417_vm2, %v6725_v54  ;;  %v2321_v18 = vmul.f32 0.01, %v2257_v9  ;;  %v2305_v59 = vmul.f32 0.01, %v2241_v61  ;;  %v2226_v3 = vadd.f32 %v6458_v30, %v8070_v58  ;;  %v2368_v41 = vmax.f32 %v2240_v0, %v2304_v31 }
 0x3b6   :  { %v2383_v53 = vmax.f32 %v2255_v50, %v2319_v21  ;;  %2756 = vmatprep.subr.mxu0 %v2400_v28  ;;  %2833 = vmatprep.subr.mxu1 %v2402_v4  ;;  %v2370_v35 = vmax.f32 %v2242_v15, %v2306_v22  ;;  %v2367_v51 = vmax.f32 %v2239_v52, %v2303_v38  ;;  %v2288_v24 = vmul.f32 0.01, %v2224_v10  ;;  %v8073_v28 = vld [vmem:[#allocation39_spill] sm:$0xff]  ;;  %v8077_v4 = vld [vmem:[#allocation38_spill] sm:$0xff] }
 0x3b7   :  { %2757 = vmatpush1.msra.mxu0 %v2399_v12  ;;  %2834 = vmatpush1.msra.mxu1 %v2401_v49  ;;  %v2385_v55 = vmax.f32 %v2257_v9, %v2321_v18  ;;  %v2369_v14 = vmax.f32 %v2241_v61, %v2305_v59  ;;  %v2290_v44 = vmul.f32 0.01, %v2226_v3  ;;  %v2223_v19 = vadd.f32 %v6458_v30, %v8071_v2  ;;  %v8081_v50 = vld [vmem:[#allocation31_spill] sm:$0xff]  ;;  %v8083_v61 = vld [vmem:[#allocation33_spill] sm:$0xff]  ;;  %v8085_v38 = vld [vmem:[#allocation30_spill] sm:$0xff] }
 0x3b8   :  { %2758 = vmatprep.subr.mxu0 %v2384_v25  ;;  %2835 = vmatprep.subr.mxu1 %v2386_v29  ;;  %v2352_v34 = vmax.f32 %v2224_v10, %v2288_v24  ;;  %v2225_v11 = vadd.f32 %v6458_v30, %v8072_v36  ;;  %v8074_v27 = vsub.f32 %v8073_v28, %v6364_v47  ;;  %v8087_v59 = vld [vmem:[#allocation32_spill] sm:$0xff]  ;;  %v8089_v36 = vld [vmem:[#allocation22_spill] sm:$0xff] }
 0x3b9   :  { %2648 = vmatprep.mubr.f32.mxu0 %v8050_v62  ;;  %2725 = vmatprep.mubr.f32.mxu1 %v8050_v62  ;;  %v2354_v32 = vmax.f32 %v2226_v3, %v2290_v44  ;;  %v2287_v33 = vmul.f32 0.01, %v2223_v19  ;;  %v8076_v43 = vsub.f32 %v8075_v23, %v6364_v47  ;;  %v8078_v12 = vsub.f32 %v8077_v4, %v6364_v47  ;;  %v8093_v4 = vld [vmem:[#allocation14_spill] sm:$0xff] }
 0x3ba   :  { %v2116_v17 = vmul.f32 %v6591_v63, %v8074_v27  ;;  %2759 = vmatpush1.msra.mxu0 %v2383_v53  ;;  %2836 = vmatpush1.msra.mxu1 %v2385_v55  ;;  %v2289_v45 = vmul.f32 0.01, %v2225_v11  ;;  %v8080_v25 = vsub.f32 %v8079_v20, %v6364_v47  ;;  %v8082_v40 = vsub.f32 %v8081_v50, %v8007_v37  ;;  %v8090_v27 = vld [vmem:[#allocation28_spill] sm:$0xff] }
 0x3bb   :  { %v2118_v5 = vmul.f32 %v6591_v63, %v8076_v43  ;;  %v2115_v49 = vmul.f32 %v6591_v63, %v8078_v12  ;;  %4796 = vmatmul.mubr.msk.f32.gmra.mxu0 %vm2417_vm2, %v6792_v16  ;;  %4798 = vmatmul.mubr.msk.f32.gmra.mxu1 %vm2417_vm2, %v6792_v16  ;;  %v2351_v0 = vmax.f32 %v2223_v19, %v2287_v33  ;;  %v8092_v43 = vld [vmem:[#allocation46_spill] sm:$0xff] }
 0x3bc   :  { %v2196_v42 = vmul.f32 %v8028_v1, %v2116_v17  ;;  %v2117_v8 = vmul.f32 %v6591_v63, %v8080_v25  ;;  %v2100_v13 = vmul.f32 %v6507_v7, %v8082_v40  ;;  %2760 = vmatprep.subr.mxu0 %v2368_v41  ;;  %2837 = vmatprep.subr.mxu1 %v2370_v35 }
 0x3bd   :  { %v2198_v6 = vmul.f32 %v8028_v1, %v2118_v5  ;;  %v2195_v15 = vmul.f32 %v8028_v1, %v2115_v49  ;;  %v2353_v47 = vmax.f32 %v2225_v11, %v2289_v45  ;;  %2761 = vmatpush1.msra.mxu0 %v2367_v51  ;;  %2838 = vmatpush1.msra.mxu1 %v2369_v14 }
 0x3be   :  { %v2276_v63 = vadd.f32 %v8033_v48, %v2196_v42  ;;  %v2197_v57 = vmul.f32 %v8028_v1, %v2117_v8  ;;  %v2180_v21 = vmul.f32 %v6509_v46, %v2100_v13  ;;  %2762 = vmatprep.subr.mxu0 %v2352_v34  ;;  %2839 = vmatprep.subr.mxu1 %v2354_v32  ;;  %v8091_v32 = vld [vmem:[#allocation45_spill] sm:$0xff] }
 0x3bf   :  { %v2278_v52 = vadd.f32 %v8033_v48, %v2198_v6  ;;  %v2275_v29 = vadd.f32 %v8033_v48, %v2195_v15  ;;  %v8084_v31 = vsub.f32 %v8083_v61, %v8007_v37  ;;  %v8086_v1 = vsub.f32 %v8085_v38, %v8007_v37  ;;  %2763 = vmatpush1.msra.mxu0 %v2351_v0  ;;  %v8094_v0 = vld [vmem:[#allocation19_spill] sm:$0xff]  ;;  %v6951_v38 = vpop.permute.xlu0 %2410 }
 0x3c0   :  { %v2340_v9 = vmul.f32 0.01, %v2276_v63  ;;  %v2277_v60 = vadd.f32 %v8033_v48, %v2197_v57  ;;  %2796 = vmatprep.mubr.f32.mxu0 %v8050_v62  ;;  %v2260_v18 = vadd.f32 %v8023_v56, %v2180_v21  ;;  %v8088_v48 = vsub.f32 %v8087_v59, %v8007_v37  ;;  %2840 = vmatpush1.msra.mxu1 %v2353_v47 }
 0x3c1   :  { %v2102_v22 = vmul.f32 %v6507_v7, %v8084_v31  ;;  %v2099_v39 = vmul.f32 %v6507_v7, %v8086_v1  ;;  %v2342_v10 = vmul.f32 0.01, %v2278_v52  ;;  %v2339_v53 = vmul.f32 0.01, %v2275_v29  ;;  %2873 = vmatprep.mubr.f32.mxu1 %v8050_v62  ;;  %4799 = vmatmul.mubr.msk.f32.vlgmr.msra.gmra.mxu0 %vm2417_vm2, %v6725_v54 }
 0x3c2   :  { %v2101_v58 = vmul.f32 %v6507_v7, %v8088_v48  ;;  %v2404_v3 = vmax.f32 %v2276_v63, %v2340_v9  ;;  %v2341_v41 = vmul.f32 0.01, %v2277_v60  ;;  %4801 = vmatmul.mubr.msk.f32.vlgmr.msra.gmra.mxu1 %vm2417_vm2, %v6725_v54  ;;  %v2324_v37 = vmul.f32 0.01, %v2260_v18  ;;  %2802 = vmatprep.mubr.f32.mxu0 %v8050_v62  ;;  %v8095_v63 = vld [vmem:[#allocation24_spill] sm:$0xff]  ;;  %v6962_v48 = vpop.permute.xlu1 %2414 }
 0x3c3   :  { %v2182_v35 = vmul.f32 %v6509_v46, %v2102_v22  ;;  %v2179_v51 = vmul.f32 %v6509_v46, %v2099_v39  ;;  %v2406_v24 = vmax.f32 %v2278_v52, %v2342_v10  ;;  %v2403_v55 = vmax.f32 %v2275_v29, %v2339_v53  ;;  %2879 = vmatprep.mubr.f32.mxu1 %v8050_v62  ;;  %v8096_v29 = vld [vmem:[#allocation18_spill] sm:$0xff] }
 0x3c4   :  { %v2181_v7 = vmul.f32 %v6509_v46, %v2101_v58  ;;  %2910 = vmatprep.subr.mxu0 %v2404_v3  ;;  %v2405_v14 = vmax.f32 %v2277_v60, %v2341_v41  ;;  %v2388_v19 = vmax.f32 %v2260_v18, %v2324_v37  ;;  %v2244_v11 = vadd.f32 %v8065_v26, %v8089_v36 }
 0x3c5   :  { %v2262_v44 = vadd.f32 %v8023_v56, %v2182_v35  ;;  %v2259_v2 = vadd.f32 %v8023_v56, %v2179_v51  ;;  %2987 = vmatprep.subr.mxu1 %v2406_v24  ;;  %2911 = vmatpush1.msra.mxu0 %v2403_v55  ;;  %v2246_v17 = vadd.f32 %v8065_v26, %v8090_v27 }
 0x3c6   :  { %v2261_v34 = vadd.f32 %v8023_v56, %v2181_v7  ;;  %2988 = vmatpush1.msra.mxu1 %v2405_v14  ;;  %v2243_v33 = vadd.f32 %v8065_v26, %v8091_v32  ;;  %2912 = vmatprep.subr.mxu0 %v2388_v19  ;;  %v2308_v56 = vmul.f32 0.01, %v2244_v11  ;;  %v2245_v5 = vadd.f32 %v8065_v26, %v8092_v43 }
 0x3c7   :  { %v2326_v28 = vmul.f32 0.01, %v2262_v44  ;;  %v2323_v46 = vmul.f32 0.01, %v2259_v2  ;;  %4800 = vmatmul.mubr.msk.f32.gmra.mxu0 %vm2417_vm2, %v6792_v16  ;;  %v2228_v12 = vadd.f32 %v6458_v30, %v8093_v4  ;;  %4802 = vmatmul.mubr.msk.f32.gmra.mxu1 %vm2417_vm2, %v6792_v16  ;;  %v2310_v42 = vmul.f32 0.01, %v2246_v17 }
 0x3c8   :  { %v2325_v23 = vmul.f32 0.01, %v2261_v34  ;;  %v2307_v20 = vmul.f32 0.01, %v2243_v33  ;;  %2950 = vmatprep.mubr.f32.mxu0 %v8050_v62  ;;  %v2372_v8 = vmax.f32 %v2244_v11, %v2308_v56  ;;  %v2309_v50 = vmul.f32 0.01, %v2245_v5  ;;  %3027 = vmatprep.mubr.f32.mxu1 %v8050_v62 }
 0x3c9   :  { %v2390_v49 = vmax.f32 %v2262_v44, %v2326_v28  ;;  %v2387_v45 = vmax.f32 %v2259_v2, %v2323_v46  ;;  %v2292_v40 = vmul.f32 0.01, %v2228_v12  ;;  %v2374_v26 = vmax.f32 %v2246_v17, %v2310_v42 }
 0x3ca   :  { %v2389_v25 = vmax.f32 %v2261_v34, %v2325_v23  ;;  %v2371_v13 = vmax.f32 %v2243_v33, %v2307_v20  ;;  %v2230_v6 = vadd.f32 %v6458_v30, %v8094_v0  ;;  %v2373_v15 = vmax.f32 %v2245_v5, %v2309_v50 }
 0x3cb   :  { %2989 = vmatprep.subr.mxu1 %v2390_v49  ;;  %2913 = vmatpush1.msra.mxu0 %v2387_v45  ;;  %v2356_v47 = vmax.f32 %v2228_v12, %v2292_v40  ;;  %v2227_v57 = vadd.f32 %v6458_v30, %v8095_v63  ;;  %v2229_v21 = vadd.f32 %v6458_v30, %v8096_v29  ;;  %v5006_v30 = vmov 8  }
 0x3cc   :  { %2990 = vmatpush1.msra.mxu1 %v2389_v25  ;;  %2914 = vmatprep.subr.mxu0 %v2372_v8  ;;  %v2294_v52 = vmul.f32 0.01, %v2230_v6 }
 0x3cd   :  { %2991 = vmatprep.subr.mxu1 %v2374_v26  ;;  %2915 = vmatpush1.msra.mxu0 %v2371_v13  ;;  %v2291_v9 = vmul.f32 0.01, %v2227_v57  ;;  %v2293_v61 = vmul.f32 0.01, %v2229_v21 }
 0x3ce   :  { %2992 = vmatpush1.msra.mxu1 %v2373_v15  ;;  %2916 = vmatprep.subr.mxu0 %v2356_v47  ;;  %v2358_v60 = vmax.f32 %v2230_v6, %v2294_v52 }
 0x3cf   :  { %v2355_v31 = vmax.f32 %v2227_v57, %v2291_v9  ;;  %v2357_v22 = vmax.f32 %v2229_v21, %v2293_v61  ;;  %4965 = vset.pattern.permute.xlu1 %v5006_v30 }
 0x3d0   :  { %2993 = vmatprep.subr.mxu1 %v2358_v60 }
 0x3d1   :  { %2917 = vmatpush1.msra.mxu0 %v2355_v31  ;;  %2994 = vmatpush1.msra.mxu1 %v2357_v22 }
 0x3d2   :  { %4803 = vmatmul.mubr.msk.f32.vlgmr.msra.gmra.mxu0 %vm2417_vm2, %v6725_v54  ;;  %4805 = vmatmul.mubr.msk.f32.vlgmr.msra.gmra.mxu1 %vm2417_vm2, %v6725_v54  ;;  %v4995_v54 = vld [vmem:[%s7829_s6 + $0x8] sm:$0xff] }
 0x3d3   :  { %2956 = vmatprep.mubr.f32.mxu0 %v8050_v62  ;;  %3033 = vmatprep.mubr.f32.mxu1 %v8050_v62 }
 0x3d4   :  { %3261 = vperm.xlu1 %4965, %v4995_v54  }
 0x3d6   :  { %4804 = vmatmul.mubr.msk.f32.gmra.mxu0 %vm2417_vm2, %v6792_v16  ;;  %4806 = vmatmul.mubr.msk.f32.gmra.mxu1 %vm2417_vm2, %v6792_v16 }
 0x3d7   :  { %3434 = vmatprep.mubr.f32.mxu0 %v8050_v62  ;;  %3505 = vmatprep.mubr.f32.mxu1 %v8050_v62 }
 0x468   :  { %v2490_v1 = vpop.f32.mrf.mxu0  ;;  %v2567_v39 = vpop.f32.mrf.mxu1 }
 0x469   :  { %v6954_v10 = vadd.f32 %v2490_v1, %v6951_v38  ;;  %v6957_v16 = vadd.f32 %v2567_v39, %v6951_v38 }
 0x46a   :  { %v2492_v53 = vpop.f32.mrf.mxu0  ;;  %v2569_v18 = vpop.f32.mrf.mxu1 }
 0x46b   :  { %v6960_v59 = vadd.f32 %v2492_v53, %v6951_v38  ;;  %v3076_v3 = vmul.f32 %v6954_v10, %v6954_v10  ;;  %v3078_v35 = vmul.f32 %v6957_v16, %v6957_v16  ;;  %v6973_v51 = vadd.f32 %v2569_v18, %v6951_v38 }
 0x46d   :  { %v3040_v58 = vadd.f32 %v6960_v59, %v6954_v10  ;;  %v3077_v41 = vmul.f32 %v6960_v59, %v6960_v59  ;;  %v3079_v36 = vmul.f32 %v6973_v51, %v6973_v51 }
 0x46e   :  { %v2496_v24 = vpop.f32.mrf.mxu0  ;;  %v2573_v55 = vpop.f32.mrf.mxu1 }
 0x46f   :  { %v3108_v37 = vadd.f32 %v3077_v41, %v3076_v3  ;;  %v3041_v7 = vadd.f32 %v3040_v58, %v6957_v16  ;;  %v6977_v14 = vadd.f32 %v2496_v24, %v6962_v48  ;;  %v6985_v11 = vadd.f32 %v2573_v55, %v6962_v48 }
 0x470   :  { %v2498_v44 = vpop.f32.mrf.mxu0  ;;  %v2575_v2 = vpop.f32.mrf.mxu1 }
 0x471   :  { %v3109_v19 = vadd.f32 %v3108_v37, %v3078_v35  ;;  %v6980_v34 = vadd.f32 %v2498_v44, %v6962_v48  ;;  %v3042_v28 = vadd.f32 %v3041_v7, %v6973_v51  ;;  %v3092_v27 = vmul.f32 %v6977_v14, %v6977_v14 }
 0x472   :  { %v6995_v23 = vadd.f32 %v2575_v2, %v6962_v48  ;;  %v3094_v42 = vmul.f32 %v6985_v11, %v6985_v11 }
 0x473   :  { %v3057_v46 = vadd.f32 %v6980_v34, %v6977_v14  ;;  %v3093_v17 = vmul.f32 %v6980_v34, %v6980_v34  ;;  %v3110_v56 = vadd.f32 %v3109_v19, %v3079_v36 }
 0x474   :  { %v3095_v50 = vmul.f32 %v6995_v23, %v6995_v23 }
 0x475   :  { %v2644_v32 = vpop.f32.mrf.mxu0  ;;  %v2721_v33 = vpop.f32.mrf.mxu1  ;;  %v3058_v5 = vadd.f32 %v3057_v46, %v6985_v11  ;;  %v3125_v4 = vadd.f32 %v3093_v17, %v3092_v27 }
 0x476   :  { %v6998_v43 = vadd.f32 %v2644_v32, %v6951_v38  ;;  %v7002_v12 = vadd.f32 %v2721_v33, %v6951_v38 }
 0x477   :  { %v2646_v49 = vpop.f32.mrf.mxu0  ;;  %v2723_v45 = vpop.f32.mrf.mxu1  ;;  %v3126_v40 = vadd.f32 %v3125_v4, %v3094_v42  ;;  %v3059_v6 = vadd.f32 %v3058_v5, %v6995_v23 }
 0x478   :  { %v3043_v20 = vadd.f32 %v3042_v28, %v6998_v43  ;;  %v3080_v25 = vmul.f32 %v6998_v43, %v6998_v43  ;;  %v7010_v8 = vadd.f32 %v2646_v49, %v6951_v38  ;;  %v3082_v15 = vmul.f32 %v7002_v12, %v7002_v12 }
 0x479   :  { %v7021_v47 = vadd.f32 %v2723_v45, %v6951_v38  ;;  %v3127_v9 = vadd.f32 %v3126_v40, %v3095_v50 }
 0x47a   :  { %v3111_v26 = vadd.f32 %v3110_v56, %v3080_v25  ;;  %v3044_v13 = vadd.f32 %v3043_v20, %v7010_v8  ;;  %v3081_v0 = vmul.f32 %v7010_v8, %v7010_v8 }
 0x47b   :  { %v2650_v63 = vpop.f32.mrf.mxu0  ;;  %v2727_v57 = vpop.f32.mrf.mxu1  ;;  %v3083_v53 = vmul.f32 %v7021_v47, %v7021_v47 }
 0x47c   :  { %v3112_v52 = vadd.f32 %v3111_v26, %v3081_v0  ;;  %v3045_v29 = vadd.f32 %v3044_v13, %v7002_v12  ;;  %v7025_v21 = vadd.f32 %v2650_v63, %v6962_v48  ;;  %v7031_v54 = vadd.f32 %v2727_v57, %v6962_v48 }
 0x47d   :  { %v2652_v60 = vpop.f32.mrf.mxu0  ;;  %v2729_v61 = vpop.f32.mrf.mxu1 }
 0x47e   :  { %v3113_v31 = vadd.f32 %v3112_v52, %v3082_v15  ;;  %v3060_v22 = vadd.f32 %v3059_v6, %v7025_v21  ;;  %v3096_v30 = vmul.f32 %v7025_v21, %v7025_v21  ;;  %v7034_v1 = vadd.f32 %v2652_v60, %v6962_v48 }
 0x47f   :  { %v3046_v39 = vadd.f32 %v3045_v29, %v7021_v47  ;;  %v7043_v41 = vadd.f32 %v2729_v61, %v6962_v48  ;;  %v3098_v7 = vmul.f32 %v7031_v54, %v7031_v54 }
 0x480   :  { %v3128_v18 = vadd.f32 %v3127_v9, %v3096_v30  ;;  %v3061_v58 = vadd.f32 %v3060_v22, %v7034_v1  ;;  %v3097_v3 = vmul.f32 %v7034_v1, %v7034_v1  ;;  %v3114_v55 = vadd.f32 %v3113_v31, %v3083_v53 }
 0x481   :  { %v2798_v35 = vpop.f32.mrf.mxu0  ;;  %v3099_v32 = vmul.f32 %v7043_v41, %v7043_v41 }
 0x482   :  { %v2875_v24 = vpop.f32.mrf.mxu1  ;;  %v7046_v37 = vadd.f32 %v2798_v35, %v6951_v38  ;;  %v3129_v44 = vadd.f32 %v3128_v18, %v3097_v3  ;;  %v3062_v2 = vadd.f32 %v3061_v58, %v7031_v54 }
 0x483   :  { %v2800_v19 = vpop.f32.mrf.mxu0  ;;  %v7061_v4 = vadd.f32 %v2875_v24, %v6951_v38 }
 0x484   :  { %v2877_v36 = vpop.f32.mrf.mxu1  ;;  %v3047_v28 = vadd.f32 %v3046_v39, %v7046_v37  ;;  %v3084_v46 = vmul.f32 %v7046_v37, %v7046_v37  ;;  %v7055_v27 = vadd.f32 %v2800_v19, %v6951_v38  ;;  %v3063_v17 = vadd.f32 %v3062_v2, %v7043_v41 }
 0x485   :  { %v3130_v33 = vadd.f32 %v3129_v44, %v3098_v7  ;;  %v3086_v6 = vmul.f32 %v7061_v4, %v7061_v4  ;;  %v7081_v57 = vadd.f32 %v2877_v36, %v6951_v38 }
 0x486   :  { %v3115_v5 = vadd.f32 %v3114_v55, %v3084_v46  ;;  %v3085_v49 = vmul.f32 %v7055_v27, %v7055_v27  ;;  %v3048_v20 = vadd.f32 %v3047_v28, %v7055_v27 }
 0x487   :  { %v2804_v56 = vpop.f32.mrf.mxu0  ;;  %v3131_v42 = vadd.f32 %v3130_v33, %v3099_v32  ;;  %v2881_v25 = vpop.f32.mrf.mxu1  ;;  %v3087_v53 = vmul.f32 %v7081_v57, %v7081_v57 }
 0x488   :  { %v7066_v45 = vadd.f32 %v2804_v56, %v6962_v48  ;;  %v3116_v13 = vadd.f32 %v3115_v5, %v3085_v49  ;;  %v7078_v63 = vadd.f32 %v2881_v25, %v6962_v48  ;;  %v3049_v52 = vadd.f32 %v3048_v20, %v7061_v4 }
 0x489   :  { %v2806_v50 = vpop.f32.mrf.mxu0  ;;  %v2883_v60 = vpop.f32.mrf.mxu1 }
 0x48a   :  { %v3064_v40 = vadd.f32 %v3063_v17, %v7066_v45  ;;  %v3100_v26 = vmul.f32 %v7066_v45, %v7066_v45  ;;  %v7073_v0 = vadd.f32 %v2806_v50, %v6962_v48  ;;  %v3117_v61 = vadd.f32 %v3116_v13, %v3086_v6 }
 0x48b   :  { %v3102_v22 = vmul.f32 %v7078_v63, %v7078_v63  ;;  %v7090_v30 = vadd.f32 %v2883_v60, %v6962_v48  ;;  %v3050_v39 = vadd.f32 %v3049_v52, %v7081_v57 }
 0x48c   :  { %v3132_v15 = vadd.f32 %v3131_v42, %v3100_v26  ;;  %v3065_v29 = vadd.f32 %v3064_v40, %v7073_v0  ;;  %v3101_v9 = vmul.f32 %v7073_v0, %v7073_v0  ;;  %v3118_v35 = vadd.f32 %v3117_v61, %v3087_v53 }
 0x48d   :  { %v3103_v7 = vmul.f32 %v7090_v30, %v7090_v30 }
 0x48e   :  { %v3133_v31 = vadd.f32 %v3132_v15, %v3101_v9  ;;  %v3066_v18 = vadd.f32 %v3065_v29, %v7078_v63 }
 0x490   :  { %v3134_v58 = vadd.f32 %v3133_v31, %v3102_v22  ;;  %v3067_v2 = vadd.f32 %v3066_v18, %v7090_v30 }
 0x492   :  { %v2952_v3 = vpop.f32.mrf.mxu0  ;;  %v3029_v55 = vpop.f32.mrf.mxu1  ;;  %v3135_v17 = vadd.f32 %v3134_v58, %v3103_v7 }
 0x493   :  { %v7097_v24 = vadd.f32 %v2952_v3, %v6951_v38  ;;  %v7109_v32 = vadd.f32 %v3029_v55, %v6951_v38 }
 0x494   :  { %v2954_v44 = vpop.f32.mrf.mxu0  ;;  %v3031_v46 = vpop.f32.mrf.mxu1 }
 0x495   :  { %v3051_v19 = vadd.f32 %v3050_v39, %v7097_v24  ;;  %v3088_v36 = vmul.f32 %v7097_v24, %v7097_v24  ;;  %v7106_v28 = vadd.f32 %v2954_v44, %v6951_v38  ;;  %v7118_v25 = vadd.f32 %v3031_v46, %v6951_v38  ;;  %v7156_v46 = vpop.permute.xlu1 %3221 }
 0x496   :  { %v2958_v33 = vpop.f32.mrf.mxu0  ;;  %v3035_v20 = vpop.f32.mrf.mxu1  ;;  %v3090_v52 = vmul.f32 %v7109_v32, %v7109_v32 }
 0x497   :  { %v3119_v56 = vadd.f32 %v3118_v35, %v3088_v36  ;;  %v3052_v5 = vadd.f32 %v3051_v19, %v7106_v28  ;;  %v3089_v49 = vmul.f32 %v7106_v28, %v7106_v28  ;;  %v7115_v42 = vadd.f32 %v2958_v33, %v6962_v48  ;;  %v7153_v19 = vld [vmem:[%s7829_s6] sm:$0x1] }
 0x498   :  { %v7121_v50 = vadd.f32 %v3035_v20, %v6962_v48  ;;  %v2960_v40 = vpop.f32.mrf.mxu0  ;;  %v3037_v29 = vpop.f32.mrf.mxu1  ;;  %v3091_v22 = vmul.f32 %v7118_v25, %v7118_v25  ;;  %v5007_v36 = vmov 9  }
 0x499   :  { %v3068_v26 = vadd.f32 %v3067_v2, %v7115_v42  ;;  %v3104_v13 = vmul.f32 %v7115_v42, %v7115_v42  ;;  %v7127_v6 = vadd.f32 %v2960_v40, %v6962_v48  ;;  %v3053_v15 = vadd.f32 %v3052_v5, %v7109_v32 }
 0x49a   :  { %v3120_v38 = vadd.f32 %v3119_v56, %v3089_v49  ;;  %v3106_v53 = vmul.f32 %v7121_v50, %v7121_v50  ;;  %v7141_v18 = vadd.f32 %v3037_v29, %v6962_v48  ;;  %v4996_v48 = vld [vmem:[%s7829_s6] sm:$0xff] }
 0x49b   :  { %v3136_v9 = vadd.f32 %v3135_v17, %v3104_v13  ;;  %v3069_v60 = vadd.f32 %v3068_v26, %v7127_v6  ;;  %v3105_v61 = vmul.f32 %v7127_v6, %v7127_v6  ;;  %v3054_v31 = vadd.f32 %v3053_v15, %v7118_v25  ;;  %v7158_v17 = vpop.permute.xlu1 %3261 }
 0x49c   :  { %v3121_v39 = vadd.f32 %v3120_v38, %v3090_v52  ;;  %v3107_v44 = vmul.f32 %v7141_v18, %v7141_v18 }
 0x49d   :  { %3055 = vadd.xlane.f32.xlu0 %v3054_v31  ;;  %v3070_v58 = vadd.f32 %v3069_v60, %v7121_v50  ;;  %v3137_v3 = vadd.f32 %v3136_v9, %v3105_v61 }
 0x49e   :  { %v3122_v35 = vadd.f32 %v3121_v39, %v3091_v22 }
 0x49f   :  { %v3071_v55 = vadd.f32 %v3070_v58, %v7141_v18  ;;  %v3138_v7 = vadd.f32 %v3137_v3, %v3106_v53 }
 0x4a1   :  { %3123 = vadd.xlane.f32.xlu0 %v3122_v35  ;;  %3072 = vadd.xlane.f32.xlu1 %v3071_v55  ;;  %v3139_v2 = vadd.f32 %v3138_v7, %v3107_v44 }
 0x4a5   :  { %3140 = vadd.xlane.f32.xlu1 %v3139_v2 }
 0x4b6   :  { %3257 = vperm.xlu1 %4965, %v4996_v48  }
 0x4b7   :  { %3217 = vperm.xlu0 %4964, %v4996_v48  }
 0x4ba   :  { %4966 = vset.pattern.permute.xlu1 %v5007_v36 }
 0x4bb   :  { %3364 = vperm.xlu1 %4966, %v7153_v19  }
 0x526   :  { %v3056_v33 = vpop.xlane.xlu0 %3055 }
 0x527   :  { %v7160_v56 = vmul.f32 0.00048828125, %v3056_v33 }
 0x529   :  { %v3144_v20 = vmul.f32 %v7160_v56, %v7160_v56  ;;  %v3149_v61 = vsub.f32 %v6960_v59, %v7160_v56  ;;  %v3151_v31 = vsub.f32 %v6973_v51, %v7160_v56  ;;  %v3148_v22 = vsub.f32 %v6954_v10, %v7160_v56 }
 0x52a   :  { %v3124_v5 = vpop.xlane.xlu0 %3123  ;;  %v3073_v49 = vpop.xlane.xlu1 %3072  ;;  %v3150_v39 = vsub.f32 %v6957_v16, %v7160_v56  ;;  %v3153_v53 = vsub.f32 %v7010_v8, %v7160_v56  ;;  %v3155_v58 = vsub.f32 %v7021_v47, %v7160_v56  ;;  %v3152_v3 = vsub.f32 %v6998_v43, %v7160_v56 }
 0x52b   :  { %v3142_v40 = vmul.f32 0.00048828125, %v3124_v5  ;;  %v7164_v26 = vmul.f32 0.00048828125, %v3073_v49  ;;  %v3154_v59 = vsub.f32 %v7002_v12, %v7160_v56 }
 0x52d   :  { %v3146_v13 = vsub.f32 %v3142_v40, %v3144_v20  ;;  %v3145_v29 = vmul.f32 %v7164_v26, %v7164_v26  ;;  %v3165_v47 = vsub.f32 %v6980_v34, %v7164_v26  ;;  %v3167_v43 = vsub.f32 %v6995_v23, %v7164_v26 }
 0x52e   :  { %v3141_v15 = vpop.xlane.xlu1 %3140  ;;  %v3164_v12 = vsub.f32 %v6977_v14, %v7164_v26  ;;  %v3166_v55 = vsub.f32 %v6985_v11, %v7164_v26  ;;  %v3169_v7 = vsub.f32 %v7034_v1, %v7164_v26  ;;  %v3171_v44 = vsub.f32 %v7043_v41, %v7164_v26 }
 0x52f   :  { %v3180_v52 = vadd.f32 1e-05, %v3146_v13  ;;  %v3143_v38 = vmul.f32 0.00048828125, %v3141_v15  ;;  %v3168_v34 = vsub.f32 %v7025_v21, %v7164_v26  ;;  %v3170_v23 = vsub.f32 %v7031_v54, %v7164_v26 }
 0x530   :  { %v3173_v14 = vsub.f32 %v7073_v0, %v7164_v26 }
 0x531   :  { %4981 = vrsqrt.f32 %v3180_v52  ;;  %v3147_v9 = vsub.f32 %v3143_v38, %v3145_v29 }
 0x532   :  { %v7226_v49 = vpop.permute.xlu0 %3217 }
 0x533   :  { %v3181_v60 = vadd.f32 1e-05, %v3147_v9 }
 0x535   :  { %4983 = vrsqrt.f32 %v3181_v60 }
 0x53e   :  { %v7224_v5 = vpop.eup %4981 }
 0x53f   :  { %v3185_v52 = vmul.f32 %v7224_v5, %v3149_v61  ;;  %v3187_v29 = vmul.f32 %v7224_v5, %v3151_v31  ;;  %v3184_v38 = vmul.f32 %v7224_v5, %v3148_v22  ;;  %v3186_v9 = vmul.f32 %v7224_v5, %v3150_v39 }
 0x540   :  { %v3189_v60 = vmul.f32 %v7224_v5, %v3153_v53  ;;  %v3191_v35 = vmul.f32 %v7224_v5, %v3155_v58  ;;  %v3188_v40 = vmul.f32 %v7224_v5, %v3152_v3  ;;  %v3190_v20 = vmul.f32 %v7224_v5, %v3154_v59  ;;  %v7256_v3 = vpop.permute.xlu1 %3257 }
 0x541   :  { %v3225_v13 = vmul.f32 %v7226_v49, %v3185_v52  ;;  %v3227_v15 = vmul.f32 %v7226_v49, %v3187_v29  ;;  %v3224_v61 = vmul.f32 %v7226_v49, %v3184_v38  ;;  %v3226_v31 = vmul.f32 %v7226_v49, %v3186_v9 }
 0x542   :  { %v7248_v33 = vpop.eup %4983  ;;  %v3229_v22 = vmul.f32 %v7226_v49, %v3189_v60  ;;  %v3231_v39 = vmul.f32 %v7226_v49, %v3191_v35  ;;  %v3228_v53 = vmul.f32 %v7226_v49, %v3188_v40  ;;  %v7254_v58 = vmul.f32 %v7226_v49, %v3190_v20 }
 0x543   :  { %v3201_v59 = vmul.f32 %v7248_v33, %v3165_v47  ;;  %v3203_v52 = vmul.f32 %v7248_v33, %v3167_v43  ;;  %v3200_v29 = vmul.f32 %v7248_v33, %v3164_v12  ;;  %v3202_v38 = vmul.f32 %v7248_v33, %v3166_v55 }
 0x544   :  { %v3265_v9 = vadd.f32 %v7256_v3, %v3225_v13  ;;  %v3267_v60 = vadd.f32 %v7256_v3, %v3227_v15  ;;  %v3264_v35 = vadd.f32 %v7256_v3, %v3224_v61  ;;  %v3266_v40 = vadd.f32 %v7256_v3, %v3226_v31 }
 0x545   :  { %v3241_v20 = vmul.f32 %v7156_v46, %v3201_v59  ;;  %v3243_v36 = vmul.f32 %v7156_v46, %v3203_v52  ;;  %v3240_v47 = vmul.f32 %v7156_v46, %v3200_v29  ;;  %v3242_v43 = vmul.f32 %v7156_v46, %v3202_v38 }
 0x546   :  { %v3297_v48 = vmul.f32 0.01, %v3265_v9  ;;  %v3299_v12 = vmul.f32 0.01, %v3267_v60  ;;  %v3296_v8 = vmul.f32 0.01, %v3264_v35  ;;  %v3205_v55 = vmul.f32 %v7248_v33, %v3169_v7 }
 0x547   :  { %v3281_v13 = vadd.f32 %v7158_v17, %v3241_v20  ;;  %v3283_v15 = vadd.f32 %v7158_v17, %v3243_v36  ;;  %v3280_v61 = vadd.f32 %v7158_v17, %v3240_v47  ;;  %v3282_v31 = vadd.f32 %v7158_v17, %v3242_v43 }
 0x548   :  { %v3329_v59 = vmax.f32 %v3265_v9, %v3297_v48  ;;  %v3331_v16 = vmax.f32 %v3267_v60, %v3299_v12  ;;  %v3328_v52 = vmax.f32 %v3264_v35, %v3296_v8  ;;  %v3298_v10 = vmul.f32 0.01, %v3266_v40 }
 0x549   :  { %v3313_v29 = vmul.f32 0.01, %v3281_v13  ;;  %v3315_v51 = vmul.f32 0.01, %v3283_v15  ;;  %v3312_v38 = vmul.f32 0.01, %v3280_v61  ;;  %v3245_v1 = vmul.f32 %v7156_v46, %v3205_v55 }
 0x54a   :  { %v3314_v11 = vmul.f32 0.01, %v3282_v31  ;;  %v3330_v2 = vmax.f32 %v3266_v40, %v3298_v10  ;;  %v3207_v7 = vmul.f32 %v7248_v33, %v3171_v44  ;;  %v3204_v48 = vmul.f32 %v7248_v33, %v3168_v34 }
 0x54b   :  { %v3345_v36 = vmax.f32 %v3281_v13, %v3313_v29  ;;  %v3347_v8 = vmax.f32 %v3283_v15, %v3315_v51  ;;  %v3344_v9 = vmax.f32 %v3280_v61, %v3312_v38  ;;  %v3285_v60 = vadd.f32 %v7158_v17, %v3245_v1 }
 0x54c   :  { %v3346_v35 = vmax.f32 %v3282_v31, %v3314_v11  ;;  %v3247_v20 = vmul.f32 %v7156_v46, %v3207_v7  ;;  %v3244_v10 = vmul.f32 %v7156_v46, %v3204_v48  ;;  %v3206_v41 = vmul.f32 %v7248_v33, %v3170_v23  ;;  %v7297_v11 = vld [vmem:[%s7832_s5] sm:$0x1] }
 0x54d   :  { %3398 = vmatprep.subr.mxu0 %v3345_v36  ;;  %3469 = vmatprep.subr.mxu1 %v3347_v8  ;;  %v3317_v21 = vmul.f32 0.01, %v3285_v60  ;;  %v3269_v44 = vadd.f32 %v7256_v3, %v3229_v22  ;;  %v3271_v51 = vadd.f32 %v7256_v3, %v3231_v39  ;;  %v3268_v34 = vadd.f32 %v7256_v3, %v3228_v53 }
 0x54e   :  { %3399 = vmatpush1.msra.mxu0 %v3344_v9  ;;  %3470 = vmatpush1.msra.mxu1 %v3346_v35  ;;  %v3287_v54 = vadd.f32 %v7158_v17, %v3247_v20  ;;  %v3284_v23 = vadd.f32 %v7158_v17, %v3244_v10  ;;  %v3246_v1 = vmul.f32 %v7156_v46, %v3206_v41 }
 0x54f   :  { %3400 = vmatprep.subr.mxu0 %v3329_v59  ;;  %3471 = vmatprep.subr.mxu1 %v3331_v16  ;;  %v3349_v22 = vmax.f32 %v3285_v60, %v3317_v21  ;;  %v3301_v40 = vmul.f32 0.01, %v3269_v44  ;;  %v3303_v39 = vmul.f32 0.01, %v3271_v51  ;;  %v3300_v47 = vmul.f32 0.01, %v3268_v34 }
 0x550   :  { %3401 = vmatpush1.msra.mxu0 %v3328_v52  ;;  %3472 = vmatpush1.msra.mxu1 %v3330_v2  ;;  %v3319_v53 = vmul.f32 0.01, %v3287_v54  ;;  %v3316_v43 = vmul.f32 0.01, %v3284_v23  ;;  %v3286_v12 = vadd.f32 %v7158_v17, %v3246_v1  ;;  %v3270_v55 = vadd.f32 %v7256_v3, %v7254_v58 }
 0x551   :  { %4807 = vmatmul.mubr.msk.f32.vlgmr.msra.gmra.mxu0 %vm1042_vm1, %v7297_v11  ;;  %4808 = vmatmul.mubr.msk.f32.vlgmr.msra.gmra.mxu1 %vm1042_vm1, %v7297_v11  ;;  %v3333_v16 = vmax.f32 %v3269_v44, %v3301_v40  ;;  %v3335_v13 = vmax.f32 %v3271_v51, %v3303_v39  ;;  %v3332_v15 = vmax.f32 %v3268_v34, %v3300_v47 }
 0x552   :  { %3540 = vmatprep.subr.mxu0 %v3349_v22  ;;  %v3351_v61 = vmax.f32 %v3287_v54, %v3319_v53  ;;  %v3348_v31 = vmax.f32 %v3284_v23, %v3316_v43  ;;  %v3318_v2 = vmul.f32 0.01, %v3286_v12  ;;  %3576 = vmatprep.mubr.f32.mxu0 %v8050_v62  ;;  %v3302_v59 = vmul.f32 0.01, %v3270_v55 }
 0x553   :  { %3647 = vmatprep.mubr.f32.mxu1 %v8050_v62  ;;  %v3209_v58 = vmul.f32 %v7248_v33, %v3173_v14  ;;  %v8097_v52 = vsub.f32 %v7090_v30, %v7164_v26  ;;  %v8098_v38 = vsub.f32 %v7066_v45, %v7164_v26  ;;  %v8099_v48 = vsub.f32 %v7078_v63, %v7164_v26 }
 0x554   :  { %3611 = vmatprep.subr.mxu1 %v3351_v61  ;;  %3541 = vmatpush1.msra.mxu0 %v3348_v31  ;;  %v3350_v0 = vmax.f32 %v3286_v12, %v3318_v2  ;;  %v3334_v8 = vmax.f32 %v3270_v55, %v3302_v59  ;;  %v8100_v14 = vsub.f32 %v7055_v27, %v7160_v56 }
 0x555   :  { %v3211_v29 = vmul.f32 %v7248_v33, %v8097_v52  ;;  %v3208_v7 = vmul.f32 %v7248_v33, %v8098_v38  ;;  %v3210_v36 = vmul.f32 %v7248_v33, %v8099_v48  ;;  %3542 = vmatprep.subr.mxu0 %v3333_v16  ;;  %v3249_v9 = vmul.f32 %v7156_v46, %v3209_v58 }
 0x556   :  { %v3193_v30 = vmul.f32 %v7224_v5, %v8100_v14  ;;  %3612 = vmatpush1.msra.mxu1 %v3350_v0  ;;  %3543 = vmatpush1.msra.mxu0 %v3332_v15  ;;  %v8101_v20 = vsub.f32 %v7081_v57, %v7160_v56  ;;  %v8102_v10 = vsub.f32 %v7046_v37, %v7160_v56 }
 0x557   :  { %v3251_v45 = vmul.f32 %v7156_v46, %v3211_v29  ;;  %v3248_v60 = vmul.f32 %v7156_v46, %v3208_v7  ;;  %v3250_v63 = vmul.f32 %v7156_v46, %v3210_v36  ;;  %3613 = vmatprep.subr.mxu1 %v3335_v13  ;;  %4809 = vmatmul.mubr.msk.f32.vlgmr.msra.gmra.mxu0 %vm1042_vm1, %v7297_v11 }
 0x558   :  { %v3233_v35 = vmul.f32 %v7226_v49, %v3193_v30  ;;  %v3195_v27 = vmul.f32 %v7224_v5, %v8101_v20  ;;  %v3192_v41 = vmul.f32 %v7224_v5, %v8102_v10  ;;  %v3289_v21 = vadd.f32 %v7158_v17, %v3249_v9  ;;  %3614 = vmatpush1.msra.mxu1 %v3334_v8 }
 0x559   :  { %v3291_v44 = vadd.f32 %v7158_v17, %v3251_v45  ;;  %v3288_v51 = vadd.f32 %v7158_v17, %v3248_v60  ;;  %v3290_v57 = vadd.f32 %v7158_v17, %v3250_v63  ;;  %4810 = vmatmul.mubr.msk.f32.vlgmr.msra.gmra.mxu1 %vm1042_vm1, %v7297_v11  ;;  %3718 = vmatprep.mubr.f32.mxu0 %v8050_v62 }
 0x55a   :  { %v3273_v34 = vadd.f32 %v7256_v3, %v3233_v35  ;;  %v3235_v54 = vmul.f32 %v7226_v49, %v3195_v27  ;;  %v3232_v37 = vmul.f32 %v7226_v49, %v3192_v41  ;;  %v3321_v23 = vmul.f32 0.01, %v3289_v21  ;;  %3789 = vmatprep.mubr.f32.mxu1 %v8050_v62 }
 0x55b   :  { %v3323_v1 = vmul.f32 0.01, %v3291_v44  ;;  %v3320_v22 = vmul.f32 0.01, %v3288_v51  ;;  %v8103_v40 = vsub.f32 %v7061_v4, %v7160_v56  ;;  %v3322_v47 = vmul.f32 0.01, %v3290_v57 }
 0x55c   :  { %v3305_v53 = vmul.f32 0.01, %v3273_v34  ;;  %v3275_v43 = vadd.f32 %v7256_v3, %v3235_v54  ;;  %v3272_v12 = vadd.f32 %v7256_v3, %v3232_v37  ;;  %v3353_v55 = vmax.f32 %v3289_v21, %v3321_v23 }
 0x55d   :  { %v3194_v39 = vmul.f32 %v7224_v5, %v8103_v40  ;;  %v3355_v16 = vmax.f32 %v3291_v44, %v3323_v1  ;;  %v3352_v13 = vmax.f32 %v3288_v51, %v3320_v22  ;;  %v3354_v61 = vmax.f32 %v3290_v57, %v3322_v47 }
 0x55e   :  { %v3337_v31 = vmax.f32 %v3273_v34, %v3305_v53  ;;  %v3307_v2 = vmul.f32 0.01, %v3275_v43  ;;  %v3304_v59 = vmul.f32 0.01, %v3272_v12  ;;  %3682 = vmatprep.subr.mxu0 %v3353_v55  ;;  %v8104_v58 = vsub.f32 %v7127_v6, %v7164_v26 }
 0x55f   :  { %v3234_v15 = vmul.f32 %v7226_v49, %v3194_v39  ;;  %3753 = vmatprep.subr.mxu1 %v3355_v16  ;;  %v8105_v29 = vsub.f32 %v7141_v18, %v7164_v26  ;;  %3683 = vmatpush1.msra.mxu0 %v3352_v13  ;;  %v8106_v36 = vsub.f32 %v7115_v42, %v7164_v26  ;;  %v5009_v16 = vmov 11   ;;  %v7424_v13 = vpop.permute.xlu1 %3364 }
 0x560   :  { %v3213_v52 = vmul.f32 %v7248_v33, %v8104_v58  ;;  %3754 = vmatpush1.msra.mxu1 %v3354_v61  ;;  %v3339_v7 = vmax.f32 %v3275_v43, %v3307_v2  ;;  %v3336_v48 = vmax.f32 %v3272_v12, %v3304_v59  ;;  %3684 = vmatprep.subr.mxu0 %v3337_v31 }
 0x561   :  { %v3274_v4 = vadd.f32 %v7256_v3, %v3234_v15  ;;  %v3215_v38 = vmul.f32 %v7248_v33, %v8105_v29  ;;  %v3212_v0 = vmul.f32 %v7248_v33, %v8106_v36  ;;  %v8107_v18 = vsub.f32 %v7121_v50, %v7164_v26  ;;  %4968 = vset.pattern.permute.xlu0 %v5009_v16 }
 0x562   :  { %v3253_v6 = vmul.f32 %v7156_v46, %v3213_v52  ;;  %3755 = vmatprep.subr.mxu1 %v3339_v7  ;;  %3685 = vmatpush1.msra.mxu0 %v3336_v48  ;;  %v8108_v42 = vsub.f32 %v7106_v28, %v7160_v56  ;;  %v8109_v60 = vsub.f32 %v7118_v25, %v7160_v56 }
 0x563   :  { %v3306_v8 = vmul.f32 0.01, %v3274_v4  ;;  %v3255_v14 = vmul.f32 %v7156_v46, %v3215_v38  ;;  %v3214_v30 = vmul.f32 %v7248_v33, %v8107_v18  ;;  %v3252_v9 = vmul.f32 %v7156_v46, %v3212_v0  ;;  %4811 = vmatmul.mubr.msk.f32.vlgmr.msra.gmra.mxu0 %vm1042_vm1, %v7297_v11 }
 0x564   :  { %v3197_v45 = vmul.f32 %v7224_v5, %v8108_v42  ;;  %v3199_v63 = vmul.f32 %v7224_v5, %v8109_v60  ;;  %v3293_v50 = vadd.f32 %v7158_v17, %v3253_v6  ;;  %v8110_v25 = vsub.f32 %v7097_v24, %v7160_v56  ;;  %3860 = vmatprep.mubr.f32.mxu0 %v8050_v62 }
 0x565   :  { %v3338_v35 = vmax.f32 %v3274_v4, %v3306_v8  ;;  %v3295_v26 = vadd.f32 %v7158_v17, %v3255_v14  ;;  %v3254_v33 = vmul.f32 %v7156_v46, %v3214_v30  ;;  %v3292_v20 = vadd.f32 %v7158_v17, %v3252_v9 }
 0x566   :  { %v3237_v28 = vmul.f32 %v7226_v49, %v3197_v45  ;;  %v3239_v27 = vmul.f32 %v7226_v49, %v3199_v63  ;;  %v3196_v10 = vmul.f32 %v7224_v5, %v8110_v25  ;;  %v3325_v41 = vmul.f32 0.01, %v3293_v50 }
 0x567   :  { %3756 = vmatpush1.msra.mxu1 %v3338_v35  ;;  %v3327_v21 = vmul.f32 0.01, %v3295_v26  ;;  %v3294_v44 = vadd.f32 %v7158_v17, %v3254_v33  ;;  %v8111_v46 = vsub.f32 %v7109_v32, %v7160_v56  ;;  %v3324_v57 = vmul.f32 0.01, %v3292_v20 }
 0x568   :  { %4812 = vmatmul.mubr.msk.f32.vlgmr.msra.gmra.mxu1 %vm1042_vm1, %v7297_v11  ;;  %v3277_v24 = vadd.f32 %v7256_v3, %v3237_v28  ;;  %v3279_v34 = vadd.f32 %v7256_v3, %v3239_v27  ;;  %v3236_v54 = vmul.f32 %v7226_v49, %v3196_v10  ;;  %v3357_v37 = vmax.f32 %v3293_v50, %v3325_v41 }
 0x569   :  { %v3198_v51 = vmul.f32 %v7224_v5, %v8111_v46  ;;  %v3359_v23 = vmax.f32 %v3295_v26, %v3327_v21  ;;  %v3326_v1 = vmul.f32 0.01, %v3294_v44  ;;  %3931 = vmatprep.mubr.f32.mxu1 %v8050_v62  ;;  %v3356_v32 = vmax.f32 %v3292_v20, %v3324_v57 }
 0x56a   :  { %v3309_v56 = vmul.f32 0.01, %v3277_v24  ;;  %v3311_v5 = vmul.f32 0.01, %v3279_v34  ;;  %v3276_v22 = vadd.f32 %v7256_v3, %v3236_v54  ;;  %3824 = vmatprep.subr.mxu0 %v3357_v37 }
 0x56b   :  { %v3238_v17 = vmul.f32 %v7226_v49, %v3198_v51  ;;  %3895 = vmatprep.subr.mxu1 %v3359_v23  ;;  %v3358_v40 = vmax.f32 %v3294_v44, %v3326_v1  ;;  %3825 = vmatpush1.msra.mxu0 %v3356_v32 }
 0x56c   :  { %v3341_v47 = vmax.f32 %v3277_v24, %v3309_v56  ;;  %v3343_v53 = vmax.f32 %v3279_v34, %v3311_v5  ;;  %v3308_v43 = vmul.f32 0.01, %v3276_v22 }
 0x56d   :  { %v3278_v39 = vadd.f32 %v7256_v3, %v3238_v17  ;;  %3896 = vmatpush1.msra.mxu1 %v3358_v40  ;;  %v5008_v3 = vmov 10  }
 0x56e   :  { %3826 = vmatprep.subr.mxu0 %v3341_v47  ;;  %3897 = vmatprep.subr.mxu1 %v3343_v53  ;;  %v3340_v49 = vmax.f32 %v3276_v22, %v3308_v43 }
 0x56f   :  { %v3310_v12 = vmul.f32 0.01, %v3278_v39  ;;  %4967 = vset.pattern.permute.xlu1 %v5008_v3 }
 0x570   :  { %3827 = vmatpush1.msra.mxu0 %v3340_v49 }
 0x571   :  { %v3342_v55 = vmax.f32 %v3278_v39, %v3310_v12  ;;  %4813 = vmatmul.mubr.msk.f32.vlgmr.msra.gmra.mxu0 %vm1042_vm1, %v7297_v11 }
 0x573   :  { %3898 = vmatpush1.msra.mxu1 %v3342_v55 }
 0x574   :  { %4814 = vmatmul.mubr.msk.f32.vlgmr.msra.gmra.mxu1 %vm1042_vm1, %v7297_v11  ;;  %4883 = vmatprep.subr.mxu1 %v8050_v62 }
 0x575   :  { %4899 = vmatprep.mubr.msk.f32.mxu1 %vm5010_vm4, %v8050_v62 }
 0x611   :  { %v3436_v15 = vpop.f32.mrf.mxu0  ;;  %v3507_v61 = vpop.f32.mrf.mxu1 }
 0x612   :  { %v7427_v31 = vadd.f32 %v3436_v15, %v7424_v13  ;;  %v7430_v2 = vadd.f32 %v3507_v61, %v7424_v13 }
 0x613   :  { %v3438_v59 = vpop.f32.mrf.mxu0  ;;  %v3509_v4 = vpop.f32.mrf.mxu1 }
 0x614   :  { %v7433_v11 = vadd.f32 %v3438_v59, %v7424_v13  ;;  %v7436_v58 = vadd.f32 %v3509_v4, %v7424_v13  ;;  %v3973_v52 = vmul.f32 %v7427_v31, %v7427_v31  ;;  %v3939_v29 = vsel %vm3938_vm3, %v7427_v31, 0.0 }
 0x615   :  { %v3975_v48 = vmul.f32 %v7430_v2, %v7430_v2  ;;  %v3942_v8 = vsel %vm3938_vm3, %v7430_v2, 0.0 }
 0x616   :  { %v3940_v38 = vsel %vm3938_vm3, %v7433_v11, 0.0  ;;  %v3974_v7 = vmul.f32 %v7433_v11, %v7433_v11  ;;  %v3976_v14 = vmul.f32 %v7436_v58, %v7436_v58  ;;  %v3989_v18 = vsel %vm3938_vm3, %v3973_v52, 0.0 }
 0x617   :  { %v3578_v36 = vpop.f32.mrf.mxu0  ;;  %v3941_v0 = vadd.f32 %v3940_v38, %v3939_v29  ;;  %v3944_v42 = vsel %vm3938_vm3, %v7436_v58, 0.0  ;;  %v3992_v50 = vsel %vm3938_vm3, %v3975_v48, 0.0 }
 0x618   :  { %v7451_v6 = vadd.f32 %v3578_v36, %v7424_v13  ;;  %v3990_v30 = vsel %vm3938_vm3, %v3974_v7, 0.0  ;;  %v3994_v10 = vsel %vm3938_vm3, %v3976_v14, 0.0 }
 0x619   :  { %v3943_v9 = vadd.f32 %v3942_v8, %v3941_v0  ;;  %v3991_v45 = vadd.f32 %v3990_v30, %v3989_v18  ;;  %v3649_v60 = vpop.f32.mrf.mxu1  ;;  %v3580_v63 = vpop.f32.mrf.mxu0 }
 0x61a   :  { %v3977_v35 = vmul.f32 %v7451_v6, %v7451_v6  ;;  %v7463_v26 = vadd.f32 %v3649_v60, %v7424_v13  ;;  %v7466_v33 = vadd.f32 %v3580_v63, %v7424_v13  ;;  %v3946_v25 = vsel %vm3938_vm3, %v7451_v6, 0.0 }
 0x61b   :  { %v3945_v20 = vadd.f32 %v3944_v42, %v3943_v9  ;;  %v3993_v28 = vadd.f32 %v3992_v50, %v3991_v45  ;;  %v3651_v27 = vpop.f32.mrf.mxu1 }
 0x61c   :  { %v3978_v44 = vmul.f32 %v7466_v33, %v7466_v33  ;;  %v7474_v46 = vadd.f32 %v3651_v27, %v7424_v13  ;;  %v3996_v51 = vsel %vm3938_vm3, %v3977_v35, 0.0  ;;  %v3979_v57 = vmul.f32 %v7463_v26, %v7463_v26 }
 0x61d   :  { %v3947_v41 = vadd.f32 %v3946_v25, %v3945_v20  ;;  %v3995_v21 = vadd.f32 %v3994_v10, %v3993_v28  ;;  %v3948_v24 = vsel %vm3938_vm3, %v7466_v33, 0.0  ;;  %v3950_v37 = vsel %vm3938_vm3, %v7463_v26, 0.0 }
 0x61e   :  { %v3998_v23 = vsel %vm3938_vm3, %v3978_v44, 0.0  ;;  %v3980_v1 = vmul.f32 %v7474_v46, %v7474_v46  ;;  %v4000_v5 = vsel %vm3938_vm3, %v3979_v57, 0.0  ;;  %v3952_v22 = vsel %vm3938_vm3, %v7474_v46, 0.0 }
 0x61f   :  { %v3997_v34 = vadd.f32 %v3996_v51, %v3995_v21  ;;  %v3949_v54 = vadd.f32 %v3948_v24, %v3947_v41 }
 0x620   :  { %v4002_v43 = vsel %vm3938_vm3, %v3980_v1, 0.0 }
 0x621   :  { %v3999_v17 = vadd.f32 %v3998_v23, %v3997_v34  ;;  %v3951_v32 = vadd.f32 %v3950_v37, %v3949_v54 }
 0x623   :  { %v3720_v56 = vpop.f32.mrf.mxu0  ;;  %v3953_v39 = vadd.f32 %v3952_v22, %v3951_v32  ;;  %v4001_v47 = vadd.f32 %v4000_v5, %v3999_v17 }
 0x624   :  { %v7490_v40 = vadd.f32 %v3720_v56, %v7424_v13 }
 0x625   :  { %v3722_v53 = vpop.f32.mrf.mxu0  ;;  %v4003_v16 = vadd.f32 %v4002_v43, %v4001_v47 }
 0x626   :  { %v3954_v12 = vsel %vm3938_vm3, %v7490_v40, 0.0  ;;  %v3981_v49 = vmul.f32 %v7490_v40, %v7490_v40  ;;  %v7498_v3 = vadd.f32 %v3722_v53, %v7424_v13 }
 0x627   :  { %v3955_v15 = vadd.f32 %v3954_v12, %v3953_v39 }
 0x628   :  { %v3791_v55 = vpop.f32.mrf.mxu1  ;;  %v4004_v59 = vsel %vm3938_vm3, %v3981_v49, 0.0  ;;  %v3956_v4 = vsel %vm3938_vm3, %v7498_v3, 0.0  ;;  %v3982_v52 = vmul.f32 %v7498_v3, %v7498_v3  ;;  %v4344_v49 = vld [vmem:[%s7833_s8 + $0xf8] sm:$0xff] }
 0x629   :  { %v7501_v61 = vadd.f32 %v3791_v55, %v7424_v13  ;;  %v4005_v38 = vadd.f32 %v4004_v59, %v4003_v16  ;;  %v3957_v48 = vadd.f32 %v3956_v4, %v3955_v15  ;;  %v4328_v55 = vld [vmem:[%s7833_s8 + $0x78] sm:$0xff]  ;;  %v4343_v16 = vld [vmem:[%s7833_s8 + $0xf0] sm:$0xff]  ;;  %4825 = vmatprep.subr.mxu0 %v4344_v49  ;;  %v4342_v59 = vld [vmem:[%s7833_s8 + $0xe8] sm:$0xff] }
 0x62a   :  { %v3793_v29 = vpop.f32.mrf.mxu1  ;;  %v4006_v0 = vsel %vm3938_vm3, %v3982_v52, 0.0  ;;  %v4327_v15 = vld [vmem:[%s7833_s8 + $0x70] sm:$0xff]  ;;  %4826 = vmatpush3.msra.mxu0 %v4328_v55  ;;  %v4326_v4 = vld [vmem:[%s7833_s8 + $0x68] sm:$0xff]  ;;  %v4341_v52 = vld [vmem:[%s7833_s8 + $0xe0] sm:$0xff]  ;;  %v5011_v55 = vmov 1966171168  }
 0x62b   :  { %v3983_v7 = vmul.f32 %v7501_v61, %v7501_v61  ;;  %v3958_v36 = vsel %vm3938_vm3, %v7501_v61, 0.0  ;;  %v7514_v8 = vadd.f32 %v3793_v29, %v7424_v13  ;;  %v4007_v14 = vadd.f32 %v4006_v0, %v4005_v38  ;;  %4827 = vmatprep.subr.mxu0 %v4343_v16  ;;  %v4325_v29 = vld [vmem:[%s7833_s8 + $0x60] sm:$0xff]  ;;  %v4340_v38 = vld [vmem:[%s7833_s8 + $0xd8] sm:$0xff]  ;;  %v4323_v0 = vld [vmem:[%s7833_s8 + $0x50] sm:$0xff] }
 0x62c   :  { %v3959_v18 = vadd.f32 %v3958_v36, %v3957_v48  ;;  %4828 = vmatpush3.msra.mxu0 %v4327_v15  ;;  %v4312_v48 = vld [vmem:[%s7834_s7 + $0x38] sm:$0xff]  ;;  %v4311_v36 = vld [vmem:[%s7834_s7 + $0x30] sm:$0xff]  ;;  %v4135_v16 = vunpack.c.l.s4 %v5011_v55  ;;  %v4137_v15 = vlaneseq }
 0x62d   :  { %v4008_v30 = vsel %vm3938_vm3, %v3983_v7, 0.0  ;;  %v3984_v9 = vmul.f32 %v7514_v8, %v7514_v8  ;;  %v3960_v45 = vsel %vm3938_vm3, %v7514_v8, 0.0  ;;  %4829 = vmatprep.subr.mxu0 %v4342_v59  ;;  %v4324_v7 = vld [vmem:[%s7833_s8 + $0x58] sm:$0xff]  ;;  %4884 = vmatpush3.msra.mxu1 %v4312_v48 }
 0x62e   :  { %v4009_v42 = vadd.f32 %v4008_v30, %v4007_v14  ;;  %v3961_v60 = vadd.f32 %v3960_v45, %v3959_v18  ;;  %4830 = vmatpush3.msra.mxu0 %v4326_v4  ;;  %4885 = vmatprep.subr.mxu1 %v8050_v62  ;;  %v4310_v14 = vld [vmem:[%s7834_s7 + $0x28] sm:$0xff]  ;;  %v4321_v45 = vld [vmem:[%s7833_s8 + $0x40] sm:$0xff]  ;;  %v4136_v59 = vunpack.c.0.s8 %v4135_v16  ;;  %v4138_v4 = vshrl.u32 %v4137_v15, 7 }
 0x62f   :  { %v4010_v35 = vsel %vm3938_vm3, %v3984_v9, 0.0  ;;  %4831 = vmatprep.subr.mxu0 %v4341_v52  ;;  %v4338_v18 = vld [vmem:[%s7833_s8 + $0xc8] sm:$0xff]  ;;  %4886 = vmatpush3.msra.mxu1 %v4311_v36  ;;  %v4309_v9 = vld [vmem:[%s7834_s7 + $0x20] sm:$0xff]  ;;  %vm7713_vm6 = vcmp.lt.s32.totalorder %v4137_v15, 256 }
 0x630   :  { %v4011_v28 = vadd.f32 %v4010_v35, %v4009_v42  ;;  %4832 = vmatpush3.msra.mxu0 %v4325_v29  ;;  %v4322_v30 = vld [vmem:[%s7833_s8 + $0x48] sm:$0xff]  ;;  %4887 = vmatprep.subr.mxu1 %v8050_v62  ;;  %v4337_v42 = vld [vmem:[%s7833_s8 + $0xc0] sm:$0xff]  ;;  %v4320_v35 = vld [vmem:[%s7833_s8 + $0x38] sm:$0xff] }
 0x631   :  { %v3862_v63 = vpop.f32.mrf.mxu0  ;;  %4833 = vmatprep.subr.mxu0 %v4340_v38  ;;  %4888 = vmatpush3.msra.mxu1 %v4310_v14  ;;  %v7696_v38 = vsub.s32 %v4136_v59, %v4138_v4 }
 0x632   :  { %v7523_v50 = vadd.f32 %v3862_v63, %v7424_v13  ;;  %4834 = vmatpush3.msra.mxu0 %v4324_v7  ;;  %4889 = vmatprep.subr.mxu1 %v8050_v62  ;;  %v4336_v63 = vld [vmem:[%s7833_s8 + $0xb8] sm:$0xff] }
 0x633   :  { %v3864_v25 = vpop.f32.mrf.mxu0  ;;  %4890 = vmatpush3.msra.mxu1 %v4309_v9 }
 0x634   :  { %v3933_v20 = vpop.f32.mrf.mxu1  ;;  %v3962_v10 = vsel %vm3938_vm3, %v7523_v50, 0.0  ;;  %v3985_v41 = vmul.f32 %v7523_v50, %v7523_v50  ;;  %v7533_v21 = vadd.f32 %v3864_v25, %v7424_v13  ;;  %4891 = vmatprep.subr.mxu1 %v8050_v62  ;;  %v4334_v25 = vld [vmem:[%s7833_s8 + $0xa8] sm:$0xff] }
 0x635   :  { %v7526_v27 = vadd.f32 %v3933_v20, %v7424_v13  ;;  %v3963_v51 = vadd.f32 %v3962_v10, %v3961_v60  ;;  %v4308_v60 = vld [vmem:[%s7834_s7 + $0x18] sm:$0xff]  ;;  %v4335_v20 = vld [vmem:[%s7833_s8 + $0xb0] sm:$0xff]  ;;  %v4318_v10 = vld [vmem:[%s7833_s8 + $0x28] sm:$0xff] }
 0x636   :  { %v3935_v44 = vpop.f32.mrf.mxu1  ;;  %v4012_v24 = vsel %vm3938_vm3, %v3985_v41, 0.0  ;;  %v3964_v54 = vsel %vm3938_vm3, %v7533_v21, 0.0  ;;  %v3986_v37 = vmul.f32 %v7533_v21, %v7533_v21  ;;  %4892 = vmatpush3.msra.mxu1 %v4308_v60  ;;  %v4333_v41 = vld [vmem:[%s7833_s8 + $0xa0] sm:$0xff] }
 0x637   :  { %v7536_v57 = vadd.f32 %v3935_v44, %v7424_v13  ;;  %v3987_v34 = vmul.f32 %v7526_v27, %v7526_v27  ;;  %v3965_v23 = vadd.f32 %v3964_v54, %v3963_v51  ;;  %v4013_v1 = vadd.f32 %v4012_v24, %v4011_v28  ;;  %v4319_v28 = vld [vmem:[%s7833_s8 + $0x30] sm:$0xff]  ;;  %4893 = vmatprep.subr.mxu1 %v8050_v62  ;;  %v4317_v44 = vld [vmem:[%s7833_s8 + $0x20] sm:$0xff]  ;;  %v4332_v51 = vld [vmem:[%s7833_s8 + $0x98] sm:$0xff] }
 0x638   :  { %v3966_v17 = vsel %vm3938_vm3, %v7526_v27, 0.0  ;;  %v4014_v32 = vsel %vm3938_vm3, %v3986_v37, 0.0  ;;  %v4316_v24 = vld [vmem:[%s7833_s8 + $0x18] sm:$0xff]  ;;  %v4315_v54 = vld [vmem:[%s7833_s8 + $0x10] sm:$0xff]  ;;  %v4330_v37 = vld [vmem:[%s7833_s8 + $0x88] sm:$0xff] }
 0x639   :  { %v3988_v13 = vmul.f32 %v7536_v57, %v7536_v57  ;;  %v3967_v56 = vadd.f32 %v3966_v17, %v3965_v23  ;;  %v4015_v5 = vadd.f32 %v4014_v32, %v4013_v1  ;;  %v3968_v22 = vsel %vm3938_vm3, %v7536_v57, 0.0  ;;  %v4314_v23 = vld [vmem:[%s7833_s8 + $0x8] sm:$0xff]  ;;  %v4329_v1 = vld [vmem:[%s7833_s8 + $0x80] sm:$0xff] }
 0x63a   :  { %v4016_v39 = vsel %vm3938_vm3, %v3987_v34, 0.0  ;;  %v4331_v34 = vld [vmem:[%s7833_s8 + $0x90] sm:$0xff]  ;;  %v4313_v17 = vld [vmem:[%s7833_s8] sm:$0xff]  ;;  %v4306_v32 = vld [vmem:[%s7834_s7 + $0x8] sm:$0xff] }
 0x63b   :  { %v3969_v47 = vadd.f32 %v3968_v22, %v3967_v56  ;;  %v4017_v53 = vadd.f32 %v4016_v39, %v4015_v5  ;;  %v4018_v43 = vsel %vm3938_vm3, %v3988_v13, 0.0  ;;  %v4307_v13 = vld [vmem:[%s7834_s7 + $0x10] sm:$0xff]  ;;  %v4305_v56 = vld [vmem:[%s7834_s7] sm:$0xff] }
 0x63c   :  { %4894 = vmatpush3.msra.mxu1 %v4307_v13  ;;  %v4304_v5 = vld [vmem:[%s7835_s1] sm:$0xff] }
 0x63d   :  { %3970 = vadd.xlane.f32.xlu1 %v3969_v47  ;;  %v4019_v12 = vadd.f32 %v4018_v43, %v4017_v53  ;;  %4895 = vmatprep.subr.mxu1 %v8050_v62 }
 0x63e   :  { %4896 = vmatpush3.msra.mxu1 %v4306_v32 }
 0x63f   :  { %4020 = vadd.xlane.f32.xlu0 %v4019_v12  ;;  %4897 = vmatprep.subr.mxu1 %v8050_v62 }
 0x640   :  { %4898 = vmatpush3.msra.mxu1 %v4305_v56 }
 0x641   :  { %4900 = vmatmul.mubr.msk.f32.vlgmr.msra.gmra.mxu1 %vm4415_vm5, %v4304_v5  ;;  %4902 = vmatprep.subr.mxu1 %v8050_v62 }
 0x642   :  { %4918 = vmatprep.mubr.msk.f32.mxu1 %vm5010_vm4, %v8050_v62 }
 0x64e   :  { %4060 = vperm.xlu1 %4967, %v7153_v19  }
 0x655   :  { %4080 = vperm.xlu0 %4968, %v7153_v19   ;;  %v4339_v19 = vld [vmem:[%s7833_s8 + $0xd0] sm:$0xff] }
 0x656   :  { %4835 = vmatprep.subr.mxu0 %v4339_v19 }
 0x657   :  { %4836 = vmatpush3.msra.mxu0 %v4323_v0 }
 0x658   :  { %4837 = vmatprep.subr.mxu0 %v4338_v18 }
 0x659   :  { %4838 = vmatpush3.msra.mxu0 %v4322_v30 }
 0x65a   :  { %4839 = vmatprep.subr.mxu0 %v4337_v42 }
 0x65b   :  { %4840 = vmatpush3.msra.mxu0 %v4321_v45 }
 0x65c   :  { %4841 = vmatprep.subr.mxu0 %v4336_v63 }
 0x65d   :  { %4842 = vmatpush3.msra.mxu0 %v4320_v35 }
 0x65e   :  { %4843 = vmatprep.subr.mxu0 %v4335_v20 }
 0x65f   :  { %4844 = vmatpush3.msra.mxu0 %v4319_v28 }
 0x660   :  { %4845 = vmatprep.subr.mxu0 %v4334_v25 }
 0x661   :  { %4846 = vmatpush3.msra.mxu0 %v4318_v10 }
 0x662   :  { %4847 = vmatprep.subr.mxu0 %v4333_v41 }
 0x663   :  { %4848 = vmatpush3.msra.mxu0 %v4317_v44 }
 0x664   :  { %4849 = vmatprep.subr.mxu0 %v4332_v51 }
 0x665   :  { %4850 = vmatpush3.msra.mxu0 %v4316_v24 }
 0x666   :  { %4851 = vmatprep.subr.mxu0 %v4331_v34 }
 0x667   :  { %4852 = vmatpush3.msra.mxu0 %v4315_v54 }
 0x668   :  { %4853 = vmatprep.subr.mxu0 %v4330_v37 }
 0x669   :  { %4854 = vmatpush3.msra.mxu0 %v4314_v23 }
 0x66a   :  { %4855 = vmatprep.subr.mxu0 %v4329_v1 }
 0x66b   :  { %4856 = vmatpush3.msra.mxu0 %v4313_v17 }
 0x66c   :  { %4921 = vmatprep.subr.mxu0 %v8050_v62 }
 0x6c6   :  { %v3971_v22 = vpop.xlane.xlu1 %3970 }
 0x6c7   :  { %v3972_v39 = vmul.f32 0.00048828125, %v3971_v22 }
 0x6c8   :  { %v4021_v47 = vpop.xlane.xlu0 %4020 }
 0x6c9   :  { %v4022_v53 = vmul.f32 0.00048828125, %v4021_v47  ;;  %v4023_v43 = vmul.f32 %v3972_v39, %v3972_v39  ;;  %v4025_v52 = vsub.f32 %v7427_v31, %v3972_v39  ;;  %v4026_v29 = vsub.f32 %v7433_v11, %v3972_v39 }
 0x6ca   :  { %v4027_v7 = vsub.f32 %v7430_v2, %v3972_v39  ;;  %v4028_v48 = vsub.f32 %v7436_v58, %v3972_v39  ;;  %v4029_v19 = vsub.f32 %v7451_v6, %v3972_v39  ;;  %v4030_v36 = vsub.f32 %v7466_v33, %v3972_v39  ;;  %v4061_v45 = vpop.permute.xlu1 %4060 }
 0x6cb   :  { %v4024_v12 = vsub.f32 %v4022_v53, %v4023_v43  ;;  %v4031_v0 = vsub.f32 %v7463_v26, %v3972_v39  ;;  %v4032_v14 = vsub.f32 %v7474_v46, %v3972_v39  ;;  %v4033_v18 = vsub.f32 %v7490_v40, %v3972_v39 }
 0x6cc   :  { %v4034_v31 = vsub.f32 %v7498_v3, %v3972_v39  ;;  %v4035_v11 = vsub.f32 %v7501_v61, %v3972_v39  ;;  %v4036_v9 = vsub.f32 %v7514_v8, %v3972_v39  ;;  %v4037_v2 = vsub.f32 %v7523_v50, %v3972_v39 }
 0x6cd   :  { %v4041_v49 = vadd.f32 1e-05, %v4024_v12  ;;  %v4038_v58 = vsub.f32 %v7533_v21, %v3972_v39  ;;  %v4039_v6 = vsub.f32 %v7526_v27, %v3972_v39  ;;  %v4040_v46 = vsub.f32 %v7536_v57, %v3972_v39 }
 0x6cf   :  { %4985 = vrsqrt.f32 %v4041_v49 }
 0x6d0   :  { %v4081_v44 = vpop.permute.xlu0 %4080 }
 0x6dc   :  { %v4986_v30 = vpop.eup %4985 }
 0x6dd   :  { %v4043_v33 = vmul.f32 %v4986_v30, %v4025_v52  ;;  %v4044_v42 = vmul.f32 %v4986_v30, %v4026_v29  ;;  %v4045_v26 = vmul.f32 %v4986_v30, %v4027_v7  ;;  %v4046_v40 = vmul.f32 %v4986_v30, %v4028_v48 }
 0x6de   :  { %v4047_v60 = vmul.f32 %v4986_v30, %v4029_v19  ;;  %v4048_v3 = vmul.f32 %v4986_v30, %v4030_v36  ;;  %v4049_v63 = vmul.f32 %v4986_v30, %v4031_v0  ;;  %v4050_v35 = vmul.f32 %v4986_v30, %v4032_v14 }
 0x6df   :  { %v4051_v61 = vmul.f32 %v4986_v30, %v4033_v18  ;;  %v4052_v20 = vmul.f32 %v4986_v30, %v4034_v31  ;;  %v4053_v8 = vmul.f32 %v4986_v30, %v4035_v11  ;;  %v4054_v28 = vmul.f32 %v4986_v30, %v4036_v9 }
 0x6e0   :  { %v4055_v50 = vmul.f32 %v4986_v30, %v4037_v2  ;;  %v4056_v25 = vmul.f32 %v4986_v30, %v4038_v58  ;;  %v4057_v21 = vmul.f32 %v4986_v30, %v4039_v6  ;;  %v4063_v10 = vmul.f32 %v4061_v45, %v4043_v33 }
 0x6e1   :  { %v4064_v27 = vmul.f32 %v4061_v45, %v4044_v42  ;;  %v4065_v41 = vmul.f32 %v4061_v45, %v4045_v26  ;;  %v4058_v51 = vmul.f32 %v4986_v30, %v4040_v46  ;;  %v4066_v24 = vmul.f32 %v4061_v45, %v4046_v40 }
 0x6e2   :  { %v4067_v34 = vmul.f32 %v4061_v45, %v4047_v60  ;;  %v4068_v57 = vmul.f32 %v4061_v45, %v4048_v3  ;;  %v4069_v54 = vmul.f32 %v4061_v45, %v4049_v63  ;;  %v4070_v37 = vmul.f32 %v4061_v45, %v4050_v35 }
 0x6e3   :  { %v4071_v23 = vmul.f32 %v4061_v45, %v4051_v61  ;;  %v4072_v1 = vmul.f32 %v4061_v45, %v4052_v20  ;;  %v4073_v17 = vmul.f32 %v4061_v45, %v4053_v8  ;;  %v4074_v13 = vmul.f32 %v4061_v45, %v4054_v28 }
 0x6e4   :  { %v4075_v32 = vmul.f32 %v4061_v45, %v4055_v50  ;;  %v4076_v56 = vmul.f32 %v4061_v45, %v4056_v25  ;;  %v4077_v5 = vmul.f32 %v4061_v45, %v4057_v21  ;;  %v4083_v22 = vadd.f32 %v4081_v44, %v4063_v10 }
 0x6e5   :  { %v4084_v39 = vadd.f32 %v4081_v44, %v4064_v27  ;;  %v4085_v47 = vadd.f32 %v4081_v44, %v4065_v41  ;;  %v4078_v53 = vmul.f32 %v4061_v45, %v4058_v51  ;;  %v4086_v43 = vadd.f32 %v4081_v44, %v4066_v24 }
 0x6e6   :  { %v4087_v12 = vadd.f32 %v4081_v44, %v4067_v34  ;;  %v4088_v49 = vadd.f32 %v4081_v44, %v4068_v57  ;;  %v4089_v55 = vadd.f32 %v4081_v44, %v4069_v54  ;;  %v4090_v16 = vadd.f32 %v4081_v44, %v4070_v37 }
 0x6e7   :  { %v4091_v59 = vadd.f32 %v4081_v44, %v4071_v23  ;;  %v4092_v4 = vadd.f32 %v4081_v44, %v4072_v1  ;;  %v4093_v52 = vadd.f32 %v4081_v44, %v4073_v17  ;;  %v4094_v29 = vadd.f32 %v4081_v44, %v4074_v13 }
 0x6e8   :  { %v4095_v7 = vadd.f32 %v4081_v44, %v4075_v32  ;;  %v4096_v48 = vadd.f32 %v4081_v44, %v4076_v56  ;;  %v4097_v19 = vadd.f32 %v4081_v44, %v4077_v5  ;;  %v4099_v36 = vmul.f32 0.01, %v4083_v22 }
 0x6e9   :  { %v4100_v0 = vmul.f32 0.01, %v4084_v39  ;;  %v4101_v14 = vmul.f32 0.01, %v4085_v47  ;;  %v4098_v18 = vadd.f32 %v4081_v44, %v4078_v53  ;;  %v4102_v31 = vmul.f32 0.01, %v4086_v43 }
 0x6ea   :  { %v4103_v30 = vmul.f32 0.01, %v4087_v12  ;;  %v4104_v11 = vmul.f32 0.01, %v4088_v49  ;;  %v4105_v9 = vmul.f32 0.01, %v4089_v55  ;;  %v4115_v6 = vmax.f32 %v4083_v22, %v4099_v36 }
 0x6eb   :  { %v4106_v2 = vmul.f32 0.01, %v4090_v16  ;;  %v4107_v58 = vmul.f32 0.01, %v4091_v59  ;;  %v4108_v33 = vmul.f32 0.01, %v4092_v4  ;;  %v4116_v45 = vmax.f32 %v4084_v39, %v4100_v0 }
 0x6ec   :  { %v4109_v42 = vmul.f32 0.01, %v4093_v52  ;;  %v4110_v26 = vmul.f32 0.01, %v4094_v29  ;;  %v4111_v40 = vmul.f32 0.01, %v4095_v7  ;;  %v4117_v63 = vmax.f32 %v4085_v47, %v4101_v14 }
 0x6ed   :  { %v4112_v60 = vmul.f32 0.01, %v4096_v48  ;;  %v4113_v3 = vmul.f32 0.01, %v4097_v19  ;;  %v4114_v35 = vmul.f32 0.01, %v4098_v18  ;;  %v4118_v61 = vmax.f32 %v4086_v43, %v4102_v31 }
 0x6ee   :  { %v4119_v20 = vmax.f32 %v4087_v12, %v4103_v30  ;;  %v4120_v8 = vmax.f32 %v4088_v49, %v4104_v11  ;;  %v4121_v28 = vmax.f32 %v4089_v55, %v4105_v9  ;;  %v4122_v50 = vmax.f32 %v4090_v16, %v4106_v2  ;;  %v4538_v36 = vld [vmem:[%s7836_s9 + $0x30] sm:$0xff]  ;;  %v4537_v0 = vld [vmem:[%s7836_s9 + $0x28] sm:$0xff]  ;;  %v4536_v14 = vld [vmem:[%s7836_s9 + $0x20] sm:$0xff] }
 0x6ef   :  { %v4123_v25 = vmax.f32 %v4091_v59, %v4107_v58  ;;  %v4124_v21 = vmax.f32 %v4092_v4, %v4108_v33  ;;  %v4125_v10 = vmax.f32 %v4093_v52, %v4109_v42  ;;  %v4126_v27 = vmax.f32 %v4094_v29, %v4110_v26  ;;  %v4534_v31 = vld [vmem:[%s7836_s9 + $0x10] sm:$0xff]  ;;  %v4533_v30 = vld [vmem:[%s7836_s9 + $0x8] sm:$0xff]  ;;  %v4532_v11 = vld [vmem:[%s7836_s9] sm:$0xff] }
 0x6f0   :  { %v4127_v41 = vmax.f32 %v4095_v7, %v4111_v40  ;;  %v4128_v44 = vmax.f32 %v4096_v48, %v4112_v60  ;;  %v4129_v15 = vmax.f32 %v4097_v19, %v4113_v3  ;;  %v4130_v51 = vmax.f32 %v4098_v18, %v4114_v35  ;;  %v4539_v19 = vld [vmem:[%s7836_s9 + $0x38] sm:$0xff] }
 0x6f1   :  { %v4133_v24 = vcombine.low %v4115_v6, %v4116_v45  ;;  %v4157_v34 = vcombine.low %v4117_v63, %v4118_v61  ;;  %v4178_v57 = vcombine.low %v4119_v20, %v4120_v8  ;;  %v4199_v54 = vcombine.low %v4121_v28, %v4122_v50  ;;  %4903 = vmatpush3.msra.mxu1 %v4539_v19  ;;  %v4535_v18 = vld [vmem:[%s7836_s9 + $0x18] sm:$0xff]  ;;  %v4816_v6 = vld [vmem:[%s7837_s11] ss:$0 sm:$0xff] }
 0x6f2   :  { %v4220_v37 = vcombine.low %v4123_v25, %v4124_v21  ;;  %v4241_v23 = vcombine.low %v4125_v10, %v4126_v27  ;;  %v4262_v13 = vcombine.low %v4127_v41, %v4128_v44  ;;  %v4283_v32 = vcombine.low %v4129_v15, %v4130_v51  ;;  %4904 = vmatprep.subr.mxu1 %v8050_v62 }
 0x6f3   :  { %v4140_v1 = vrot.slane %v4133_v24, %v7696_v38  ;;  %v4164_v17 = vrot.slane %v4157_v34, %v7696_v38  ;;  %v4185_v56 = vrot.slane %v4178_v57, %v7696_v38  ;;  %v4206_v5 = vrot.slane %v4199_v54, %v7696_v38  ;;  %4905 = vmatpush3.msra.mxu1 %v4538_v36  ;;  %v4817_v54 = vld [vmem:[%s7837_s11 + $0x1] ss:$0 sm:$0xff] }
 0x6f4   :  { %v4227_v22 = vrot.slane %v4220_v37, %v7696_v38  ;;  %v4248_v39 = vrot.slane %v4241_v23, %v7696_v38  ;;  %v4269_v43 = vrot.slane %v4262_v13, %v7696_v38  ;;  %v4290_v12 = vrot.slane %v4283_v32, %v7696_v38  ;;  %4906 = vmatprep.subr.mxu1 %v8050_v62  ;;  %v4818_v23 = vld [vmem:[%s7837_s11 + $0x2] ss:$0 sm:$0xff]  ;;  %v4658_v13 = vld [vmem:[%s7838_s10 + $0x18] sm:$0xff]  ;;  %v4657_v32 = vld [vmem:[%s7838_s10 + $0x10] sm:$0xff] }
 0x6f5   :  { %v4147_v47 = vrot.slane %v4140_v1, %v7696_v38  ;;  %v4171_v53 = vrot.slane %v4164_v17, %v7696_v38  ;;  %v4192_v49 = vrot.slane %v4185_v56, %v7696_v38  ;;  %v4213_v55 = vrot.slane %v4206_v5, %v7696_v38  ;;  %4907 = vmatpush3.msra.mxu1 %v4537_v0  ;;  %v4656_v56 = vld [vmem:[%s7838_s10 + $0x8] sm:$0xff]  ;;  %v4655_v5 = vld [vmem:[%s7838_s10] sm:$0xff] }
 0x6f6   :  { %v4234_v16 = vrot.slane %v4227_v22, %v7696_v38  ;;  %v4255_v59 = vrot.slane %v4248_v39, %v7696_v38  ;;  %v4276_v4 = vrot.slane %v4269_v43, %v7696_v38  ;;  %v4297_v52 = vrot.slane %v4290_v12, %v7696_v38  ;;  %4908 = vmatprep.subr.mxu1 %v8050_v62  ;;  %v4819_v22 = vld [vmem:[%s7837_s11 + $0x3] ss:$0 sm:$0xff] }
 0x6f7   :  { %4153 = vst.msk [vmem:[#allocation2] ss:$8 sm:$0x3] %vm7713_vm6, %v4147_v47  ;;  %4174 = vst.msk [vmem:[#allocation2 + $0x1] ss:$8 sm:$0x3] %vm7713_vm6, %v4171_v53  ;;  %4909 = vmatpush3.msra.mxu1 %v4536_v14 }
 0x6f8   :  { %4195 = vst.msk [vmem:[#allocation2 + $0x2] ss:$8 sm:$0x3] %vm7713_vm6, %v4192_v49  ;;  %4216 = vst.msk [vmem:[#allocation2 + $0x3] ss:$8 sm:$0x3] %vm7713_vm6, %v4213_v55  ;;  %4910 = vmatprep.subr.mxu1 %v8050_v62 }
 0x6f9   :  { %4237 = vst.msk [vmem:[#allocation2 + $0x4] ss:$8 sm:$0x3] %vm7713_vm6, %v4234_v16  ;;  %4258 = vst.msk [vmem:[#allocation2 + $0x5] ss:$8 sm:$0x3] %vm7713_vm6, %v4255_v59  ;;  %4911 = vmatpush3.msra.mxu1 %v4535_v18 }
 0x6fa   :  { %4279 = vst.msk [vmem:[#allocation2 + $0x6] ss:$8 sm:$0x3] %vm7713_vm6, %v4276_v4  ;;  %4300 = vst.msk [vmem:[#allocation2 + $0x7] ss:$8 sm:$0x3] %vm7713_vm6, %v4297_v52  ;;  %4912 = vmatprep.subr.mxu1 %v8050_v62 }
 0x6fb   :  { %4913 = vmatpush3.msra.mxu1 %v4534_v31 }
 0x6fc   :  { %4914 = vmatprep.subr.mxu1 %v8050_v62 }
 0x6fd   :  { %4915 = vmatpush3.msra.mxu1 %v4533_v30 }
 0x6fe   :  { %4916 = vmatprep.subr.mxu1 %v8050_v62 }
 0x6ff   :  { %4917 = vmatpush3.msra.mxu1 %v4532_v11 }
 0x701   :  { %v4303_v29 = vld [vmem:[#allocation2 + $0x8] sm:$0xff]  ;;  %v4302_v38 = vld [vmem:[#allocation2] sm:$0xff]  ;;  %v4485_v7 = vpop.f32.mrf.mxu1 }
 0x702   :  { %4409 = vmatprep.mubr.f32.mxu0 %v4303_v29 }
 0x703   :  { %4410 = vmatmul.mubr.f32.vlgmr.msra.gmra.mxu0 %v4302_v38  ;;  %v4901_v48 = vpop.f32.mrf.mxu1 }
 0x704   :  { %4929 = vmatprep.mubr.msk.f32.mxu0 %vm5010_vm4, %v8050_v62  ;;  %4922 = vmatpush3.msra.mxu0 %v4658_v13 }
 0x705   :  { %4923 = vmatprep.subr.mxu0 %v8050_v62 }
 0x706   :  { %4924 = vmatpush3.msra.mxu0 %v4657_v32 }
 0x707   :  { %4925 = vmatprep.subr.mxu0 %v8050_v62 }
 0x708   :  { %4926 = vmatpush3.msra.mxu0 %v4656_v56 }
 0x709   :  { %4927 = vmatprep.subr.mxu0 %v8050_v62 }
 0x70a   :  { %4928 = vmatpush3.msra.mxu0 %v4655_v5 }
 0x7c3   :  { %v4857_v9 = vpop.f32.mrf.mxu0 }
 0x7c5   :  { %v4858_v2 = vpop.f32.mrf.mxu0 }
 0x7c6   :  { %v4859_v58 = vadd.f32 %v4858_v2, %v4857_v9 }
 0x7c8   :  { %v4486_v33 = vadd.f32 %v4859_v58, %v4485_v7 }
 0x7ca   :  { %v4494_v42 = vadd.f32 %v4816_v6, %v4486_v33  ;;  %v4821_v6 = vld [vmem:[%s7837_s11 + $0x4] ss:$0 sm:$0xff] }
 0x7cc   :  { %v4495_v26 = vmul.f32 0.01, %v4494_v42 }
 0x7ce   :  { %v4496_v45 = vmax.f32 %v4494_v42, %v4495_v26  ;;  %v4822_v42 = vld [vmem:[%s7837_s11 + $0x5] ss:$0 sm:$0xff] }
 0x7d0   :  { %v4497_v46 = vsel %vm4415_vm5, %v4496_v45, 0.0  ;;  %v4505_v40 = vmul.f32 %v4496_v45, %v4496_v45 }
 0x7d1   :  { %v4498_v60 = vrot.slane %v4497_v46, 4 }
 0x7d2   :  { %v4506_v3 = vsel %vm4415_vm5, %v4505_v40, 0.0 }
 0x7d3   :  { %v4499_v63 = vadd.f32 %v4498_v60, %v4497_v46  ;;  %v4507_v35 = vrot.slane %v4506_v3, 4  ;;  %v4823_v46 = vld [vmem:[%s7837_s11 + $0x6] ss:$0 sm:$0xff] }
 0x7d5   :  { %v4500_v61 = vrot.slane %v4499_v63, 2  ;;  %v4508_v20 = vadd.f32 %v4507_v35, %v4506_v3 }
 0x7d7   :  { %v4501_v8 = vadd.f32 %v4500_v61, %v4499_v63  ;;  %v4509_v28 = vrot.slane %v4508_v20, 2 }
 0x7d9   :  { %v4502_v50 = vrot.slane %v4501_v8, 1  ;;  %v4510_v25 = vadd.f32 %v4509_v28, %v4508_v20 }
 0x7db   :  { %v4503_v21 = vadd.f32 %v4502_v50, %v4501_v8  ;;  %v4511_v10 = vrot.slane %v4510_v25, 1 }
 0x7dd   :  { %v4504_v27 = vmul.f32 0.125, %v4503_v21  ;;  %v4512_v41 = vadd.f32 %v4511_v10, %v4510_v25 }
 0x7df   :  { %v4513_v44 = vmul.f32 0.125, %v4512_v41  ;;  %v4515_v15 = vmul.f32 %v4504_v27, %v4504_v27  ;;  %v4514_v34 = vsub.f32 %v4496_v45, %v4504_v27 }
 0x7e1   :  { %v4516_v51 = vsub.f32 %v4513_v44, %v4515_v15 }
 0x7e3   :  { %v4517_v24 = vadd.f32 1e-05, %v4516_v51 }
 0x7e5   :  { %4987 = vrsqrt.f32 %v4517_v24 }
 0x7f2   :  { %v4988_v57 = vpop.eup %4987 }
 0x7f3   :  { %v4519_v37 = vmul.f32 %v4988_v57, %v4514_v34 }
 0x7f5   :  { %v4525_v1 = vmul.f32 %v4817_v54, %v4519_v37 }
 0x7f7   :  { %v4531_v17 = vadd.f32 %v4818_v23, %v4525_v1 }
 0x7f9   :  { %4919 = vmatmul.mubr.msk.f32.vlgmr.msra.gmra.mxu1 %vm4415_vm5, %v4531_v17 }
 0x8b9   :  { %v4614_v39 = vpop.f32.mrf.mxu1 }
 0x8ba   :  { %v4615_v47 = vadd.f32 %v4819_v22, %v4614_v39 }
 0x8bb   :  { %v4920_v53 = vpop.f32.mrf.mxu1 }
 0x8bc   :  { %v4618_v43 = vmul.f32 0.01, %v4615_v47 }
 0x8be   :  { %v4619_v12 = vmax.f32 %v4615_v47, %v4618_v43 }
 0x8c0   :  { %v4620_v49 = vsel %vm2417_vm2, %v4619_v12, 0.0  ;;  %v4628_v55 = vmul.f32 %v4619_v12, %v4619_v12 }
 0x8c1   :  { %v4621_v16 = vrot.slane %v4620_v49, 4 }
 0x8c2   :  { %v4629_v59 = vsel %vm2417_vm2, %v4628_v55, 0.0 }
 0x8c3   :  { %v4622_v4 = vadd.f32 %v4621_v16, %v4620_v49  ;;  %v4630_v52 = vrot.slane %v4629_v59, 4 }
 0x8c5   :  { %v4623_v29 = vrot.slane %v4622_v4, 2  ;;  %v4631_v62 = vadd.f32 %v4630_v52, %v4629_v59 }
 0x8c7   :  { %v4624_v38 = vadd.f32 %v4623_v29, %v4622_v4  ;;  %v4632_v7 = vrot.slane %v4631_v62, 2 }
 0x8c9   :  { %v4625_v48 = vrot.slane %v4624_v38, 1  ;;  %v4633_v19 = vadd.f32 %v4632_v7, %v4631_v62 }
 0x8cb   :  { %v4626_v36 = vadd.f32 %v4625_v48, %v4624_v38  ;;  %v4634_v0 = vrot.slane %v4633_v19, 1 }
 0x8cd   :  { %v4627_v14 = vmul.f32 0.125, %v4626_v36  ;;  %v4635_v18 = vadd.f32 %v4634_v0, %v4633_v19 }
 0x8cf   :  { %v4636_v31 = vmul.f32 0.125, %v4635_v18  ;;  %v4638_v30 = vmul.f32 %v4627_v14, %v4627_v14  ;;  %v4637_v2 = vsub.f32 %v4619_v12, %v4627_v14 }
 0x8d1   :  { %v4639_v11 = vsub.f32 %v4636_v31, %v4638_v30 }
 0x8d3   :  { %v4640_v9 = vadd.f32 1e-05, %v4639_v11 }
 0x8d5   :  { %4989 = vrsqrt.f32 %v4640_v9 }
 0x8e2   :  { %v4990_v58 = vpop.eup %4989 }
 0x8e3   :  { %v4642_v33 = vmul.f32 %v4990_v58, %v4637_v2 }
 0x8e5   :  { %v4648_v26 = vmul.f32 %v4821_v6, %v4642_v33 }
 0x8e7   :  { %v4654_v45 = vadd.f32 %v4822_v42, %v4648_v26 }
 0x8e9   :  { %4930 = vmatmul.mubr.msk.f32.vlgmr.msra.gmra.mxu0 %vm2417_vm2, %v4654_v45 }
 0x9a9   :  { %v4733_v40 = vpop.f32.mrf.mxu0 }
 0x9aa   :  { %v4734_v60 = vadd.f32 %v4823_v46, %v4733_v40 }
 0x9ab   :  { %v4931_v3 = vpop.f32.mrf.mxu0 }
 0x9ac   :  { %4738 = vst.msk [vmem:[%s7839_s12] sm:$0xff] %vm4737_vm7, %v4734_v60 }

</bundles_post_ra>
